<compile_context>
chip_gen: v7x
topology: tpu7x:2x2x1
jax: 0.10.0
libtpu: 0.0.40
codegen_flags: <defaults>
</compile_context>

<pallas_src>
import functools

import jax
import jax.numpy as jnp
from jax import lax
from jax.experimental import pallas as pl
from jax.experimental.pallas import tpu as pltpu


def _round_up(x, m):
    return (x + m - 1) // m * m


def _reorder_gates(w, H):
    """torch gate order (i, f, g, o) columns -> gate-type order (i, f, o, g).

    w: (..., 4H)  ->  (..., 4, H)   (axis -2 indexes gate type i,f,o,g).
    """
    i, f, g, o = jnp.split(w, 4, axis=-1)
    return jnp.stack([i, f, o, g], axis=-2)


def _pack_weights(params, n_channels, H):
    """Build batch-packed, block-diagonal, gate-type-major fused weights.

    Packed column layout (width GW = 4 * 4 * 2H):
        col = gate_type * (4*2H) + packed_row * 2H + dir * H + unit
    with gate_type in (i, f, o, g), dir 0 = forward, 1 = reverse.
    Sigmoid gate columns (i, f, o) are pre-scaled by 0.5 so the kernel only
    needs one full-width tanh plus scalar 0.5/0.5 on the sigmoid slices.
    """
    wih_f, whh_f, b_f, wih_r, whh_r, b_r = params
    C = n_channels
    H2 = 2 * H
    # per-gate-type pre-scale: sigmoid gates (i,f,o) folded 0.5; tanh gate 1.0
    gscale = jnp.array([0.5, 0.5, 0.5, 1.0], jnp.float32)[None, :, None]

    # recurrent weights, block-diagonal over direction: (2H, 4, 2H)
    W2 = jnp.zeros((H2, 4, H2), jnp.float32)
    W2 = W2.at[:H, :, :H].set(_reorder_gates(whh_f, H))
    W2 = W2.at[H:, :, H:].set(_reorder_gates(whh_r, H))
    W2 = W2 * gscale

    # input weights for the direction-augmented input [x_t | x_{T-1-t}]:
    # (2C, 4, 2H), block-diagonal over direction
    V2 = jnp.zeros((2 * C, 4, H2), jnp.float32)
    V2 = V2.at[:C, :, :H].set(_reorder_gates(wih_f, H))
    V2 = V2.at[C:, :, H:].set(_reorder_gates(wih_r, H))
    V2 = V2 * gscale

    # fused bias (b_ih + b_hh already merged per direction): (4, 2H)
    b2 = jnp.concatenate([_reorder_gates(b_f, H)[0],
                          _reorder_gates(b_r, H)[0]], axis=-1)
    b2 = b2 * gscale[0]

    # replicate block-diagonally over the 4 batch rows packed into lanes:
    # rows = r*K + a ; cols = gate*(4*2H) + r*2H + b
    eye4 = jnp.eye(4, dtype=jnp.float32)
    GW = 4 * 4 * H2
    whh_bd = jnp.einsum('rs,agb->ragsb', eye4, W2).reshape(4 * H2, GW)
    wih_bd = jnp.einsum('rs,agb->ragsb', eye4, V2).reshape(4 * 2 * C, GW)
    b_bd = jnp.broadcast_to(b2[:, None, :], (4, 4, H2)).reshape(1, GW)
    return wih_bd, whh_bd, b_bd


def _lstm_bidir_kernel(x_ref, wih_ref, whh_ref, b_ref, out_ref, gx_ref):
    T, TBp, KX = x_ref.shape           # KX = 4 * 2C (packed augmented input)
    KH = out_ref.shape[2]              # KH = 4 * 2H (packed hidden width)
    GW = gx_ref.shape[2]               # GW = 4 * KH (packed gate width)
    GB = KH                            # per-gate-type packed block width

    # ---- hoisted input projection (all timesteps, both directions) --------
    # x_ref already carries [x_t | x_{T-1-t}] per packed row, so gx_ref[t] is
    # the fully merged per-direction gate pre-activation for timestep t.
    x_flat = x_ref[...].reshape(T * TBp, KX)
    gx = jnp.dot(x_flat, wih_ref[...],
                 preferred_element_type=jnp.float32) + b_ref[...]
    gx_ref[...] = gx.reshape(T, TBp, GW)

    whh = whh_ref[...]                 # (KH, GW) block-diag recurrent weights

    h0 = jnp.zeros((TBp, KH), jnp.float32)   # torch default: zero init state
    c0 = jnp.zeros((TBp, KH), jnp.float32)

    def step(t, carry):
        h, c = carry
        # single fused recurrent matmul for both directions, K = KH
        gates = jnp.dot(h, whh, preferred_element_type=jnp.float32) + gx_ref[t]
        # sigmoid gates pre-scaled by 0.5 in the wrapper:
        #   sigma(z) = 0.5 * tanh(0.5 z) + 0.5 ; the g gate is plain tanh.
        a = jnp.tanh(gates)
        i = a[:, 0 * GB:1 * GB] * 0.5 + 0.5
        f = a[:, 1 * GB:2 * GB] * 0.5 + 0.5
        o = a[:, 2 * GB:3 * GB] * 0.5 + 0.5
        g = a[:, 3 * GB:4 * GB]
        c_new = f * c + i * g
        h_new = o * jnp.tanh(c_new)
        # full-width (TBp, KH) unmasked store: lane-dense by construction
        out_ref[t] = h_new.astype(out_ref.dtype)
        return (h_new, c_new)

    lax.fori_loop(0, T, step, (h0, c0), unroll=True if T <= 16 else 4)


def _vmem_limit_bytes(estimate):
    cap = 64 * 2**20                   # conservative fallback (v7x per-core)
    try:
        cap = int(pltpu.get_tpu_info().vmem_capacity_bytes)
    except Exception:
        pass
    return int(min(max(estimate * 3 // 2, 32 * 2**20), cap * 3 // 4))


def rnn_forward(x, params, hidden_size, *, batch_tile=512):
    """deepdow RNN.forward (LSTM cell, bidirectional, 1 layer).

    x : (n_samples, n_channels, lookback, n_assets) float32
    returns : (n_samples, hidden_size, lookback, n_assets) float32
    """
    n_samples, n_channels, lookback, n_assets = x.shape
    H = hidden_size // 2
    T, C = lookback, n_channels
    B = n_samples * n_assets

    KX = 4 * 2 * C                     # packed augmented-input width
    KH = 4 * 2 * H                     # packed hidden width
    GW = 4 * KH                        # packed gate width

    wih_bd, whh_bd, b_bd = _pack_weights(params, C, H)

    # time-major, flattened RNN batch: (T, B, C)
    x_tm = jnp.transpose(x, (2, 0, 3, 1)).reshape(T, B, C).astype(jnp.float32)

    # ---- batch packing: 4 rows -> lane groups ------------------------------
    P = -(-B // 4)                                        # packed rows needed
    TBp = max(8, min(_round_up(P, 8), _round_up(batch_tile, 32) // 4))
    TBp = _round_up(TBp, 8)
    # cap the gx scratch (T * TBp * GW f32) at ~24 MiB so large T stays in VMEM
    gx_row_bytes = T * GW * 4
    tbp_cap = max(8, ((24 * 2**20) // gx_row_bytes) // 8 * 8)
    TBp = min(TBp, tbp_cap)
    P_pad = _round_up(P, TBp)
    B_pad = 4 * P_pad
    nb = P_pad // TBp
    # NOTE: on v7x (2 TensorCores) pick batch_tile so nb >= 2 for big batches;
    # on single-TC v5e/v6e prefer nb = 1 (bigger TBp) to amortize grid steps.

    if B_pad != B:
        x_tm = jnp.pad(x_tm, ((0, 0), (0, B_pad - B), (0, 0)))
    # augmented input: forward columns see x_t, reverse columns see x_{T-1-t}
    x_aug = jnp.concatenate([x_tm, x_tm[::-1]], axis=-1)      # (T, B_pad, 2C)
    x_packed = x_aug.reshape(T, P_pad, 4, 2 * C).reshape(T, P_pad, KX)

    # explicit VMEM budget (double-buffered IO blocks + weights + gx scratch)
    est = 4 * (2 * T * TBp * KX + 2 * T * TBp * KH + T * TBp * GW
               + 2 * (KX * GW + KH * GW + GW))
    vmem_limit = _vmem_limit_bytes(est)

    out = pl.pallas_call(
        _lstm_bidir_kernel,
        out_shape=jax.ShapeDtypeStruct((T, P_pad, KH), jnp.float32),
        grid_spec=pltpu.PrefetchScalarGridSpec(
            num_scalar_prefetch=0,
            grid=(nb,),
            in_specs=[
                pl.BlockSpec((T, TBp, KX), lambda i: (0, i, 0)),
                pl.BlockSpec((KX, GW), lambda i: (0, 0)),
                pl.BlockSpec((KH, GW), lambda i: (0, 0)),
                pl.BlockSpec((1, GW), lambda i: (0, 0)),
            ],
            out_specs=pl.BlockSpec((T, TBp, KH), lambda i: (0, i, 0)),
            scratch_shapes=[
                pltpu.VMEM((T, TBp, GW), jnp.float32),   # hoisted gates_x
            ],
        ),
        compiler_params=pltpu.CompilerParams(
            dimension_semantics=("parallel",),
            vmem_limit_bytes=vmem_limit,
        ),
    )(x_packed, wih_bd, whh_bd, b_bd)

    # unpack the 4 lane-packed batch rows, drop padding
    out = out.reshape(T, P_pad, 4, 2 * H).reshape(T, B_pad, 2 * H)[:, :B]
    out_f = out[:, :, :H]                   # forward hidden, time-ordered
    out_r = out[::-1, :, H:]                # reverse hidden, un-reverse time
    full = jnp.concatenate([out_f, out_r], axis=-1)           # (T, B, 2H)
    full = full.reshape(T, n_samples, n_assets, hidden_size)
    return jnp.transpose(full, (1, 3, 0, 2))


def _reference_forward(x, params, hidden_size):
    """Pure-JAX reference (lax.scan) for correctness checking."""
    n_samples, n_channels, lookback, n_assets = x.shape
    H = hidden_size // 2
    B = n_samples * n_assets
    x_tm = jnp.transpose(x, (2, 0, 3, 1)).reshape(lookback, B, n_channels)
    wih_f, whh_f, b_f, wih_r, whh_r, b_r = params

    def cell(carry, x_t, wih, whh, b):
        h, c = carry
        gates = x_t @ wih + h @ whh + b
        i = jax.nn.sigmoid(gates[:, 0 * H:1 * H])
        f = jax.nn.sigmoid(gates[:, 1 * H:2 * H])
        g = jnp.tanh(gates[:, 2 * H:3 * H])
        o = jax.nn.sigmoid(gates[:, 3 * H:4 * H])
        c_new = f * c + i * g
        h_new = o * jnp.tanh(c_new)
        return (h_new, c_new), h_new

    z = jnp.zeros((B, H), jnp.float32)
    _, out_f = lax.scan(functools.partial(cell, wih=wih_f, whh=whh_f, b=b_f),
                        (z, z), x_tm)
    _, out_r_rev = lax.scan(functools.partial(cell, wih=wih_r, whh=whh_r, b=b_r),
                            (z, z), x_tm[::-1])
    out_r = out_r_rev[::-1]
    out = jnp.concatenate([out_f, out_r], axis=-1)
    out = out.reshape(lookback, n_samples, n_assets, hidden_size)
    return jnp.transpose(out, (1, 3, 0, 2))


def make_params(key, n_channels, hidden_size):
    """Deterministic synthetic LSTM parameters (per-direction, torch gate order)."""
    H = hidden_size // 2
    k = 1.0 / jnp.sqrt(H)
    keys = jax.random.split(key, 6)
    # weights stored transposed: x_t @ W_ih with W_ih of shape (C, 4H)
    wih_f = jax.random.uniform(keys[0], (n_channels, 4 * H), jnp.float32, -k, k)
    whh_f = jax.random.uniform(keys[1], (H, 4 * H), jnp.float32, -k, k)
    b_f = jax.random.uniform(keys[2], (1, 4 * H), jnp.float32, -k, k)   # b_ih + b_hh
    wih_r = jax.random.uniform(keys[3], (n_channels, 4 * H), jnp.float32, -k, k)
    whh_r = jax.random.uniform(keys[4], (H, 4 * H), jnp.float32, -k, k)
    b_r = jax.random.uniform(keys[5], (1, 4 * H), jnp.float32, -k, k)
    return (wih_f, whh_f, b_f, wih_r, whh_r, b_r)


if __name__ == "__main__":
    # Module default config: LSTM cell, bidirectional, n_layers=1.
    # TODO(synk): cell_type='RNN' and n_layers>1 variants are not implemented.
    n_samples, n_channels, lookback, n_assets = 2, 4, 16, 16
    hidden_size = 32   # 16 per direction (bidirectional)

    key = jax.random.PRNGKey(0)
    kx, kp = jax.random.split(key)
    x = jax.random.normal(kx, (n_samples, n_channels, lookback, n_assets), jnp.float32)
    params = make_params(kp, n_channels, hidden_size)

    out = rnn_forward(x, params, hidden_size)
    out = jax.block_until_ready(out)

    assert out.shape == (n_samples, hidden_size, lookback, n_assets), out.shape

    ref = jax.block_until_ready(_reference_forward(x, params, hidden_size))
    if not jnp.allclose(out, ref, atol=2e-4, rtol=2e-4):
        err = float(jnp.max(jnp.abs(out - ref)))
        raise AssertionError(
            f"Pallas LSTM output mismatch vs JAX reference (max|diff|={err})")

    print("KERNEL_OK")
</pallas_src>

<mosaic_0001>
module attributes {stable_mosaic.version = 11 : i64} {
  func.func @_lstm_bidir_kernel(%arg0: i32, %arg1: memref<16x8x32xf32, #tpu.memory_space<vmem>>, %arg2: memref<32x512xf32, #tpu.memory_space<vmem>>, %arg3: memref<128x512xf32, #tpu.memory_space<vmem>>, %arg4: memref<1x512xf32, #tpu.memory_space<vmem>>, %arg5: memref<16x8x128xf32, #tpu.memory_space<vmem>>, %arg6: memref<16x8x512xf32, #tpu.memory_space<vmem>>) attributes {dimension_semantics = [#tpu.dimension_semantics<parallel>], iteration_bounds = array<i64: 1>, scalar_prefetch = 0 : i64, scratch_operands = 1 : i64, tpu.core_type = #tpu.core_type<tc>, window_params = [{transform_indices = @transform_0, window_bounds = array<i64: 16, 8, 32>}, {pipeline_mode = #tpu.pipeline_mode<synchronous>, transform_indices = @transform_1, window_bounds = array<i64: 32, 512>}, {pipeline_mode = #tpu.pipeline_mode<synchronous>, transform_indices = @transform_2, window_bounds = array<i64: 128, 512>}, {pipeline_mode = #tpu.pipeline_mode<synchronous>, transform_indices = @transform_3, window_bounds = array<i64: 1, 512>}, {transform_indices = @transform_4, window_bounds = array<i64: 16, 8, 128>}]} {
    %c0 = arith.constant 0 : index
    %c0_0 = arith.constant 0 : index
    %c0_1 = arith.constant 0 : index
    %0 = vector.load %arg1[%c0, %c0_0, %c0_1] : memref<16x8x32xf32, #tpu.memory_space<vmem>>, vector<16x8x32xf32>
    %1 = vector.shape_cast %0 : vector<16x8x32xf32> to vector<128x32xf32>
    %c0_2 = arith.constant 0 : index
    %c0_3 = arith.constant 0 : index
    %2 = vector.load %arg2[%c0_2, %c0_3] : memref<32x512xf32, #tpu.memory_space<vmem>>, vector<32x512xf32>
    %cst = arith.constant dense<0.000000e+00> : vector<128x512xf32>
    %3 = tpu.matmul %1, %2, %cst {dimension_numbers = #tpu.dot_dimension_numbers<[1], [0], [0], [1], [0, 0, 1, 1], [], []>} : vector<128x32xf32>, vector<32x512xf32>, vector<128x512xf32> -> vector<128x512xf32>
    %c0_4 = arith.constant 0 : index
    %c0_5 = arith.constant 0 : index
    %4 = vector.load %arg4[%c0_4, %c0_5] : memref<1x512xf32, #tpu.memory_space<vmem>>, vector<1x512xf32>
    %5 = vector.broadcast %4 : vector<1x512xf32> to vector<128x512xf32>
    %6 = arith.addf %3, %5 : vector<128x512xf32>
    %7 = vector.shape_cast %6 : vector<128x512xf32> to vector<16x8x512xf32>
    %c0_6 = arith.constant 0 : index
    %c0_7 = arith.constant 0 : index
    %c0_8 = arith.constant 0 : index
    %8 = vector.load %arg6[%c0_6, %c0_7, %c0_8] : memref<16x8x512xf32, #tpu.memory_space<vmem>>, vector<16x8x512xf32>
    tpu.vector_store %arg6[%c0_6, %c0_7, %c0_8], %7 {strides = array<i32>} : memref<16x8x512xf32, #tpu.memory_space<vmem>>, vector<16x8x512xf32>,
    %c0_9 = arith.constant 0 : index
    %c0_10 = arith.constant 0 : index
    %9 = vector.load %arg3[%c0_9, %c0_10] : memref<128x512xf32, #tpu.memory_space<vmem>>, vector<128x512xf32>
    %cst_11 = arith.constant 0.000000e+00 : f32
    %10 = vector.broadcast %cst_11 : f32 to vector<8x128xf32>
    %cst_12 = arith.constant 0.000000e+00 : f32
    %11 = vector.broadcast %cst_12 : f32 to vector<8x128xf32>
    %c0_i32 = arith.constant 0 : i32
    %cst_13 = arith.constant dense<0.000000e+00> : vector<8x512xf32>
    %12 = tpu.matmul %10, %9, %cst_13 {dimension_numbers = #tpu.dot_dimension_numbers<[1], [0], [0], [1], [0, 0, 1, 1], [], []>} : vector<8x128xf32>, vector<128x512xf32>, vector<8x512xf32> -> vector<8x512xf32>
    %13 = arith.index_cast %c0_i32 : i32 to index
    %c0_14 = arith.constant 0 : index
    %c0_15 = arith.constant 0 : index
    %14 = vector.load %arg6[%13, %c0_14, %c0_15] : memref<16x8x512xf32, #tpu.memory_space<vmem>>, vector<1x8x512xf32>
    %15 = vector.shape_cast %14 : vector<1x8x512xf32> to vector<8x512xf32>
    %16 = arith.addf %12, %15 : vector<8x512xf32>
    %17 = math.tanh %16 : vector<8x512xf32>
    %18 = vector.extract_strided_slice %17 {offsets = [0, 0], sizes = [8, 128], strides = [1, 1]} : vector<8x512xf32> to vector<8x128xf32>
    %cst_16 = arith.constant 5.000000e-01 : f32
    %19 = vector.broadcast %cst_16 : f32 to vector<8x128xf32>
    %20 = arith.mulf %18, %19 : vector<8x128xf32>
    %cst_17 = arith.constant 5.000000e-01 : f32
    %21 = vector.broadcast %cst_17 : f32 to vector<8x128xf32>
    %22 = arith.addf %20, %21 : vector<8x128xf32>
    %23 = vector.extract_strided_slice %17 {offsets = [0, 128], sizes = [8, 128], strides = [1, 1]} : vector<8x512xf32> to vector<8x128xf32>
    %cst_18 = arith.constant 5.000000e-01 : f32
    %24 = vector.broadcast %cst_18 : f32 to vector<8x128xf32>
    %25 = arith.mulf %23, %24 : vector<8x128xf32>
    %cst_19 = arith.constant 5.000000e-01 : f32
    %26 = vector.broadcast %cst_19 : f32 to vector<8x128xf32>
    %27 = arith.addf %25, %26 : vector<8x128xf32>
    %28 = vector.extract_strided_slice %17 {offsets = [0, 256], sizes = [8, 128], strides = [1, 1]} : vector<8x512xf32> to vector<8x128xf32>
    %cst_20 = arith.constant 5.000000e-01 : f32
    %29 = vector.broadcast %cst_20 : f32 to vector<8x128xf32>
    %30 = arith.mulf %28, %29 : vector<8x128xf32>
    %cst_21 = arith.constant 5.000000e-01 : f32
    %31 = vector.broadcast %cst_21 : f32 to vector<8x128xf32>
    %32 = arith.addf %30, %31 : vector<8x128xf32>
    %33 = vector.extract_strided_slice %17 {offsets = [0, 384], sizes = [8, 128], strides = [1, 1]} : vector<8x512xf32> to vector<8x128xf32>
    %34 = arith.mulf %27, %11 : vector<8x128xf32>
    %35 = arith.mulf %22, %33 : vector<8x128xf32>
    %36 = arith.addf %34, %35 : vector<8x128xf32>
    %37 = math.tanh %36 : vector<8x128xf32>
    %38 = arith.mulf %32, %37 : vector<8x128xf32>
    %39 = arith.index_cast %c0_i32 : i32 to index
    %c0_22 = arith.constant 0 : index
    %c0_23 = arith.constant 0 : index
    %40 = vector.load %arg5[%39, %c0_22, %c0_23] : memref<16x8x128xf32, #tpu.memory_space<vmem>>, vector<1x8x128xf32>
    %41 = vector.shape_cast %40 : vector<1x8x128xf32> to vector<8x128xf32>
    %42 = vector.shape_cast %38 : vector<8x128xf32> to vector<1x8x128xf32>
    tpu.vector_store %arg5[%39, %c0_22, %c0_23], %42 {strides = array<i32>} : memref<16x8x128xf32, #tpu.memory_space<vmem>>, vector<1x8x128xf32>,
    %c1_i32 = arith.constant 1 : i32
    %cst_24 = arith.constant dense<0.000000e+00> : vector<8x512xf32>
    %43 = tpu.matmul %38, %9, %cst_24 {dimension_numbers = #tpu.dot_dimension_numbers<[1], [0], [0], [1], [0, 0, 1, 1], [], []>} : vector<8x128xf32>, vector<128x512xf32>, vector<8x512xf32> -> vector<8x512xf32>
    %44 = arith.index_cast %c1_i32 : i32 to index
    %c0_25 = arith.constant 0 : index
    %c0_26 = arith.constant 0 : index
    %45 = vector.load %arg6[%44, %c0_25, %c0_26] : memref<16x8x512xf32, #tpu.memory_space<vmem>>, vector<1x8x512xf32>
    %46 = vector.shape_cast %45 : vector<1x8x512xf32> to vector<8x512xf32>
    %47 = arith.addf %43, %46 : vector<8x512xf32>
    %48 = math.tanh %47 : vector<8x512xf32>
    %49 = vector.extract_strided_slice %48 {offsets = [0, 0], sizes = [8, 128], strides = [1, 1]} : vector<8x512xf32> to vector<8x128xf32>
    %cst_27 = arith.constant 5.000000e-01 : f32
    %50 = vector.broadcast %cst_27 : f32 to vector<8x128xf32>
    %51 = arith.mulf %49, %50 : vector<8x128xf32>
    %cst_28 = arith.constant 5.000000e-01 : f32
    %52 = vector.broadcast %cst_28 : f32 to vector<8x128xf32>
    %53 = arith.addf %51, %52 : vector<8x128xf32>
    %54 = vector.extract_strided_slice %48 {offsets = [0, 128], sizes = [8, 128], strides = [1, 1]} : vector<8x512xf32> to vector<8x128xf32>
    %cst_29 = arith.constant 5.000000e-01 : f32
    %55 = vector.broadcast %cst_29 : f32 to vector<8x128xf32>
    %56 = arith.mulf %54, %55 : vector<8x128xf32>
    %cst_30 = arith.constant 5.000000e-01 : f32
    %57 = vector.broadcast %cst_30 : f32 to vector<8x128xf32>
    %58 = arith.addf %56, %57 : vector<8x128xf32>
    %59 = vector.extract_strided_slice %48 {offsets = [0, 256], sizes = [8, 128], strides = [1, 1]} : vector<8x512xf32> to vector<8x128xf32>
    %cst_31 = arith.constant 5.000000e-01 : f32
    %60 = vector.broadcast %cst_31 : f32 to vector<8x128xf32>
    %61 = arith.mulf %59, %60 : vector<8x128xf32>
    %cst_32 = arith.constant 5.000000e-01 : f32
    %62 = vector.broadcast %cst_32 : f32 to vector<8x128xf32>
    %63 = arith.addf %61, %62 : vector<8x128xf32>
    %64 = vector.extract_strided_slice %48 {offsets = [0, 384], sizes = [8, 128], strides = [1, 1]} : vector<8x512xf32> to vector<8x128xf32>
    %65 = arith.mulf %58, %36 : vector<8x128xf32>
    %66 = arith.mulf %53, %64 : vector<8x128xf32>
    %67 = arith.addf %65, %66 : vector<8x128xf32>
    %68 = math.tanh %67 : vector<8x128xf32>
    %69 = arith.mulf %63, %68 : vector<8x128xf32>
    %70 = arith.index_cast %c1_i32 : i32 to index
    %c0_33 = arith.constant 0 : index
    %c0_34 = arith.constant 0 : index
    %71 = vector.load %arg5[%70, %c0_33, %c0_34] : memref<16x8x128xf32, #tpu.memory_space<vmem>>, vector<1x8x128xf32>
    %72 = vector.shape_cast %71 : vector<1x8x128xf32> to vector<8x128xf32>
    %73 = vector.shape_cast %69 : vector<8x128xf32> to vector<1x8x128xf32>
    tpu.vector_store %arg5[%70, %c0_33, %c0_34], %73 {strides = array<i32>} : memref<16x8x128xf32, #tpu.memory_space<vmem>>, vector<1x8x128xf32>,
    %c2_i32 = arith.constant 2 : i32
    %cst_35 = arith.constant dense<0.000000e+00> : vector<8x512xf32>
    %74 = tpu.matmul %69, %9, %cst_35 {dimension_numbers = #tpu.dot_dimension_numbers<[1], [0], [0], [1], [0, 0, 1, 1], [], []>} : vector<8x128xf32>, vector<128x512xf32>, vector<8x512xf32> -> vector<8x512xf32>
    %75 = arith.index_cast %c2_i32 : i32 to index
    %c0_36 = arith.constant 0 : index
    %c0_37 = arith.constant 0 : index
    %76 = vector.load %arg6[%75, %c0_36, %c0_37] : memref<16x8x512xf32, #tpu.memory_space<vmem>>, vector<1x8x512xf32>
    %77 = vector.shape_cast %76 : vector<1x8x512xf32> to vector<8x512xf32>
    %78 = arith.addf %74, %77 : vector<8x512xf32>
    %79 = math.tanh %78 : vector<8x512xf32>
    %80 = vector.extract_strided_slice %79 {offsets = [0, 0], sizes = [8, 128], strides = [1, 1]} : vector<8x512xf32> to vector<8x128xf32>
    %cst_38 = arith.constant 5.000000e-01 : f32
    %81 = vector.broadcast %cst_38 : f32 to vector<8x128xf32>
    %82 = arith.mulf %80, %81 : vector<8x128xf32>
    %cst_39 = arith.constant 5.000000e-01 : f32
    %83 = vector.broadcast %cst_39 : f32 to vector<8x128xf32>
    %84 = arith.addf %82, %83 : vector<8x128xf32>
    %85 = vector.extract_strided_slice %79 {offsets = [0, 128], sizes = [8, 128], strides = [1, 1]} : vector<8x512xf32> to vector<8x128xf32>
    %cst_40 = arith.constant 5.000000e-01 : f32
    %86 = vector.broadcast %cst_40 : f32 to vector<8x128xf32>
    %87 = arith.mulf %85, %86 : vector<8x128xf32>
    %cst_41 = arith.constant 5.000000e-01 : f32
    %88 = vector.broadcast %cst_41 : f32 to vector<8x128xf32>
    %89 = arith.addf %87, %88 : vector<8x128xf32>
    %90 = vector.extract_strided_slice %79 {offsets = [0, 256], sizes = [8, 128], strides = [1, 1]} : vector<8x512xf32> to vector<8x128xf32>
    %cst_42 = arith.constant 5.000000e-01 : f32
    %91 = vector.broadcast %cst_42 : f32 to vector<8x128xf32>
    %92 = arith.mulf %90, %91 : vector<8x128xf32>
    %cst_43 = arith.constant 5.000000e-01 : f32
    %93 = vector.broadcast %cst_43 : f32 to vector<8x128xf32>
    %94 = arith.addf %92, %93 : vector<8x128xf32>
    %95 = vector.extract_strided_slice %79 {offsets = [0, 384], sizes = [8, 128], strides = [1, 1]} : vector<8x512xf32> to vector<8x128xf32>
    %96 = arith.mulf %89, %67 : vector<8x128xf32>
    %97 = arith.mulf %84, %95 : vector<8x128xf32>
    %98 = arith.addf %96, %97 : vector<8x128xf32>
    %99 = math.tanh %98 : vector<8x128xf32>
    %100 = arith.mulf %94, %99 : vector<8x128xf32>
    %101 = arith.index_cast %c2_i32 : i32 to index
    %c0_44 = arith.constant 0 : index
    %c0_45 = arith.constant 0 : index
    %102 = vector.load %arg5[%101, %c0_44, %c0_45] : memref<16x8x128xf32, #tpu.memory_space<vmem>>, vector<1x8x128xf32>
    %103 = vector.shape_cast %102 : vector<1x8x128xf32> to vector<8x128xf32>
    %104 = vector.shape_cast %100 : vector<8x128xf32> to vector<1x8x128xf32>
    tpu.vector_store %arg5[%101, %c0_44, %c0_45], %104 {strides = array<i32>} : memref<16x8x128xf32, #tpu.memory_space<vmem>>, vector<1x8x128xf32>,
    %c3_i32 = arith.constant 3 : i32
    %cst_46 = arith.constant dense<0.000000e+00> : vector<8x512xf32>
    %105 = tpu.matmul %100, %9, %cst_46 {dimension_numbers = #tpu.dot_dimension_numbers<[1], [0], [0], [1], [0, 0, 1, 1], [], []>} : vector<8x128xf32>, vector<128x512xf32>, vector<8x512xf32> -> vector<8x512xf32>
    %106 = arith.index_cast %c3_i32 : i32 to index
    %c0_47 = arith.constant 0 : index
    %c0_48 = arith.constant 0 : index
    %107 = vector.load %arg6[%106, %c0_47, %c0_48] : memref<16x8x512xf32, #tpu.memory_space<vmem>>, vector<1x8x512xf32>
    %108 = vector.shape_cast %107 : vector<1x8x512xf32> to vector<8x512xf32>
    %109 = arith.addf %105, %108 : vector<8x512xf32>
    %110 = math.tanh %109 : vector<8x512xf32>
    %111 = vector.extract_strided_slice %110 {offsets = [0, 0], sizes = [8, 128], strides = [1, 1]} : vector<8x512xf32> to vector<8x128xf32>
    %cst_49 = arith.constant 5.000000e-01 : f32
    %112 = vector.broadcast %cst_49 : f32 to vector<8x128xf32>
    %113 = arith.mulf %111, %112 : vector<8x128xf32>
    %cst_50 = arith.constant 5.000000e-01 : f32
    %114 = vector.broadcast %cst_50 : f32 to vector<8x128xf32>
    %115 = arith.addf %113, %114 : vector<8x128xf32>
    %116 = vector.extract_strided_slice %110 {offsets = [0, 128], sizes = [8, 128], strides = [1, 1]} : vector<8x512xf32> to vector<8x128xf32>
    %cst_51 = arith.constant 5.000000e-01 : f32
    %117 = vector.broadcast %cst_51 : f32 to vector<8x128xf32>
    %118 = arith.mulf %116, %117 : vector<8x128xf32>
    %cst_52 = arith.constant 5.000000e-01 : f32
    %119 = vector.broadcast %cst_52 : f32 to vector<8x128xf32>
    %120 = arith.addf %118, %119 : vector<8x128xf32>
    %121 = vector.extract_strided_slice %110 {offsets = [0, 256], sizes = [8, 128], strides = [1, 1]} : vector<8x512xf32> to vector<8x128xf32>
    %cst_53 = arith.constant 5.000000e-01 : f32
    %122 = vector.broadcast %cst_53 : f32 to vector<8x128xf32>
    %123 = arith.mulf %121, %122 : vector<8x128xf32>
    %cst_54 = arith.constant 5.000000e-01 : f32
    %124 = vector.broadcast %cst_54 : f32 to vector<8x128xf32>
    %125 = arith.addf %123, %124 : vector<8x128xf32>
    %126 = vector.extract_strided_slice %110 {offsets = [0, 384], sizes = [8, 128], strides = [1, 1]} : vector<8x512xf32> to vector<8x128xf32>
    %127 = arith.mulf %120, %98 : vector<8x128xf32>
    %128 = arith.mulf %115, %126 : vector<8x128xf32>
    %129 = arith.addf %127, %128 : vector<8x128xf32>
    %130 = math.tanh %129 : vector<8x128xf32>
    %131 = arith.mulf %125, %130 : vector<8x128xf32>
    %132 = arith.index_cast %c3_i32 : i32 to index
    %c0_55 = arith.constant 0 : index
    %c0_56 = arith.constant 0 : index
    %133 = vector.load %arg5[%132, %c0_55, %c0_56] : memref<16x8x128xf32, #tpu.memory_space<vmem>>, vector<1x8x128xf32>
    %134 = vector.shape_cast %133 : vector<1x8x128xf32> to vector<8x128xf32>
    %135 = vector.shape_cast %131 : vector<8x128xf32> to vector<1x8x128xf32>
    tpu.vector_store %arg5[%132, %c0_55, %c0_56], %135 {strides = array<i32>} : memref<16x8x128xf32, #tpu.memory_space<vmem>>, vector<1x8x128xf32>,
    %c4_i32 = arith.constant 4 : i32
    %cst_57 = arith.constant dense<0.000000e+00> : vector<8x512xf32>
    %136 = tpu.matmul %131, %9, %cst_57 {dimension_numbers = #tpu.dot_dimension_numbers<[1], [0], [0], [1], [0, 0, 1, 1], [], []>} : vector<8x128xf32>, vector<128x512xf32>, vector<8x512xf32> -> vector<8x512xf32>
    %137 = arith.index_cast %c4_i32 : i32 to index
    %c0_58 = arith.constant 0 : index
    %c0_59 = arith.constant 0 : index
    %138 = vector.load %arg6[%137, %c0_58, %c0_59] : memref<16x8x512xf32, #tpu.memory_space<vmem>>, vector<1x8x512xf32>
    %139 = vector.shape_cast %138 : vector<1x8x512xf32> to vector<8x512xf32>
    %140 = arith.addf %136, %139 : vector<8x512xf32>
    %141 = math.tanh %140 : vector<8x512xf32>
    %142 = vector.extract_strided_slice %141 {offsets = [0, 0], sizes = [8, 128], strides = [1, 1]} : vector<8x512xf32> to vector<8x128xf32>
    %cst_60 = arith.constant 5.000000e-01 : f32
    %143 = vector.broadcast %cst_60 : f32 to vector<8x128xf32>
    %144 = arith.mulf %142, %143 : vector<8x128xf32>
    %cst_61 = arith.constant 5.000000e-01 : f32
    %145 = vector.broadcast %cst_61 : f32 to vector<8x128xf32>
    %146 = arith.addf %144, %145 : vector<8x128xf32>
    %147 = vector.extract_strided_slice %141 {offsets = [0, 128], sizes = [8, 128], strides = [1, 1]} : vector<8x512xf32> to vector<8x128xf32>
    %cst_62 = arith.constant 5.000000e-01 : f32
    %148 = vector.broadcast %cst_62 : f32 to vector<8x128xf32>
    %149 = arith.mulf %147, %148 : vector<8x128xf32>
    %cst_63 = arith.constant 5.000000e-01 : f32
    %150 = vector.broadcast %cst_63 : f32 to vector<8x128xf32>
    %151 = arith.addf %149, %150 : vector<8x128xf32>
    %152 = vector.extract_strided_slice %141 {offsets = [0, 256], sizes = [8, 128], strides = [1, 1]} : vector<8x512xf32> to vector<8x128xf32>
    %cst_64 = arith.constant 5.000000e-01 : f32
    %153 = vector.broadcast %cst_64 : f32 to vector<8x128xf32>
    %154 = arith.mulf %152, %153 : vector<8x128xf32>
    %cst_65 = arith.constant 5.000000e-01 : f32
    %155 = vector.broadcast %cst_65 : f32 to vector<8x128xf32>
    %156 = arith.addf %154, %155 : vector<8x128xf32>
    %157 = vector.extract_strided_slice %141 {offsets = [0, 384], sizes = [8, 128], strides = [1, 1]} : vector<8x512xf32> to vector<8x128xf32>
    %158 = arith.mulf %151, %129 : vector<8x128xf32>
    %159 = arith.mulf %146, %157 : vector<8x128xf32>
    %160 = arith.addf %158, %159 : vector<8x128xf32>
    %161 = math.tanh %160 : vector<8x128xf32>
    %162 = arith.mulf %156, %161 : vector<8x128xf32>
    %163 = arith.index_cast %c4_i32 : i32 to index
    %c0_66 = arith.constant 0 : index
    %c0_67 = arith.constant 0 : index
    %164 = vector.load %arg5[%163, %c0_66, %c0_67] : memref<16x8x128xf32, #tpu.memory_space<vmem>>, vector<1x8x128xf32>
    %165 = vector.shape_cast %164 : vector<1x8x128xf32> to vector<8x128xf32>
    %166 = vector.shape_cast %162 : vector<8x128xf32> to vector<1x8x128xf32>
    tpu.vector_store %arg5[%163, %c0_66, %c0_67], %166 {strides = array<i32>} : memref<16x8x128xf32, #tpu.memory_space<vmem>>, vector<1x8x128xf32>,
    %c5_i32 = arith.constant 5 : i32
    %cst_68 = arith.constant dense<0.000000e+00> : vector<8x512xf32>
    %167 = tpu.matmul %162, %9, %cst_68 {dimension_numbers = #tpu.dot_dimension_numbers<[1], [0], [0], [1], [0, 0, 1, 1], [], []>} : vector<8x128xf32>, vector<128x512xf32>, vector<8x512xf32> -> vector<8x512xf32>
    %168 = arith.index_cast %c5_i32 : i32 to index
    %c0_69 = arith.constant 0 : index
    %c0_70 = arith.constant 0 : index
    %169 = vector.load %arg6[%168, %c0_69, %c0_70] : memref<16x8x512xf32, #tpu.memory_space<vmem>>, vector<1x8x512xf32>
    %170 = vector.shape_cast %169 : vector<1x8x512xf32> to vector<8x512xf32>
    %171 = arith.addf %167, %170 : vector<8x512xf32>
    %172 = math.tanh %171 : vector<8x512xf32>
    %173 = vector.extract_strided_slice %172 {offsets = [0, 0], sizes = [8, 128], strides = [1, 1]} : vector<8x512xf32> to vector<8x128xf32>
    %cst_71 = arith.constant 5.000000e-01 : f32
    %174 = vector.broadcast %cst_71 : f32 to vector<8x128xf32>
    %175 = arith.mulf %173, %174 : vector<8x128xf32>
    %cst_72 = arith.constant 5.000000e-01 : f32
    %176 = vector.broadcast %cst_72 : f32 to vector<8x128xf32>
    %177 = arith.addf %175, %176 : vector<8x128xf32>
    %178 = vector.extract_strided_slice %172 {offsets = [0, 128], sizes = [8, 128], strides = [1, 1]} : vector<8x512xf32> to vector<8x128xf32>
    %cst_73 = arith.constant 5.000000e-01 : f32
    %179 = vector.broadcast %cst_73 : f32 to vector<8x128xf32>
    %180 = arith.mulf %178, %179 : vector<8x128xf32>
    %cst_74 = arith.constant 5.000000e-01 : f32
    %181 = vector.broadcast %cst_74 : f32 to vector<8x128xf32>
    %182 = arith.addf %180, %181 : vector<8x128xf32>
    %183 = vector.extract_strided_slice %172 {offsets = [0, 256], sizes = [8, 128], strides = [1, 1]} : vector<8x512xf32> to vector<8x128xf32>
    %cst_75 = arith.constant 5.000000e-01 : f32
    %184 = vector.broadcast %cst_75 : f32 to vector<8x128xf32>
    %185 = arith.mulf %183, %184 : vector<8x128xf32>
    %cst_76 = arith.constant 5.000000e-01 : f32
    %186 = vector.broadcast %cst_76 : f32 to vector<8x128xf32>
    %187 = arith.addf %185, %186 : vector<8x128xf32>
    %188 = vector.extract_strided_slice %172 {offsets = [0, 384], sizes = [8, 128], strides = [1, 1]} : vector<8x512xf32> to vector<8x128xf32>
    %189 = arith.mulf %182, %160 : vector<8x128xf32>
    %190 = arith.mulf %177, %188 : vector<8x128xf32>
    %191 = arith.addf %189, %190 : vector<8x128xf32>
    %192 = math.tanh %191 : vector<8x128xf32>
    %193 = arith.mulf %187, %192 : vector<8x128xf32>
    %194 = arith.index_cast %c5_i32 : i32 to index
    %c0_77 = arith.constant 0 : index
    %c0_78 = arith.constant 0 : index
    %195 = vector.load %arg5[%194, %c0_77, %c0_78] : memref<16x8x128xf32, #tpu.memory_space<vmem>>, vector<1x8x128xf32>
    %196 = vector.shape_cast %195 : vector<1x8x128xf32> to vector<8x128xf32>
    %197 = vector.shape_cast %193 : vector<8x128xf32> to vector<1x8x128xf32>
    tpu.vector_store %arg5[%194, %c0_77, %c0_78], %197 {strides = array<i32>} : memref<16x8x128xf32, #tpu.memory_space<vmem>>, vector<1x8x128xf32>,
    %c6_i32 = arith.constant 6 : i32
    %cst_79 = arith.constant dense<0.000000e+00> : vector<8x512xf32>
    %198 = tpu.matmul %193, %9, %cst_79 {dimension_numbers = #tpu.dot_dimension_numbers<[1], [0], [0], [1], [0, 0, 1, 1], [], []>} : vector<8x128xf32>, vector<128x512xf32>, vector<8x512xf32> -> vector<8x512xf32>
    %199 = arith.index_cast %c6_i32 : i32 to index
    %c0_80 = arith.constant 0 : index
    %c0_81 = arith.constant 0 : index
    %200 = vector.load %arg6[%199, %c0_80, %c0_81] : memref<16x8x512xf32, #tpu.memory_space<vmem>>, vector<1x8x512xf32>
    %201 = vector.shape_cast %200 : vector<1x8x512xf32> to vector<8x512xf32>
    %202 = arith.addf %198, %201 : vector<8x512xf32>
    %203 = math.tanh %202 : vector<8x512xf32>
    %204 = vector.extract_strided_slice %203 {offsets = [0, 0], sizes = [8, 128], strides = [1, 1]} : vector<8x512xf32> to vector<8x128xf32>
    %cst_82 = arith.constant 5.000000e-01 : f32
    %205 = vector.broadcast %cst_82 : f32 to vector<8x128xf32>
    %206 = arith.mulf %204, %205 : vector<8x128xf32>
    %cst_83 = arith.constant 5.000000e-01 : f32
    %207 = vector.broadcast %cst_83 : f32 to vector<8x128xf32>
    %208 = arith.addf %206, %207 : vector<8x128xf32>
    %209 = vector.extract_strided_slice %203 {offsets = [0, 128], sizes = [8, 128], strides = [1, 1]} : vector<8x512xf32> to vector<8x128xf32>
    %cst_84 = arith.constant 5.000000e-01 : f32
    %210 = vector.broadcast %cst_84 : f32 to vector<8x128xf32>
    %211 = arith.mulf %209, %210 : vector<8x128xf32>
    %cst_85 = arith.constant 5.000000e-01 : f32
    %212 = vector.broadcast %cst_85 : f32 to vector<8x128xf32>
    %213 = arith.addf %211, %212 : vector<8x128xf32>
    %214 = vector.extract_strided_slice %203 {offsets = [0, 256], sizes = [8, 128], strides = [1, 1]} : vector<8x512xf32> to vector<8x128xf32>
    %cst_86 = arith.constant 5.000000e-01 : f32
    %215 = vector.broadcast %cst_86 : f32 to vector<8x128xf32>
    %216 = arith.mulf %214, %215 : vector<8x128xf32>
    %cst_87 = arith.constant 5.000000e-01 : f32
    %217 = vector.broadcast %cst_87 : f32 to vector<8x128xf32>
    %218 = arith.addf %216, %217 : vector<8x128xf32>
    %219 = vector.extract_strided_slice %203 {offsets = [0, 384], sizes = [8, 128], strides = [1, 1]} : vector<8x512xf32> to vector<8x128xf32>
    %220 = arith.mulf %213, %191 : vector<8x128xf32>
    %221 = arith.mulf %208, %219 : vector<8x128xf32>
    %222 = arith.addf %220, %221 : vector<8x128xf32>
    %223 = math.tanh %222 : vector<8x128xf32>
    %224 = arith.mulf %218, %223 : vector<8x128xf32>
    %225 = arith.index_cast %c6_i32 : i32 to index
    %c0_88 = arith.constant 0 : index
    %c0_89 = arith.constant 0 : index
    %226 = vector.load %arg5[%225, %c0_88, %c0_89] : memref<16x8x128xf32, #tpu.memory_space<vmem>>, vector<1x8x128xf32>
    %227 = vector.shape_cast %226 : vector<1x8x128xf32> to vector<8x128xf32>
    %228 = vector.shape_cast %224 : vector<8x128xf32> to vector<1x8x128xf32>
    tpu.vector_store %arg5[%225, %c0_88, %c0_89], %228 {strides = array<i32>} : memref<16x8x128xf32, #tpu.memory_space<vmem>>, vector<1x8x128xf32>,
    %c7_i32 = arith.constant 7 : i32
    %cst_90 = arith.constant dense<0.000000e+00> : vector<8x512xf32>
    %229 = tpu.matmul %224, %9, %cst_90 {dimension_numbers = #tpu.dot_dimension_numbers<[1], [0], [0], [1], [0, 0, 1, 1], [], []>} : vector<8x128xf32>, vector<128x512xf32>, vector<8x512xf32> -> vector<8x512xf32>
    %230 = arith.index_cast %c7_i32 : i32 to index
    %c0_91 = arith.constant 0 : index
    %c0_92 = arith.constant 0 : index
    %231 = vector.load %arg6[%230, %c0_91, %c0_92] : memref<16x8x512xf32, #tpu.memory_space<vmem>>, vector<1x8x512xf32>
    %232 = vector.shape_cast %231 : vector<1x8x512xf32> to vector<8x512xf32>
    %233 = arith.addf %229, %232 : vector<8x512xf32>
    %234 = math.tanh %233 : vector<8x512xf32>
    %235 = vector.extract_strided_slice %234 {offsets = [0, 0], sizes = [8, 128], strides = [1, 1]} : vector<8x512xf32> to vector<8x128xf32>
    %cst_93 = arith.constant 5.000000e-01 : f32
    %236 = vector.broadcast %cst_93 : f32 to vector<8x128xf32>
    %237 = arith.mulf %235, %236 : vector<8x128xf32>
    %cst_94 = arith.constant 5.000000e-01 : f32
    %238 = vector.broadcast %cst_94 : f32 to vector<8x128xf32>
    %239 = arith.addf %237, %238 : vector<8x128xf32>
    %240 = vector.extract_strided_slice %234 {offsets = [0, 128], sizes = [8, 128], strides = [1, 1]} : vector<8x512xf32> to vector<8x128xf32>
    %cst_95 = arith.constant 5.000000e-01 : f32
    %241 = vector.broadcast %cst_95 : f32 to vector<8x128xf32>
    %242 = arith.mulf %240, %241 : vector<8x128xf32>
    %cst_96 = arith.constant 5.000000e-01 : f32
    %243 = vector.broadcast %cst_96 : f32 to vector<8x128xf32>
    %244 = arith.addf %242, %243 : vector<8x128xf32>
    %245 = vector.extract_strided_slice %234 {offsets = [0, 256], sizes = [8, 128], strides = [1, 1]} : vector<8x512xf32> to vector<8x128xf32>
    %cst_97 = arith.constant 5.000000e-01 : f32
    %246 = vector.broadcast %cst_97 : f32 to vector<8x128xf32>
    %247 = arith.mulf %245, %246 : vector<8x128xf32>
    %cst_98 = arith.constant 5.000000e-01 : f32
    %248 = vector.broadcast %cst_98 : f32 to vector<8x128xf32>
    %249 = arith.addf %247, %248 : vector<8x128xf32>
    %250 = vector.extract_strided_slice %234 {offsets = [0, 384], sizes = [8, 128], strides = [1, 1]} : vector<8x512xf32> to vector<8x128xf32>
    %251 = arith.mulf %244, %222 : vector<8x128xf32>
    %252 = arith.mulf %239, %250 : vector<8x128xf32>
    %253 = arith.addf %251, %252 : vector<8x128xf32>
    %254 = math.tanh %253 : vector<8x128xf32>
    %255 = arith.mulf %249, %254 : vector<8x128xf32>
    %256 = arith.index_cast %c7_i32 : i32 to index
    %c0_99 = arith.constant 0 : index
    %c0_100 = arith.constant 0 : index
    %257 = vector.load %arg5[%256, %c0_99, %c0_100] : memref<16x8x128xf32, #tpu.memory_space<vmem>>, vector<1x8x128xf32>
    %258 = vector.shape_cast %257 : vector<1x8x128xf32> to vector<8x128xf32>
    %259 = vector.shape_cast %255 : vector<8x128xf32> to vector<1x8x128xf32>
    tpu.vector_store %arg5[%256, %c0_99, %c0_100], %259 {strides = array<i32>} : memref<16x8x128xf32, #tpu.memory_space<vmem>>, vector<1x8x128xf32>,
    %c8_i32 = arith.constant 8 : i32
    %cst_101 = arith.constant dense<0.000000e+00> : vector<8x512xf32>
    %260 = tpu.matmul %255, %9, %cst_101 {dimension_numbers = #tpu.dot_dimension_numbers<[1], [0], [0], [1], [0, 0, 1, 1], [], []>} : vector<8x128xf32>, vector<128x512xf32>, vector<8x512xf32> -> vector<8x512xf32>
    %261 = arith.index_cast %c8_i32 : i32 to index
    %c0_102 = arith.constant 0 : index
    %c0_103 = arith.constant 0 : index
    %262 = vector.load %arg6[%261, %c0_102, %c0_103] : memref<16x8x512xf32, #tpu.memory_space<vmem>>, vector<1x8x512xf32>
    %263 = vector.shape_cast %262 : vector<1x8x512xf32> to vector<8x512xf32>
    %264 = arith.addf %260, %263 : vector<8x512xf32>
    %265 = math.tanh %264 : vector<8x512xf32>
    %266 = vector.extract_strided_slice %265 {offsets = [0, 0], sizes = [8, 128], strides = [1, 1]} : vector<8x512xf32> to vector<8x128xf32>
    %cst_104 = arith.constant 5.000000e-01 : f32
    %267 = vector.broadcast %cst_104 : f32 to vector<8x128xf32>
    %268 = arith.mulf %266, %267 : vector<8x128xf32>
    %cst_105 = arith.constant 5.000000e-01 : f32
    %269 = vector.broadcast %cst_105 : f32 to vector<8x128xf32>
    %270 = arith.addf %268, %269 : vector<8x128xf32>
    %271 = vector.extract_strided_slice %265 {offsets = [0, 128], sizes = [8, 128], strides = [1, 1]} : vector<8x512xf32> to vector<8x128xf32>
    %cst_106 = arith.constant 5.000000e-01 : f32
    %272 = vector.broadcast %cst_106 : f32 to vector<8x128xf32>
    %273 = arith.mulf %271, %272 : vector<8x128xf32>
    %cst_107 = arith.constant 5.000000e-01 : f32
    %274 = vector.broadcast %cst_107 : f32 to vector<8x128xf32>
    %275 = arith.addf %273, %274 : vector<8x128xf32>
    %276 = vector.extract_strided_slice %265 {offsets = [0, 256], sizes = [8, 128], strides = [1, 1]} : vector<8x512xf32> to vector<8x128xf32>
    %cst_108 = arith.constant 5.000000e-01 : f32
    %277 = vector.broadcast %cst_108 : f32 to vector<8x128xf32>
    %278 = arith.mulf %276, %277 : vector<8x128xf32>
    %cst_109 = arith.constant 5.000000e-01 : f32
    %279 = vector.broadcast %cst_109 : f32 to vector<8x128xf32>
    %280 = arith.addf %278, %279 : vector<8x128xf32>
    %281 = vector.extract_strided_slice %265 {offsets = [0, 384], sizes = [8, 128], strides = [1, 1]} : vector<8x512xf32> to vector<8x128xf32>
    %282 = arith.mulf %275, %253 : vector<8x128xf32>
    %283 = arith.mulf %270, %281 : vector<8x128xf32>
    %284 = arith.addf %282, %283 : vector<8x128xf32>
    %285 = math.tanh %284 : vector<8x128xf32>
    %286 = arith.mulf %280, %285 : vector<8x128xf32>
    %287 = arith.index_cast %c8_i32 : i32 to index
    %c0_110 = arith.constant 0 : index
    %c0_111 = arith.constant 0 : index
    %288 = vector.load %arg5[%287, %c0_110, %c0_111] : memref<16x8x128xf32, #tpu.memory_space<vmem>>, vector<1x8x128xf32>
    %289 = vector.shape_cast %288 : vector<1x8x128xf32> to vector<8x128xf32>
    %290 = vector.shape_cast %286 : vector<8x128xf32> to vector<1x8x128xf32>
    tpu.vector_store %arg5[%287, %c0_110, %c0_111], %290 {strides = array<i32>} : memref<16x8x128xf32, #tpu.memory_space<vmem>>, vector<1x8x128xf32>,
    %c9_i32 = arith.constant 9 : i32
    %cst_112 = arith.constant dense<0.000000e+00> : vector<8x512xf32>
    %291 = tpu.matmul %286, %9, %cst_112 {dimension_numbers = #tpu.dot_dimension_numbers<[1], [0], [0], [1], [0, 0, 1, 1], [], []>} : vector<8x128xf32>, vector<128x512xf32>, vector<8x512xf32> -> vector<8x512xf32>
    %292 = arith.index_cast %c9_i32 : i32 to index
    %c0_113 = arith.constant 0 : index
    %c0_114 = arith.constant 0 : index
    %293 = vector.load %arg6[%292, %c0_113, %c0_114] : memref<16x8x512xf32, #tpu.memory_space<vmem>>, vector<1x8x512xf32>
    %294 = vector.shape_cast %293 : vector<1x8x512xf32> to vector<8x512xf32>
    %295 = arith.addf %291, %294 : vector<8x512xf32>
    %296 = math.tanh %295 : vector<8x512xf32>
    %297 = vector.extract_strided_slice %296 {offsets = [0, 0], sizes = [8, 128], strides = [1, 1]} : vector<8x512xf32> to vector<8x128xf32>
    %cst_115 = arith.constant 5.000000e-01 : f32
    %298 = vector.broadcast %cst_115 : f32 to vector<8x128xf32>
    %299 = arith.mulf %297, %298 : vector<8x128xf32>
    %cst_116 = arith.constant 5.000000e-01 : f32
    %300 = vector.broadcast %cst_116 : f32 to vector<8x128xf32>
    %301 = arith.addf %299, %300 : vector<8x128xf32>
    %302 = vector.extract_strided_slice %296 {offsets = [0, 128], sizes = [8, 128], strides = [1, 1]} : vector<8x512xf32> to vector<8x128xf32>
    %cst_117 = arith.constant 5.000000e-01 : f32
    %303 = vector.broadcast %cst_117 : f32 to vector<8x128xf32>
    %304 = arith.mulf %302, %303 : vector<8x128xf32>
    %cst_118 = arith.constant 5.000000e-01 : f32
    %305 = vector.broadcast %cst_118 : f32 to vector<8x128xf32>
    %306 = arith.addf %304, %305 : vector<8x128xf32>
    %307 = vector.extract_strided_slice %296 {offsets = [0, 256], sizes = [8, 128], strides = [1, 1]} : vector<8x512xf32> to vector<8x128xf32>
    %cst_119 = arith.constant 5.000000e-01 : f32
    %308 = vector.broadcast %cst_119 : f32 to vector<8x128xf32>
    %309 = arith.mulf %307, %308 : vector<8x128xf32>
    %cst_120 = arith.constant 5.000000e-01 : f32
    %310 = vector.broadcast %cst_120 : f32 to vector<8x128xf32>
    %311 = arith.addf %309, %310 : vector<8x128xf32>
    %312 = vector.extract_strided_slice %296 {offsets = [0, 384], sizes = [8, 128], strides = [1, 1]} : vector<8x512xf32> to vector<8x128xf32>
    %313 = arith.mulf %306, %284 : vector<8x128xf32>
    %314 = arith.mulf %301, %312 : vector<8x128xf32>
    %315 = arith.addf %313, %314 : vector<8x128xf32>
    %316 = math.tanh %315 : vector<8x128xf32>
    %317 = arith.mulf %311, %316 : vector<8x128xf32>
    %318 = arith.index_cast %c9_i32 : i32 to index
    %c0_121 = arith.constant 0 : index
    %c0_122 = arith.constant 0 : index
    %319 = vector.load %arg5[%318, %c0_121, %c0_122] : memref<16x8x128xf32, #tpu.memory_space<vmem>>, vector<1x8x128xf32>
    %320 = vector.shape_cast %319 : vector<1x8x128xf32> to vector<8x128xf32>
    %321 = vector.shape_cast %317 : vector<8x128xf32> to vector<1x8x128xf32>
    tpu.vector_store %arg5[%318, %c0_121, %c0_122], %321 {strides = array<i32>} : memref<16x8x128xf32, #tpu.memory_space<vmem>>, vector<1x8x128xf32>,
    %c10_i32 = arith.constant 10 : i32
    %cst_123 = arith.constant dense<0.000000e+00> : vector<8x512xf32>
    %322 = tpu.matmul %317, %9, %cst_123 {dimension_numbers = #tpu.dot_dimension_numbers<[1], [0], [0], [1], [0, 0, 1, 1], [], []>} : vector<8x128xf32>, vector<128x512xf32>, vector<8x512xf32> -> vector<8x512xf32>
    %323 = arith.index_cast %c10_i32 : i32 to index
    %c0_124 = arith.constant 0 : index
    %c0_125 = arith.constant 0 : index
    %324 = vector.load %arg6[%323, %c0_124, %c0_125] : memref<16x8x512xf32, #tpu.memory_space<vmem>>, vector<1x8x512xf32>
    %325 = vector.shape_cast %324 : vector<1x8x512xf32> to vector<8x512xf32>
    %326 = arith.addf %322, %325 : vector<8x512xf32>
    %327 = math.tanh %326 : vector<8x512xf32>
    %328 = vector.extract_strided_slice %327 {offsets = [0, 0], sizes = [8, 128], strides = [1, 1]} : vector<8x512xf32> to vector<8x128xf32>
    %cst_126 = arith.constant 5.000000e-01 : f32
    %329 = vector.broadcast %cst_126 : f32 to vector<8x128xf32>
    %330 = arith.mulf %328, %329 : vector<8x128xf32>
    %cst_127 = arith.constant 5.000000e-01 : f32
    %331 = vector.broadcast %cst_127 : f32 to vector<8x128xf32>
    %332 = arith.addf %330, %331 : vector<8x128xf32>
    %333 = vector.extract_strided_slice %327 {offsets = [0, 128], sizes = [8, 128], strides = [1, 1]} : vector<8x512xf32> to vector<8x128xf32>
    %cst_128 = arith.constant 5.000000e-01 : f32
    %334 = vector.broadcast %cst_128 : f32 to vector<8x128xf32>
    %335 = arith.mulf %333, %334 : vector<8x128xf32>
    %cst_129 = arith.constant 5.000000e-01 : f32
    %336 = vector.broadcast %cst_129 : f32 to vector<8x128xf32>
    %337 = arith.addf %335, %336 : vector<8x128xf32>
    %338 = vector.extract_strided_slice %327 {offsets = [0, 256], sizes = [8, 128], strides = [1, 1]} : vector<8x512xf32> to vector<8x128xf32>
    %cst_130 = arith.constant 5.000000e-01 : f32
    %339 = vector.broadcast %cst_130 : f32 to vector<8x128xf32>
    %340 = arith.mulf %338, %339 : vector<8x128xf32>
    %cst_131 = arith.constant 5.000000e-01 : f32
    %341 = vector.broadcast %cst_131 : f32 to vector<8x128xf32>
    %342 = arith.addf %340, %341 : vector<8x128xf32>
    %343 = vector.extract_strided_slice %327 {offsets = [0, 384], sizes = [8, 128], strides = [1, 1]} : vector<8x512xf32> to vector<8x128xf32>
    %344 = arith.mulf %337, %315 : vector<8x128xf32>
    %345 = arith.mulf %332, %343 : vector<8x128xf32>
    %346 = arith.addf %344, %345 : vector<8x128xf32>
    %347 = math.tanh %346 : vector<8x128xf32>
    %348 = arith.mulf %342, %347 : vector<8x128xf32>
    %349 = arith.index_cast %c10_i32 : i32 to index
    %c0_132 = arith.constant 0 : index
    %c0_133 = arith.constant 0 : index
    %350 = vector.load %arg5[%349, %c0_132, %c0_133] : memref<16x8x128xf32, #tpu.memory_space<vmem>>, vector<1x8x128xf32>
    %351 = vector.shape_cast %350 : vector<1x8x128xf32> to vector<8x128xf32>
    %352 = vector.shape_cast %348 : vector<8x128xf32> to vector<1x8x128xf32>
    tpu.vector_store %arg5[%349, %c0_132, %c0_133], %352 {strides = array<i32>} : memref<16x8x128xf32, #tpu.memory_space<vmem>>, vector<1x8x128xf32>,
    %c11_i32 = arith.constant 11 : i32
    %cst_134 = arith.constant dense<0.000000e+00> : vector<8x512xf32>
    %353 = tpu.matmul %348, %9, %cst_134 {dimension_numbers = #tpu.dot_dimension_numbers<[1], [0], [0], [1], [0, 0, 1, 1], [], []>} : vector<8x128xf32>, vector<128x512xf32>, vector<8x512xf32> -> vector<8x512xf32>
    %354 = arith.index_cast %c11_i32 : i32 to index
    %c0_135 = arith.constant 0 : index
    %c0_136 = arith.constant 0 : index
    %355 = vector.load %arg6[%354, %c0_135, %c0_136] : memref<16x8x512xf32, #tpu.memory_space<vmem>>, vector<1x8x512xf32>
    %356 = vector.shape_cast %355 : vector<1x8x512xf32> to vector<8x512xf32>
    %357 = arith.addf %353, %356 : vector<8x512xf32>
    %358 = math.tanh %357 : vector<8x512xf32>
    %359 = vector.extract_strided_slice %358 {offsets = [0, 0], sizes = [8, 128], strides = [1, 1]} : vector<8x512xf32> to vector<8x128xf32>
    %cst_137 = arith.constant 5.000000e-01 : f32
    %360 = vector.broadcast %cst_137 : f32 to vector<8x128xf32>
    %361 = arith.mulf %359, %360 : vector<8x128xf32>
    %cst_138 = arith.constant 5.000000e-01 : f32
    %362 = vector.broadcast %cst_138 : f32 to vector<8x128xf32>
    %363 = arith.addf %361, %362 : vector<8x128xf32>
    %364 = vector.extract_strided_slice %358 {offsets = [0, 128], sizes = [8, 128], strides = [1, 1]} : vector<8x512xf32> to vector<8x128xf32>
    %cst_139 = arith.constant 5.000000e-01 : f32
    %365 = vector.broadcast %cst_139 : f32 to vector<8x128xf32>
    %366 = arith.mulf %364, %365 : vector<8x128xf32>
    %cst_140 = arith.constant 5.000000e-01 : f32
    %367 = vector.broadcast %cst_140 : f32 to vector<8x128xf32>
    %368 = arith.addf %366, %367 : vector<8x128xf32>
    %369 = vector.extract_strided_slice %358 {offsets = [0, 256], sizes = [8, 128], strides = [1, 1]} : vector<8x512xf32> to vector<8x128xf32>
    %cst_141 = arith.constant 5.000000e-01 : f32
    %370 = vector.broadcast %cst_141 : f32 to vector<8x128xf32>
    %371 = arith.mulf %369, %370 : vector<8x128xf32>
    %cst_142 = arith.constant 5.000000e-01 : f32
    %372 = vector.broadcast %cst_142 : f32 to vector<8x128xf32>
    %373 = arith.addf %371, %372 : vector<8x128xf32>
    %374 = vector.extract_strided_slice %358 {offsets = [0, 384], sizes = [8, 128], strides = [1, 1]} : vector<8x512xf32> to vector<8x128xf32>
    %375 = arith.mulf %368, %346 : vector<8x128xf32>
    %376 = arith.mulf %363, %374 : vector<8x128xf32>
    %377 = arith.addf %375, %376 : vector<8x128xf32>
    %378 = math.tanh %377 : vector<8x128xf32>
    %379 = arith.mulf %373, %378 : vector<8x128xf32>
    %380 = arith.index_cast %c11_i32 : i32 to index
    %c0_143 = arith.constant 0 : index
    %c0_144 = arith.constant 0 : index
    %381 = vector.load %arg5[%380, %c0_143, %c0_144] : memref<16x8x128xf32, #tpu.memory_space<vmem>>, vector<1x8x128xf32>
    %382 = vector.shape_cast %381 : vector<1x8x128xf32> to vector<8x128xf32>
    %383 = vector.shape_cast %379 : vector<8x128xf32> to vector<1x8x128xf32>
    tpu.vector_store %arg5[%380, %c0_143, %c0_144], %383 {strides = array<i32>} : memref<16x8x128xf32, #tpu.memory_space<vmem>>, vector<1x8x128xf32>,
    %c12_i32 = arith.constant 12 : i32
    %cst_145 = arith.constant dense<0.000000e+00> : vector<8x512xf32>
    %384 = tpu.matmul %379, %9, %cst_145 {dimension_numbers = #tpu.dot_dimension_numbers<[1], [0], [0], [1], [0, 0, 1, 1], [], []>} : vector<8x128xf32>, vector<128x512xf32>, vector<8x512xf32> -> vector<8x512xf32>
    %385 = arith.index_cast %c12_i32 : i32 to index
    %c0_146 = arith.constant 0 : index
    %c0_147 = arith.constant 0 : index
    %386 = vector.load %arg6[%385, %c0_146, %c0_147] : memref<16x8x512xf32, #tpu.memory_space<vmem>>, vector<1x8x512xf32>
    %387 = vector.shape_cast %386 : vector<1x8x512xf32> to vector<8x512xf32>
    %388 = arith.addf %384, %387 : vector<8x512xf32>
    %389 = math.tanh %388 : vector<8x512xf32>
    %390 = vector.extract_strided_slice %389 {offsets = [0, 0], sizes = [8, 128], strides = [1, 1]} : vector<8x512xf32> to vector<8x128xf32>
    %cst_148 = arith.constant 5.000000e-01 : f32
    %391 = vector.broadcast %cst_148 : f32 to vector<8x128xf32>
    %392 = arith.mulf %390, %391 : vector<8x128xf32>
    %cst_149 = arith.constant 5.000000e-01 : f32
    %393 = vector.broadcast %cst_149 : f32 to vector<8x128xf32>
    %394 = arith.addf %392, %393 : vector<8x128xf32>
    %395 = vector.extract_strided_slice %389 {offsets = [0, 128], sizes = [8, 128], strides = [1, 1]} : vector<8x512xf32> to vector<8x128xf32>
    %cst_150 = arith.constant 5.000000e-01 : f32
    %396 = vector.broadcast %cst_150 : f32 to vector<8x128xf32>
    %397 = arith.mulf %395, %396 : vector<8x128xf32>
    %cst_151 = arith.constant 5.000000e-01 : f32
    %398 = vector.broadcast %cst_151 : f32 to vector<8x128xf32>
    %399 = arith.addf %397, %398 : vector<8x128xf32>
    %400 = vector.extract_strided_slice %389 {offsets = [0, 256], sizes = [8, 128], strides = [1, 1]} : vector<8x512xf32> to vector<8x128xf32>
    %cst_152 = arith.constant 5.000000e-01 : f32
    %401 = vector.broadcast %cst_152 : f32 to vector<8x128xf32>
    %402 = arith.mulf %400, %401 : vector<8x128xf32>
    %cst_153 = arith.constant 5.000000e-01 : f32
    %403 = vector.broadcast %cst_153 : f32 to vector<8x128xf32>
    %404 = arith.addf %402, %403 : vector<8x128xf32>
    %405 = vector.extract_strided_slice %389 {offsets = [0, 384], sizes = [8, 128], strides = [1, 1]} : vector<8x512xf32> to vector<8x128xf32>
    %406 = arith.mulf %399, %377 : vector<8x128xf32>
    %407 = arith.mulf %394, %405 : vector<8x128xf32>
    %408 = arith.addf %406, %407 : vector<8x128xf32>
    %409 = math.tanh %408 : vector<8x128xf32>
    %410 = arith.mulf %404, %409 : vector<8x128xf32>
    %411 = arith.index_cast %c12_i32 : i32 to index
    %c0_154 = arith.constant 0 : index
    %c0_155 = arith.constant 0 : index
    %412 = vector.load %arg5[%411, %c0_154, %c0_155] : memref<16x8x128xf32, #tpu.memory_space<vmem>>, vector<1x8x128xf32>
    %413 = vector.shape_cast %412 : vector<1x8x128xf32> to vector<8x128xf32>
    %414 = vector.shape_cast %410 : vector<8x128xf32> to vector<1x8x128xf32>
    tpu.vector_store %arg5[%411, %c0_154, %c0_155], %414 {strides = array<i32>} : memref<16x8x128xf32, #tpu.memory_space<vmem>>, vector<1x8x128xf32>,
    %c13_i32 = arith.constant 13 : i32
    %cst_156 = arith.constant dense<0.000000e+00> : vector<8x512xf32>
    %415 = tpu.matmul %410, %9, %cst_156 {dimension_numbers = #tpu.dot_dimension_numbers<[1], [0], [0], [1], [0, 0, 1, 1], [], []>} : vector<8x128xf32>, vector<128x512xf32>, vector<8x512xf32> -> vector<8x512xf32>
    %416 = arith.index_cast %c13_i32 : i32 to index
    %c0_157 = arith.constant 0 : index
    %c0_158 = arith.constant 0 : index
    %417 = vector.load %arg6[%416, %c0_157, %c0_158] : memref<16x8x512xf32, #tpu.memory_space<vmem>>, vector<1x8x512xf32>
    %418 = vector.shape_cast %417 : vector<1x8x512xf32> to vector<8x512xf32>
    %419 = arith.addf %415, %418 : vector<8x512xf32>
    %420 = math.tanh %419 : vector<8x512xf32>
    %421 = vector.extract_strided_slice %420 {offsets = [0, 0], sizes = [8, 128], strides = [1, 1]} : vector<8x512xf32> to vector<8x128xf32>
    %cst_159 = arith.constant 5.000000e-01 : f32
    %422 = vector.broadcast %cst_159 : f32 to vector<8x128xf32>
    %423 = arith.mulf %421, %422 : vector<8x128xf32>
    %cst_160 = arith.constant 5.000000e-01 : f32
    %424 = vector.broadcast %cst_160 : f32 to vector<8x128xf32>
    %425 = arith.addf %423, %424 : vector<8x128xf32>
    %426 = vector.extract_strided_slice %420 {offsets = [0, 128], sizes = [8, 128], strides = [1, 1]} : vector<8x512xf32> to vector<8x128xf32>
    %cst_161 = arith.constant 5.000000e-01 : f32
    %427 = vector.broadcast %cst_161 : f32 to vector<8x128xf32>
    %428 = arith.mulf %426, %427 : vector<8x128xf32>
    %cst_162 = arith.constant 5.000000e-01 : f32
    %429 = vector.broadcast %cst_162 : f32 to vector<8x128xf32>
    %430 = arith.addf %428, %429 : vector<8x128xf32>
    %431 = vector.extract_strided_slice %420 {offsets = [0, 256], sizes = [8, 128], strides = [1, 1]} : vector<8x512xf32> to vector<8x128xf32>
    %cst_163 = arith.constant 5.000000e-01 : f32
    %432 = vector.broadcast %cst_163 : f32 to vector<8x128xf32>
    %433 = arith.mulf %431, %432 : vector<8x128xf32>
    %cst_164 = arith.constant 5.000000e-01 : f32
    %434 = vector.broadcast %cst_164 : f32 to vector<8x128xf32>
    %435 = arith.addf %433, %434 : vector<8x128xf32>
    %436 = vector.extract_strided_slice %420 {offsets = [0, 384], sizes = [8, 128], strides = [1, 1]} : vector<8x512xf32> to vector<8x128xf32>
    %437 = arith.mulf %430, %408 : vector<8x128xf32>
    %438 = arith.mulf %425, %436 : vector<8x128xf32>
    %439 = arith.addf %437, %438 : vector<8x128xf32>
    %440 = math.tanh %439 : vector<8x128xf32>
    %441 = arith.mulf %435, %440 : vector<8x128xf32>
    %442 = arith.index_cast %c13_i32 : i32 to index
    %c0_165 = arith.constant 0 : index
    %c0_166 = arith.constant 0 : index
    %443 = vector.load %arg5[%442, %c0_165, %c0_166] : memref<16x8x128xf32, #tpu.memory_space<vmem>>, vector<1x8x128xf32>
    %444 = vector.shape_cast %443 : vector<1x8x128xf32> to vector<8x128xf32>
    %445 = vector.shape_cast %441 : vector<8x128xf32> to vector<1x8x128xf32>
    tpu.vector_store %arg5[%442, %c0_165, %c0_166], %445 {strides = array<i32>} : memref<16x8x128xf32, #tpu.memory_space<vmem>>, vector<1x8x128xf32>,
    %c14_i32 = arith.constant 14 : i32
    %cst_167 = arith.constant dense<0.000000e+00> : vector<8x512xf32>
    %446 = tpu.matmul %441, %9, %cst_167 {dimension_numbers = #tpu.dot_dimension_numbers<[1], [0], [0], [1], [0, 0, 1, 1], [], []>} : vector<8x128xf32>, vector<128x512xf32>, vector<8x512xf32> -> vector<8x512xf32>
    %447 = arith.index_cast %c14_i32 : i32 to index
    %c0_168 = arith.constant 0 : index
    %c0_169 = arith.constant 0 : index
    %448 = vector.load %arg6[%447, %c0_168, %c0_169] : memref<16x8x512xf32, #tpu.memory_space<vmem>>, vector<1x8x512xf32>
    %449 = vector.shape_cast %448 : vector<1x8x512xf32> to vector<8x512xf32>
    %450 = arith.addf %446, %449 : vector<8x512xf32>
    %451 = math.tanh %450 : vector<8x512xf32>
    %452 = vector.extract_strided_slice %451 {offsets = [0, 0], sizes = [8, 128], strides = [1, 1]} : vector<8x512xf32> to vector<8x128xf32>
    %cst_170 = arith.constant 5.000000e-01 : f32
    %453 = vector.broadcast %cst_170 : f32 to vector<8x128xf32>
    %454 = arith.mulf %452, %453 : vector<8x128xf32>
    %cst_171 = arith.constant 5.000000e-01 : f32
    %455 = vector.broadcast %cst_171 : f32 to vector<8x128xf32>
    %456 = arith.addf %454, %455 : vector<8x128xf32>
    %457 = vector.extract_strided_slice %451 {offsets = [0, 128], sizes = [8, 128], strides = [1, 1]} : vector<8x512xf32> to vector<8x128xf32>
    %cst_172 = arith.constant 5.000000e-01 : f32
    %458 = vector.broadcast %cst_172 : f32 to vector<8x128xf32>
    %459 = arith.mulf %457, %458 : vector<8x128xf32>
    %cst_173 = arith.constant 5.000000e-01 : f32
    %460 = vector.broadcast %cst_173 : f32 to vector<8x128xf32>
    %461 = arith.addf %459, %460 : vector<8x128xf32>
    %462 = vector.extract_strided_slice %451 {offsets = [0, 256], sizes = [8, 128], strides = [1, 1]} : vector<8x512xf32> to vector<8x128xf32>
    %cst_174 = arith.constant 5.000000e-01 : f32
    %463 = vector.broadcast %cst_174 : f32 to vector<8x128xf32>
    %464 = arith.mulf %462, %463 : vector<8x128xf32>
    %cst_175 = arith.constant 5.000000e-01 : f32
    %465 = vector.broadcast %cst_175 : f32 to vector<8x128xf32>
    %466 = arith.addf %464, %465 : vector<8x128xf32>
    %467 = vector.extract_strided_slice %451 {offsets = [0, 384], sizes = [8, 128], strides = [1, 1]} : vector<8x512xf32> to vector<8x128xf32>
    %468 = arith.mulf %461, %439 : vector<8x128xf32>
    %469 = arith.mulf %456, %467 : vector<8x128xf32>
    %470 = arith.addf %468, %469 : vector<8x128xf32>
    %471 = math.tanh %470 : vector<8x128xf32>
    %472 = arith.mulf %466, %471 : vector<8x128xf32>
    %473 = arith.index_cast %c14_i32 : i32 to index
    %c0_176 = arith.constant 0 : index
    %c0_177 = arith.constant 0 : index
    %474 = vector.load %arg5[%473, %c0_176, %c0_177] : memref<16x8x128xf32, #tpu.memory_space<vmem>>, vector<1x8x128xf32>
    %475 = vector.shape_cast %474 : vector<1x8x128xf32> to vector<8x128xf32>
    %476 = vector.shape_cast %472 : vector<8x128xf32> to vector<1x8x128xf32>
    tpu.vector_store %arg5[%473, %c0_176, %c0_177], %476 {strides = array<i32>} : memref<16x8x128xf32, #tpu.memory_space<vmem>>, vector<1x8x128xf32>,
    %c15_i32 = arith.constant 15 : i32
    %cst_178 = arith.constant dense<0.000000e+00> : vector<8x512xf32>
    %477 = tpu.matmul %472, %9, %cst_178 {dimension_numbers = #tpu.dot_dimension_numbers<[1], [0], [0], [1], [0, 0, 1, 1], [], []>} : vector<8x128xf32>, vector<128x512xf32>, vector<8x512xf32> -> vector<8x512xf32>
    %478 = arith.index_cast %c15_i32 : i32 to index
    %c0_179 = arith.constant 0 : index
    %c0_180 = arith.constant 0 : index
    %479 = vector.load %arg6[%478, %c0_179, %c0_180] : memref<16x8x512xf32, #tpu.memory_space<vmem>>, vector<1x8x512xf32>
    %480 = vector.shape_cast %479 : vector<1x8x512xf32> to vector<8x512xf32>
    %481 = arith.addf %477, %480 : vector<8x512xf32>
    %482 = math.tanh %481 : vector<8x512xf32>
    %483 = vector.extract_strided_slice %482 {offsets = [0, 0], sizes = [8, 128], strides = [1, 1]} : vector<8x512xf32> to vector<8x128xf32>
    %cst_181 = arith.constant 5.000000e-01 : f32
    %484 = vector.broadcast %cst_181 : f32 to vector<8x128xf32>
    %485 = arith.mulf %483, %484 : vector<8x128xf32>
    %cst_182 = arith.constant 5.000000e-01 : f32
    %486 = vector.broadcast %cst_182 : f32 to vector<8x128xf32>
    %487 = arith.addf %485, %486 : vector<8x128xf32>
    %488 = vector.extract_strided_slice %482 {offsets = [0, 128], sizes = [8, 128], strides = [1, 1]} : vector<8x512xf32> to vector<8x128xf32>
    %cst_183 = arith.constant 5.000000e-01 : f32
    %489 = vector.broadcast %cst_183 : f32 to vector<8x128xf32>
    %490 = arith.mulf %488, %489 : vector<8x128xf32>
    %cst_184 = arith.constant 5.000000e-01 : f32
    %491 = vector.broadcast %cst_184 : f32 to vector<8x128xf32>
    %492 = arith.addf %490, %491 : vector<8x128xf32>
    %493 = vector.extract_strided_slice %482 {offsets = [0, 256], sizes = [8, 128], strides = [1, 1]} : vector<8x512xf32> to vector<8x128xf32>
    %cst_185 = arith.constant 5.000000e-01 : f32
    %494 = vector.broadcast %cst_185 : f32 to vector<8x128xf32>
    %495 = arith.mulf %493, %494 : vector<8x128xf32>
    %cst_186 = arith.constant 5.000000e-01 : f32
    %496 = vector.broadcast %cst_186 : f32 to vector<8x128xf32>
    %497 = arith.addf %495, %496 : vector<8x128xf32>
    %498 = vector.extract_strided_slice %482 {offsets = [0, 384], sizes = [8, 128], strides = [1, 1]} : vector<8x512xf32> to vector<8x128xf32>
    %499 = arith.mulf %492, %470 : vector<8x128xf32>
    %500 = arith.mulf %487, %498 : vector<8x128xf32>
    %501 = arith.addf %499, %500 : vector<8x128xf32>
    %502 = math.tanh %501 : vector<8x128xf32>
    %503 = arith.mulf %497, %502 : vector<8x128xf32>
    %504 = arith.index_cast %c15_i32 : i32 to index
    %c0_187 = arith.constant 0 : index
    %c0_188 = arith.constant 0 : index
    %505 = vector.load %arg5[%504, %c0_187, %c0_188] : memref<16x8x128xf32, #tpu.memory_space<vmem>>, vector<1x8x128xf32>
    %506 = vector.shape_cast %505 : vector<1x8x128xf32> to vector<8x128xf32>
    %507 = vector.shape_cast %503 : vector<8x128xf32> to vector<1x8x128xf32>
    tpu.vector_store %arg5[%504, %c0_187, %c0_188], %507 {strides = array<i32>} : memref<16x8x128xf32, #tpu.memory_space<vmem>>, vector<1x8x128xf32>,
    %c16_i32 = arith.constant 16 : i32
    return
  }
  func.func @transform_0(%arg0: i32) -> (i32, i32, i32) {
    %c0_i32 = arith.constant 0 : i32
    %c0_i32_0 = arith.constant 0 : i32
    %c0_i32_1 = arith.constant 0 : i32
    return %c0_i32, %arg0, %c0_i32_0 : i32, i32, i32
  }
  func.func @transform_1(%arg0: i32) -> (i32, i32) {
    %c0_i32 = arith.constant 0 : i32
    %c0_i32_0 = arith.constant 0 : i32
    %c0_i32_1 = arith.constant 0 : i32
    return %c0_i32, %c0_i32_0 : i32, i32
  }
  func.func @transform_2(%arg0: i32) -> (i32, i32) {
    %c0_i32 = arith.constant 0 : i32
    %c0_i32_0 = arith.constant 0 : i32
    %c0_i32_1 = arith.constant 0 : i32
    return %c0_i32, %c0_i32_0 : i32, i32
  }
  func.func @transform_3(%arg0: i32) -> (i32, i32) {
    %c0_i32 = arith.constant 0 : i32
    %c0_i32_0 = arith.constant 0 : i32
    %c0_i32_1 = arith.constant 0 : i32
    return %c0_i32, %c0_i32_0 : i32, i32
  }
  func.func @transform_4(%arg0: i32) -> (i32, i32, i32) {
    %c0_i32 = arith.constant 0 : i32
    %c0_i32_0 = arith.constant 0 : i32
    %c0_i32_1 = arith.constant 0 : i32
    return %c0_i32, %arg0, %c0_i32_0 : i32, i32, i32
  }
}

</mosaic_0001>

<bundles_post_ra>
// kernel: tpu_custom_call.1
= control target key start
LH: loop header
LB: loop body
LE: loop exit
PB: predicated region body
PF: predicated region fallthrough
CT: control target
= control target key end

     0   :  { %9 = vsyncpa [#allocation4], 0  ;;  %s5610_s0 = inlined_call_operand.hbm [shape: f32[16,8,32], index: 0, kind: input, shape index: {}]   ;;  %s5611_s1 = inlined_call_operand.hbm [shape: f32[32,512], index: 1, kind: input, shape index: {}]   ;;  %s5612_s2 = inlined_call_operand.hbm [shape: f32[128,512], index: 2, kind: input, shape index: {}]   ;;  %s5613_s3 = inlined_call_operand.vmem [shape: f32[1,512], index: 3, kind: input, shape index: {}]   ;;  %s5614_s4 = inlined_call_operand.hbm [shape: f32[16,8,128], index: 4, kind: output, shape index: {}]  }
   0x1   :  { %10 = vsyncpa [#allocation7], 0 }
   0x2   :  { %11 = vsyncpa [#allocation5], 0  ;;  %s4715_s15 = smov [#allocation6]   ;;  %s4621_s19 = scalar_lea.hbm %s5611_s1, 2048 }
   0x3   :  { %s29_s16 = sshll.u32 %s4715_s15, 4  ;;  %p4622_p0 = scmp.ne.s32.totalorder %s5611_s1, %s4621_s19  ;;  %s30_s16 = int_to_ptr.vmem [resolvable:$true] %s29_s16 }
   0x4   :  { %p4625_p1 = scmp.lt.u32.totalorder %s4621_s19, %s5611_s1 }
   0x6   :  { %p4627_p2 = pnand %p4625_p1, %p4622_p0 }
   0x8   :  { %4630 = shalt.err (!%p4627_p2)
}
   0x9   :  { %s4631_s24 = scalar_lea.vmem %s30_s16, 2048  ;;  %p4636_p4 = scmp.lt.s32.totalorder %s30_s16, %s30_s16 }
   0xa   :  { %p4632_p3 = scmp.ne.s32.totalorder %s30_s16, %s4631_s24  ;;  %p4637_p5 = scmp.lt.s32.totalorder %s4631_s24, %s4631_s24 }
   0xc   :  { %p4638_p6 = por %p4637_p5, %p4636_p4 }
   0xe   :  { %p4639_p7 = pnand %p4638_p6, %p4632_p3 }
  0x10   :  { %4642 = shalt.err (!%p4639_p7)
}
  0x11   :  { %s4716_s25 = smov 512   ;;  %s4717_s26 = smov 32  }
  0x12   :  { %35 = dma.hbm_to_vmem [thread:$0]  %s5611_s1, 2048, %s30_s16, [#allocation7], %s4716_s25, %s4716_s25, %s4717_s26  }
  0x13   :  { %s4718_s29 = smov [#allocation3]   ;;  %s4643_s7 = scalar_lea.hbm %s5610_s0, 2048 }
  0x14   :  { %s17_s30 = sshll.u32 %s4718_s29, 4  ;;  %p4644_p8 = scmp.ne.s32.totalorder %s5610_s0, %s4643_s7  ;;  %s18_s30 = int_to_ptr.vmem [resolvable:$true] %s17_s30 }
  0x15   :  { %p4647_p9 = scmp.lt.u32.totalorder %s4643_s7, %s5610_s0 }
  0x17   :  { %p4649_p10 = pnand %p4647_p9, %p4644_p8 }
  0x19   :  { %4652 = shalt.err (!%p4649_p10)
}
  0x1a   :  { %s4653_s12 = scalar_lea.vmem %s18_s30, 2048  ;;  %p4658_p12 = scmp.lt.s32.totalorder %s18_s30, %s18_s30 }
  0x1b   :  { %p4654_p11 = scmp.ne.s32.totalorder %s18_s30, %s4653_s12  ;;  %p4659_p13 = scmp.lt.s32.totalorder %s4653_s12, %s4653_s12 }
  0x1d   :  { %p4660_p0 = por %p4659_p13, %p4658_p12 }
  0x1f   :  { %p4661_p1 = pnand %p4660_p0, %p4654_p11 }
  0x21   :  { %4664 = shalt.err (!%p4661_p1)
}
  0x22   :  { %s4719_s1 = smov 128   ;;  %s4720_s13 = smov 8  }
  0x23   :  { %23 = dma.hbm_to_vmem [thread:$0]  %s5610_s0, 2048, %s18_s30, [#allocation4], %s4719_s1, %s4719_s1, %s4720_s13  }
  0x24   :  { %s4721_s16 = smov [#allocation8]   ;;  %s4665_s20 = scalar_lea.hbm %s5612_s2, 8192 }
  0x25   :  { %s41_s17 = sshll.u32 %s4721_s16, 4  ;;  %p4666_p2 = scmp.ne.s32.totalorder %s5612_s2, %s4665_s20  ;;  %s42_s17 = int_to_ptr.vmem [resolvable:$true] %s41_s17 }
  0x26   :  { %p4669_p3 = scmp.lt.u32.totalorder %s4665_s20, %s5612_s2 }
  0x28   :  { %p4671_p4 = pnand %p4669_p3, %p4666_p2 }
  0x2a   :  { %4674 = shalt.err (!%p4671_p4)
}
  0x2b   :  { %s4675_s27 = scalar_lea.vmem %s42_s17, 8192  ;;  %p4680_p6 = scmp.lt.s32.totalorder %s42_s17, %s42_s17 }
  0x2c   :  { %p4676_p5 = scmp.ne.s32.totalorder %s42_s17, %s4675_s27  ;;  %p4681_p7 = scmp.lt.s32.totalorder %s4675_s27, %s4675_s27 }
  0x2e   :  { %p4682_p8 = por %p4681_p7, %p4680_p6 }
  0x30   :  { %p4683_p9 = pnand %p4682_p8, %p4676_p5 }
  0x32   :  { %4686 = shalt.err (!%p4683_p9)
}
  0x33   :  { %47 = dma.hbm_to_vmem [thread:$0]  %s5612_s2, 8192, %s42_s17, [#allocation7], %s4716_s25, %s4716_s25, %s4717_s26  }
  0x34   :  { %4709 = dma.done.wait [#allocation4], 2048  }
  0x35   :  { %4710 = vsyncadd [#allocation4], 4294965248 }
  0x36   :  { %4711 = dma.done.wait [#allocation7], 10240  }
  0x37   :  { %4712 = vsyncadd [#allocation7], 4294957056  ;;  %v4722_v0 = vmov 0.0   ;;  %v76_v1 = vld [vmem:[#allocation6 + $0x8] sm:$0xff]  ;;  %v78_v3 = vld [vmem:[#allocation6 + $0x18] sm:$0xff]  ;;  %vm113_vm0 = vcmask 261120  }
  0x38   :  { %226 = vmatprep.mubr.f32.mxu0 %v4722_v0  ;;  %387 = vmatprep.mubr.f32.mxu1 %v4722_v0  ;;  %v80_v2 = vld [vmem:[#allocation6 + $0x28] sm:$0xff]  ;;  %v82_v5 = vld [vmem:[#allocation6 + $0x38] sm:$0xff]  ;;  %v75_v6 = vld [vmem:[#allocation6] sm:$0xff] }
  0x39   :  { %v3284_v4 = vpack.c.bf16 %v80_v2, %v76_v1  ;;  %v79_v7 = vld [vmem:[#allocation6 + $0x20] sm:$0xff]  ;;  %v3292_v8 = vpack.c.bf16 %v82_v5, %v78_v3  ;;  %v77_v10 = vld [vmem:[#allocation6 + $0x10] sm:$0xff]  ;;  %v84_v12 = vld [vmem:[#allocation6 + $0x48] sm:$0xff] }
  0x3a   :  { %v3286_v9 = vpack.c.bf16 %v79_v7, %v75_v6  ;;  %v81_v11 = vld [vmem:[#allocation6 + $0x30] sm:$0xff]  ;;  %v88_v14 = vld [vmem:[#allocation6 + $0x68] sm:$0xff]  ;;  %v86_v15 = vld [vmem:[#allocation6 + $0x58] sm:$0xff] }
  0x3b   :  { %3285 = vmatprep.subr.bf16.mxu0 %v3284_v4  ;;  %v3294_v13 = vpack.c.bf16 %v81_v11, %v77_v10  ;;  %v90_v16 = vld [vmem:[#allocation6 + $0x78] sm:$0xff]  ;;  %3293 = vmatprep.subr.bf16.mxu1 %v3292_v8  ;;  %v3288_v17 = vpack.c.bf16 %v88_v14, %v84_v12  ;;  %v83_v19 = vld [vmem:[#allocation6 + $0x40] sm:$0xff]  ;;  %v85_v21 = vld [vmem:[#allocation6 + $0x50] sm:$0xff] }
  0x3c   :  { %3287 = vmatpush1.bf16.msra.mxu0 %v3286_v9  ;;  %v3296_v18 = vpack.c.bf16 %v90_v16, %v86_v15  ;;  %v87_v20 = vld [vmem:[#allocation6 + $0x60] sm:$0xff]  ;;  %v89_v23 = vld [vmem:[#allocation6 + $0x70] sm:$0xff]  ;;  %v549_v24 = vld [vmem:[#allocation8 + $0x8] sm:$0xff] }
  0x3d   :  { %3295 = vmatpush1.bf16.msra.mxu1 %v3294_v13  ;;  %v3290_v22 = vpack.c.bf16 %v87_v20, %v83_v19  ;;  %3289 = vmatprep.subr.bf16.mxu0 %v3288_v17  ;;  %v3298_v25 = vpack.c.bf16 %v89_v23, %v85_v21  ;;  %v553_v26 = vld [vmem:[#allocation8 + $0x28] sm:$0xff]  ;;  %v548_v27 = vld [vmem:[#allocation8] sm:$0xff]  ;;  %v551_v30 = vld [vmem:[#allocation8 + $0x18] sm:$0xff] }
  0x3e   :  { %3297 = vmatprep.subr.bf16.mxu1 %v3296_v18  ;;  %v552_v28 = vld [vmem:[#allocation8 + $0x20] sm:$0xff]  ;;  %v4796_v29 = vpack.c.bf16 %v553_v26, %v549_v24  ;;  %v555_v31 = vld [vmem:[#allocation8 + $0x38] sm:$0xff]  ;;  %v550_v35 = vld [vmem:[#allocation8 + $0x10] sm:$0xff] }
  0x3f   :  { %v59_v32 = vld [vmem:[#allocation3] sm:$0xff]  ;;  %v4798_v33 = vpack.c.bf16 %v552_v28, %v548_v27  ;;  %v4800_v34 = vpack.c.bf16 %v555_v31, %v551_v30  ;;  %v554_v36 = vld [vmem:[#allocation8 + $0x30] sm:$0xff]  ;;  %v557_v37 = vld [vmem:[#allocation8 + $0x48] sm:$0xff] }
  0x40   :  { %3291 = vmatpush1.bf16.msra.mxu0 %v3290_v22  ;;  %v561_v38 = vld [vmem:[#allocation8 + $0x68] sm:$0xff]  ;;  %v4804_v39 = vpack.c.bf16 %v554_v36, %v550_v35  ;;  %v556_v41 = vld [vmem:[#allocation8 + $0x40] sm:$0xff]  ;;  %v559_v43 = vld [vmem:[#allocation8 + $0x58] sm:$0xff] }
  0x41   :  { %3299 = vmatpush1.bf16.msra.mxu1 %v3298_v25  ;;  %3301 = vmatprep.subr.bf16.mxu0 %v4796_v29  ;;  %v4806_v40 = vpack.c.bf16 %v561_v38, %v557_v37  ;;  %v560_v42 = vld [vmem:[#allocation8 + $0x60] sm:$0xff]  ;;  %v563_v44 = vld [vmem:[#allocation8 + $0x78] sm:$0xff]  ;;  %v558_v45 = vld [vmem:[#allocation8 + $0x50] sm:$0xff] }
  0x42   :  { %3333 = vmatprep.subr.bf16.mxu1 %v4800_v34  ;;  %v562_v46 = vld [vmem:[#allocation8 + $0x70] sm:$0xff]  ;;  %v60_v47 = vld [vmem:[#allocation3 + $0x8] sm:$0xff]  ;;  %v4811_v48 = vpack.c.bf16 %v563_v44, %v559_v43  ;;  %v4815_v51 = vpack.c.bf16 %v560_v42, %v556_v41  ;;  %v564_v52 = vld [vmem:[#allocation8 + $0x80] sm:$0xff] }
  0x43   :  { %3252 = vmatmul.mubr.msk.f32.vlgmr.msra.gmra.mrb[0].mxu0 %vm113_vm0, %v59_v32  ;;  %v565_v49 = vld [vmem:[#allocation8 + $0x88] sm:$0xff]  ;;  %v4819_v53 = vpack.c.bf16 %v562_v46, %v558_v45  ;;  %v568_v55 = vld [vmem:[#allocation8 + $0xa0] sm:$0xff]  ;;  %v567_v56 = vld [vmem:[#allocation8 + $0x98] sm:$0xff] }
  0x44   :  { %3268 = vmatmul.mubr.msk.f32.vlgmr.msra.gmra.mrb[0].mxu1 %vm113_vm0, %v59_v32  ;;  %3303 = vmatpush1.bf16.msra.mxu0 %v4798_v33  ;;  %v569_v50 = vld [vmem:[#allocation8 + $0xa8] sm:$0xff]  ;;  %v571_v57 = vld [vmem:[#allocation8 + $0xb8] sm:$0xff]  ;;  %v566_v59 = vld [vmem:[#allocation8 + $0x90] sm:$0xff]  ;;  %v4831_v1 = vpack.c.bf16 %v568_v55, %v564_v52 }
  0x45   :  { %232 = vmatprep.mubr.f32.mxu0 %v4722_v0  ;;  %393 = vmatprep.mubr.f32.mxu1 %v4722_v0  ;;  %v4821_v54 = vpack.c.bf16 %v569_v50, %v565_v49  ;;  %v4825_v58 = vpack.c.bf16 %v571_v57, %v567_v56  ;;  %v570_v60 = vld [vmem:[#allocation8 + $0xb0] sm:$0xff]  ;;  %v573_v61 = vld [vmem:[#allocation8 + $0xc8] sm:$0xff]  ;;  %v575_v2 = vld [vmem:[#allocation8 + $0xd8] sm:$0xff] }
  0x46   :  { %3335 = vmatpush1.bf16.msra.mxu1 %v4804_v39  ;;  %3305 = vmatprep.subr.bf16.mxu0 %v4806_v40  ;;  %v61_v62 = vld [vmem:[#allocation3 + $0x10] sm:$0xff]  ;;  %v577_v63 = vld [vmem:[#allocation8 + $0xe8] sm:$0xff]  ;;  %v579_v3 = vld [vmem:[#allocation8 + $0xf8] sm:$0xff]  ;;  %v4835_v4 = vpack.c.bf16 %v570_v60, %v566_v59 }
  0x47   :  { %3253 = vmatmul.mubr.msk.f32.gmra.mrb[2].mxu0 %vm113_vm0, %v60_v47  ;;  %3337 = vmatprep.subr.bf16.mxu1 %v4811_v48  ;;  %v4837_v5 = vpack.c.bf16 %v577_v63, %v573_v61  ;;  %v572_v6 = vld [vmem:[#allocation8 + $0xc0] sm:$0xff]  ;;  %v574_v8 = vld [vmem:[#allocation8 + $0xd0] sm:$0xff]  ;;  %v4841_v9 = vpack.c.bf16 %v579_v3, %v575_v2  ;;  %v581_v11 = vld [vmem:[#allocation8 + $0x108] sm:$0xff] }
  0x48   :  { %3269 = vmatmul.mubr.msk.f32.gmra.mrb[2].mxu1 %vm113_vm0, %v60_v47  ;;  %238 = vmatprep.mubr.f32.mxu0 %v4722_v0  ;;  %v576_v7 = vld [vmem:[#allocation8 + $0xe0] sm:$0xff]  ;;  %v578_v10 = vld [vmem:[#allocation8 + $0xf0] sm:$0xff]  ;;  %v585_v12 = vld [vmem:[#allocation8 + $0x128] sm:$0xff] }
  0x49   :  { %399 = vmatprep.mubr.f32.mxu1 %v4722_v0  ;;  %3307 = vmatpush1.bf16.msra.mxu0 %v4815_v51  ;;  %v62_v13 = vld [vmem:[#allocation3 + $0x18] sm:$0xff]  ;;  %v4847_v15 = vpack.c.bf16 %v576_v7, %v572_v6  ;;  %v4851_v17 = vpack.c.bf16 %v578_v10, %v574_v8  ;;  %v4853_v18 = vpack.c.bf16 %v585_v12, %v581_v11  ;;  %v580_v19 = vld [vmem:[#allocation8 + $0x100] sm:$0xff]  ;;  %v582_v21 = vld [vmem:[#allocation8 + $0x110] sm:$0xff] }
  0x4a   :  { %3339 = vmatpush1.bf16.msra.mxu1 %v4819_v53  ;;  %3309 = vmatprep.subr.bf16.mxu0 %v4821_v54  ;;  %v583_v14 = vld [vmem:[#allocation8 + $0x118] sm:$0xff]  ;;  %v584_v20 = vld [vmem:[#allocation8 + $0x120] sm:$0xff]  ;;  %v586_v23 = vld [vmem:[#allocation8 + $0x130] sm:$0xff] }
  0x4b   :  { %3254 = vmatmul.mubr.msk.f32.gmra.mrb[4].mxu0 %vm113_vm0, %v61_v62  ;;  %3341 = vmatprep.subr.bf16.mxu1 %v4825_v58  ;;  %v587_v16 = vld [vmem:[#allocation8 + $0x138] sm:$0xff]  ;;  %v589_v24 = vld [vmem:[#allocation8 + $0x148] sm:$0xff]  ;;  %v63_v26 = vld [vmem:[#allocation3 + $0x20] sm:$0xff]  ;;  %v4863_v30 = vpack.c.bf16 %v584_v20, %v580_v19  ;;  %v4867_v31 = vpack.c.bf16 %v586_v23, %v582_v21 }
  0x4c   :  { %3270 = vmatmul.mubr.msk.f32.gmra.mrb[4].mxu1 %vm113_vm0, %v61_v62  ;;  %244 = vmatprep.mubr.f32.mxu0 %v4722_v0  ;;  %v4857_v22 = vpack.c.bf16 %v587_v16, %v583_v14  ;;  %v593_v25 = vld [vmem:[#allocation8 + $0x168] sm:$0xff]  ;;  %v591_v27 = vld [vmem:[#allocation8 + $0x158] sm:$0xff]  ;;  %v588_v35 = vld [vmem:[#allocation8 + $0x140] sm:$0xff] }
  0x4d   :  { %405 = vmatprep.mubr.f32.mxu1 %v4722_v0  ;;  %3311 = vmatpush1.bf16.msra.mxu0 %v4831_v1  ;;  %v595_v28 = vld [vmem:[#allocation8 + $0x178] sm:$0xff]  ;;  %v4869_v32 = vpack.c.bf16 %v593_v25, %v589_v24  ;;  %v592_v36 = vld [vmem:[#allocation8 + $0x160] sm:$0xff]  ;;  %v590_v37 = vld [vmem:[#allocation8 + $0x150] sm:$0xff] }
  0x4e   :  { %3343 = vmatpush1.bf16.msra.mxu1 %v4835_v4  ;;  %3313 = vmatprep.subr.bf16.mxu0 %v4837_v5  ;;  %v4873_v38 = vpack.c.bf16 %v595_v28, %v591_v27  ;;  %v594_v41 = vld [vmem:[#allocation8 + $0x170] sm:$0xff]  ;;  %v597_v42 = vld [vmem:[#allocation8 + $0x188] sm:$0xff]  ;;  %v599_v45 = vld [vmem:[#allocation8 + $0x198] sm:$0xff]  ;;  %v4879_v47 = vpack.c.bf16 %v592_v36, %v588_v35  ;;  %v93_v35 = vlaneseq }
  0x4f   :  { %3255 = vmatmul.mubr.msk.f32.gmra.mrb[6].mxu0 %vm113_vm0, %v62_v13  ;;  %3345 = vmatprep.subr.bf16.mxu1 %v4841_v9  ;;  %v601_v43 = vld [vmem:[#allocation8 + $0x1a8] sm:$0xff]  ;;  %v603_v46 = vld [vmem:[#allocation8 + $0x1b8] sm:$0xff]  ;;  %v4883_v49 = vpack.c.bf16 %v594_v41, %v590_v37  ;;  %v596_v52 = vld [vmem:[#allocation8 + $0x180] sm:$0xff] }
  0x50   :  { %3271 = vmatmul.mubr.msk.f32.gmra.mrb[6].mxu1 %vm113_vm0, %v62_v13  ;;  %250 = vmatprep.mubr.f32.mxu0 %v4722_v0  ;;  %v64_v44 = vld [vmem:[#allocation3 + $0x28] sm:$0xff]  ;;  %v4885_v50 = vpack.c.bf16 %v601_v43, %v597_v42  ;;  %v600_v55 = vld [vmem:[#allocation8 + $0x1a0] sm:$0xff]  ;;  %v598_v56 = vld [vmem:[#allocation8 + $0x190] sm:$0xff]  ;;  %v4889_v57 = vpack.c.bf16 %v603_v46, %v599_v45  ;;  %v94_v36 = vshrl.u32 %v93_v35, 7 }
  0x51   :  { %411 = vmatprep.mubr.f32.mxu1 %v4722_v0  ;;  %3315 = vmatpush1.bf16.msra.mxu0 %v4847_v15  ;;  %v602_v59 = vld [vmem:[#allocation8 + $0x1b0] sm:$0xff]  ;;  %v605_v60 = vld [vmem:[#allocation8 + $0x1c8] sm:$0xff]  ;;  %v607_v63 = vld [vmem:[#allocation8 + $0x1d8] sm:$0xff]  ;;  %v4895_v3 = vpack.c.bf16 %v600_v55, %v596_v52 }
  0x52   :  { %3347 = vmatpush1.bf16.msra.mxu1 %v4851_v17  ;;  %3317 = vmatprep.subr.bf16.mxu0 %v4853_v18  ;;  %v609_v61 = vld [vmem:[#allocation8 + $0x1e8] sm:$0xff]  ;;  %v65_v62 = vld [vmem:[#allocation3 + $0x30] sm:$0xff]  ;;  %v611_v2 = vld [vmem:[#allocation8 + $0x1f8] sm:$0xff]  ;;  %v4899_v6 = vpack.c.bf16 %v602_v59, %v598_v56  ;;  %v95_v37 = vsub.s32 0, %v94_v36  ;;  %v99_v42 = vsub.s32 1, %v94_v36  ;;  %v107_v43 = vsub.s32 3, %v94_v36 }
  0x53   :  { %3256 = vmatmul.mubr.msk.f32.gmra.mrb[8].mxu0 %vm113_vm0, %v63_v26  ;;  %3349 = vmatprep.subr.bf16.mxu1 %v4857_v22  ;;  %v4901_v7 = vpack.c.bf16 %v609_v61, %v605_v60  ;;  %v604_v8 = vld [vmem:[#allocation8 + $0x1c0] sm:$0xff]  ;;  %v4905_v11 = vpack.c.bf16 %v611_v2, %v607_v63  ;;  %v606_v12 = vld [vmem:[#allocation8 + $0x1d0] sm:$0xff]  ;;  %v66_v14 = vld [vmem:[#allocation3 + $0x38] sm:$0xff]  ;;  %v103_v63 = vsub.s32 2, %v94_v36 }
  0x54   :  { %3272 = vmatmul.mubr.msk.f32.gmra.mrb[8].mxu1 %vm113_vm0, %v63_v26  ;;  %256 = vmatprep.mubr.f32.mxu0 %v4722_v0  ;;  %v608_v10 = vld [vmem:[#allocation8 + $0x1e0] sm:$0xff]  ;;  %v610_v13 = vld [vmem:[#allocation8 + $0x1f0] sm:$0xff]  ;;  %v68_v21 = vld [vmem:[#allocation3 + $0x48] sm:$0xff] }
  0x55   :  { %417 = vmatprep.mubr.f32.mxu1 %v4722_v0  ;;  %3319 = vmatpush1.bf16.msra.mxu0 %v4863_v30  ;;  %v4911_v16 = vpack.c.bf16 %v608_v10, %v604_v8  ;;  %v4915_v19 = vpack.c.bf16 %v610_v13, %v606_v12  ;;  %v67_v20 = vld [vmem:[#allocation3 + $0x40] sm:$0xff]  ;;  %v69_v23 = vld [vmem:[#allocation3 + $0x50] sm:$0xff]  ;;  %v70_v24 = vld [vmem:[#allocation3 + $0x58] sm:$0xff] }
  0x56   :  { %3351 = vmatpush1.bf16.msra.mxu1 %v4867_v31  ;;  %3321 = vmatprep.subr.bf16.mxu0 %v4869_v32  ;;  %v71_v25 = vld [vmem:[#allocation3 + $0x60] sm:$0xff]  ;;  %v72_v26 = vld [vmem:[#allocation3 + $0x68] sm:$0xff]  ;;  %v73_v27 = vld [vmem:[#allocation3 + $0x70] sm:$0xff] }
  0x57   :  { %3257 = vmatmul.mubr.msk.f32.gmra.mrb[10].mxu0 %vm113_vm0, %v64_v44  ;;  %3353 = vmatprep.subr.bf16.mxu1 %v4873_v38  ;;  %v74_v28 = vld [vmem:[#allocation3 + $0x78] sm:$0xff]  ;;  %v91_v41 = vld [vmem:[%s5613_s3] sm:$0xf]  ;;  %s4723_s3 = smov [#allocation9]  }
  0x58   :  { %3273 = vmatmul.mubr.msk.f32.gmra.mrb[10].mxu1 %vm113_vm0, %v64_v44  ;;  %262 = vmatprep.mubr.f32.mxu0 %v4722_v0  ;;  %v4997_v44 = vrot.slane %v91_v41, %v95_v37  ;;  %v4999_v45 = vrot.slane %v91_v41, %v99_v42  ;;  %v5001_v46 = vrot.slane %v91_v41, %v107_v43  ;;  %s3239_s26 = sshll.u32 %s4723_s3, 4  ;;  %s3240_s26 = int_to_ptr.vmem [resolvable:$true] %s3239_s26 }
  0x59   :  { %423 = vmatprep.mubr.f32.mxu1 %v4722_v0  ;;  %3323 = vmatpush1.bf16.msra.mxu0 %v4879_v47  ;;  %v5006_v2 = vrot.slane %v91_v41, %v103_v63  ;;  %s4687_s29 = scalar_lea.vmem %s3240_s26, 2048  ;;  %p4692_p11 = scmp.lt.s32.totalorder %s3240_s26, %s3240_s26 }
  0x5a   :  { %3355 = vmatpush1.bf16.msra.mxu1 %v4883_v49  ;;  %3325 = vmatprep.subr.bf16.mxu0 %v4885_v50  ;;  %p4688_p10 = scmp.ne.s32.totalorder %s3240_s26, %s4687_s29  ;;  %p4693_p12 = scmp.lt.s32.totalorder %s4687_s29, %s4687_s29 }
  0x5b   :  { %3258 = vmatmul.mubr.msk.f32.gmra.mrb[12].mxu0 %vm113_vm0, %v65_v62  ;;  %3357 = vmatprep.subr.bf16.mxu1 %v4889_v57 }
  0x5c   :  { %3274 = vmatmul.mubr.msk.f32.gmra.mrb[12].mxu1 %vm113_vm0, %v65_v62  ;;  %268 = vmatprep.mubr.f32.mxu0 %v4722_v0  ;;  %p4694_p13 = por %p4693_p12, %p4692_p11 }
  0x5d   :  { %429 = vmatprep.mubr.f32.mxu1 %v4722_v0  ;;  %3327 = vmatpush1.bf16.msra.mxu0 %v4895_v3 }
  0x5e   :  { %3359 = vmatpush1.bf16.msra.mxu1 %v4899_v6  ;;  %3329 = vmatprep.subr.bf16.mxu0 %v4901_v7  ;;  %p4695_p0 = pnand %p4694_p13, %p4688_p10 }
  0x5f   :  { %3259 = vmatmul.mubr.msk.f32.gmra.mrb[14].mxu0 %vm113_vm0, %v66_v14  ;;  %3361 = vmatprep.subr.bf16.mxu1 %v4905_v11 }
  0x60   :  { %3275 = vmatmul.mubr.msk.f32.gmra.mrb[14].mxu1 %vm113_vm0, %v66_v14  ;;  %274 = vmatprep.mubr.f32.mxu0 %v4722_v0 }
  0x61   :  { %435 = vmatprep.mubr.f32.mxu1 %v4722_v0  ;;  %3331 = vmatpush1.bf16.msra.mxu0 %v4911_v16 }
  0x62   :  { %3363 = vmatpush1.bf16.msra.mxu1 %v4915_v19  ;;  %3365 = vmatprep.subr.bf16.mxu0 %v4796_v29 }
  0x63   :  { %3260 = vmatmul.mubr.msk.f32.gmra.mrb[16].mxu0 %vm113_vm0, %v67_v20  ;;  %3397 = vmatprep.subr.bf16.mxu1 %v4800_v34 }
  0x64   :  { %3276 = vmatmul.mubr.msk.f32.gmra.mrb[16].mxu1 %vm113_vm0, %v67_v20  ;;  %280 = vmatprep.mubr.f32.mxu0 %v4722_v0 }
  0x65   :  { %441 = vmatprep.mubr.f32.mxu1 %v4722_v0 }
  0x67   :  { %3261 = vmatmul.mubr.msk.f32.gmra.mrb[18].mxu0 %vm113_vm0, %v68_v21 }
  0x68   :  { %3277 = vmatmul.mubr.msk.f32.gmra.mrb[18].mxu1 %vm113_vm0, %v68_v21  ;;  %286 = vmatprep.mubr.f32.mxu0 %v4722_v0 }
  0x69   :  { %447 = vmatprep.mubr.f32.mxu1 %v4722_v0 }
  0x6b   :  { %3262 = vmatmul.mubr.msk.f32.gmra.mrb[20].mxu0 %vm113_vm0, %v69_v23 }
  0x6c   :  { %3278 = vmatmul.mubr.msk.f32.gmra.mrb[20].mxu1 %vm113_vm0, %v69_v23  ;;  %292 = vmatprep.mubr.f32.mxu0 %v4722_v0 }
  0x6d   :  { %453 = vmatprep.mubr.f32.mxu1 %v4722_v0 }
  0x6f   :  { %3263 = vmatmul.mubr.msk.f32.gmra.mrb[22].mxu0 %vm113_vm0, %v70_v24 }
  0x70   :  { %3279 = vmatmul.mubr.msk.f32.gmra.mrb[22].mxu1 %vm113_vm0, %v70_v24  ;;  %298 = vmatprep.mubr.f32.mxu0 %v4722_v0 }
  0x71   :  { %459 = vmatprep.mubr.f32.mxu1 %v4722_v0 }
  0x73   :  { %3264 = vmatmul.mubr.msk.f32.gmra.mrb[24].mxu0 %vm113_vm0, %v71_v25 }
  0x74   :  { %3280 = vmatmul.mubr.msk.f32.gmra.mrb[24].mxu1 %vm113_vm0, %v71_v25  ;;  %304 = vmatprep.mubr.f32.mxu0 %v4722_v0 }
  0x75   :  { %465 = vmatprep.mubr.f32.mxu1 %v4722_v0 }
  0x77   :  { %3265 = vmatmul.mubr.msk.f32.gmra.mrb[26].mxu0 %vm113_vm0, %v72_v26 }
  0x78   :  { %3281 = vmatmul.mubr.msk.f32.gmra.mrb[26].mxu1 %vm113_vm0, %v72_v26  ;;  %310 = vmatprep.mubr.f32.mxu0 %v4722_v0 }
  0x79   :  { %471 = vmatprep.mubr.f32.mxu1 %v4722_v0 }
  0x7b   :  { %3266 = vmatmul.mubr.msk.f32.gmra.mrb[28].mxu0 %vm113_vm0, %v73_v27 }
  0x7c   :  { %3282 = vmatmul.mubr.msk.f32.gmra.mrb[28].mxu1 %vm113_vm0, %v73_v27  ;;  %316 = vmatprep.mubr.f32.mxu0 %v4722_v0 }
  0x7d   :  { %477 = vmatprep.mubr.f32.mxu1 %v4722_v0 }
  0x7f   :  { %3267 = vmatmul.mubr.msk.f32.gmra.mrb[30].mxu0 %vm113_vm0, %v74_v28 }
  0x80   :  { %3283 = vmatmul.mubr.msk.f32.gmra.mrb[30].mxu1 %vm113_vm0, %v74_v28  ;;  %680 = vmatprep.mubr.f32.mxu0 %v4722_v0 }
  0x81   :  { %751 = vmatprep.mubr.f32.mxu1 %v4722_v0 }
  0x83   :  { %681 = vmatmul.mubr.f32.vlgmr.msra.gmra.mrb[0].mxu0 %v4722_v0 }
  0x84   :  { %752 = vmatmul.mubr.f32.vlgmr.msra.gmra.mrb[0].mxu1 %v4722_v0  ;;  %3367 = vmatpush1.bf16.msra.mxu0 %v4798_v33 }
  0x85   :  { %3399 = vmatpush1.bf16.msra.mxu1 %v4804_v39  ;;  %3369 = vmatprep.subr.bf16.mxu0 %v4806_v40 }
  0x86   :  { %3401 = vmatprep.subr.bf16.mxu1 %v4811_v48  ;;  %843 = vmatprep.mubr.f32.mxu0 %v4722_v0 }
  0x87   :  { %914 = vmatprep.mubr.f32.mxu1 %v4722_v0 }
  0x88   :  { %3371 = vmatpush1.bf16.msra.mxu0 %v4815_v51 }
  0x89   :  { %3403 = vmatpush1.bf16.msra.mxu1 %v4819_v53  ;;  %3373 = vmatprep.subr.bf16.mxu0 %v4821_v54 }
  0x8a   :  { %3405 = vmatprep.subr.bf16.mxu1 %v4825_v58 }
  0x8c   :  { %3375 = vmatpush1.bf16.msra.mxu0 %v4831_v1 }
  0x8d   :  { %3407 = vmatpush1.bf16.msra.mxu1 %v4835_v4  ;;  %3377 = vmatprep.subr.bf16.mxu0 %v4837_v5 }
  0x8e   :  { %3409 = vmatprep.subr.bf16.mxu1 %v4841_v9 }
  0x90   :  { %3379 = vmatpush1.bf16.msra.mxu0 %v4847_v15 }
  0x91   :  { %3411 = vmatpush1.bf16.msra.mxu1 %v4851_v17  ;;  %3381 = vmatprep.subr.bf16.mxu0 %v4853_v18 }
  0x92   :  { %3413 = vmatprep.subr.bf16.mxu1 %v4857_v22 }
  0x94   :  { %3383 = vmatpush1.bf16.msra.mxu0 %v4863_v30 }
  0x95   :  { %3415 = vmatpush1.bf16.msra.mxu1 %v4867_v31  ;;  %3385 = vmatprep.subr.bf16.mxu0 %v4869_v32 }
  0x96   :  { %3417 = vmatprep.subr.bf16.mxu1 %v4873_v38 }
  0x98   :  { %3387 = vmatpush1.bf16.msra.mxu0 %v4879_v47 }
  0x99   :  { %3419 = vmatpush1.bf16.msra.mxu1 %v4883_v49  ;;  %3389 = vmatprep.subr.bf16.mxu0 %v4885_v50 }
  0x9a   :  { %3421 = vmatprep.subr.bf16.mxu1 %v4889_v57 }
  0x9c   :  { %3391 = vmatpush1.bf16.msra.mxu0 %v4895_v3 }
  0x9d   :  { %3423 = vmatpush1.bf16.msra.mxu1 %v4899_v6  ;;  %3393 = vmatprep.subr.bf16.mxu0 %v4901_v7 }
  0x9e   :  { %3425 = vmatprep.subr.bf16.mxu1 %v4905_v11 }
  0xa0   :  { %3395 = vmatpush1.bf16.msra.mxu0 %v4911_v16 }
  0xa1   :  { %3427 = vmatpush1.bf16.msra.mxu1 %v4915_v19  ;;  %3429 = vmatprep.subr.bf16.mxu0 %v4796_v29 }
  0xa2   :  { %3461 = vmatprep.subr.bf16.mxu1 %v4800_v34 }
 0x156   :  { %v682_v52 = vpop.f32.mrb[0].mxu0 }
 0x157   :  { %v4324_v55 = vadd.f32 %v682_v52, %v4997_v44  ;;  %v753_v56 = vpop.f32.mrb[0].mxu1  ;;  %v684_v59 = vpop.f32.mrb[1].mxu0 }
 0x158   :  { %v4325_v60 = vadd.f32 %v684_v59, %v4999_v45  ;;  %v755_v61 = vpop.f32.mrb[1].mxu1  ;;  %v4356_v8 = vadd.f32 %v753_v56, %v5006_v2 }
 0x159   :  { %4461 = vtanh.f32 %v4324_v55  ;;  %v4357_v62 = vadd.f32 %v755_v61, %v5001_v46 }
 0x15a   :  { %4463 = vtanh.f32 %v4325_v60 }
 0x15b   :  { %4465 = vtanh.f32 %v4357_v62 }
 0x15c   :  { %4467 = vtanh.f32 %v4356_v8 }
 0x163   :  { %v4462_v10 = vpop.eup %4461 }
 0x164   :  { %v762_v12 = vmul.f32 0.5, %v4462_v10  ;;  %v4464_v13 = vpop.eup %4463 }
 0x165   :  { %v764_v20 = vmul.f32 0.5, %v4464_v13  ;;  %v4466_v21 = vpop.eup %4465 }
 0x166   :  { %v763_v14 = vadd.f32 0.5, %v762_v12  ;;  %v4468_v27 = vpop.eup %4467 }
 0x167   :  { %v765_v23 = vadd.f32 0.5, %v764_v20  ;;  %v766_v28 = vmul.f32 0.5, %v4468_v27 }
 0x168   :  { %v769_v24 = vmul.f32 %v4466_v21, %v763_v14 }
 0x169   :  { %v768_v25 = vmul.f32 0.0, %v765_v23  ;;  %v767_v35 = vadd.f32 0.5, %v766_v28 }
 0x16b   :  { %v5009_v26 = vadd.f32 %v769_v24, %v768_v25 }
 0x16d   :  { %4469 = vtanh.f32 %v5009_v26 }
 0x177   :  { %v4470_v36 = vpop.eup %4469 }
 0x178   :  { %v772_v37 = vmul.f32 %v4470_v36, %v767_v35 }
 0x17a   :  { %773 = vst [vmem:[#allocation9] sm:$0xff] %v772_v37  ;;  %844 = vmatmul.mubr.f32.vlgmr.msra.gmra.mrb[2].mxu0 %v772_v37  ;;  %915 = vmatmul.mubr.f32.vlgmr.msra.gmra.mrb[2].mxu1 %v772_v37 }
 0x17b   :  { %3431 = vmatpush1.bf16.msra.mxu0 %v4798_v33  ;;  %3463 = vmatpush1.bf16.msra.mxu1 %v4804_v39 }
 0x17c   :  { %3433 = vmatprep.subr.bf16.mxu0 %v4806_v40  ;;  %3465 = vmatprep.subr.bf16.mxu1 %v4811_v48 }
 0x17d   :  { %1007 = vmatprep.mubr.f32.mxu0 %v4722_v0  ;;  %1078 = vmatprep.mubr.f32.mxu1 %v4722_v0 }
 0x17f   :  { %3435 = vmatpush1.bf16.msra.mxu0 %v4815_v51  ;;  %3467 = vmatpush1.bf16.msra.mxu1 %v4819_v53 }
 0x180   :  { %3437 = vmatprep.subr.bf16.mxu0 %v4821_v54  ;;  %3469 = vmatprep.subr.bf16.mxu1 %v4825_v58 }
 0x183   :  { %3439 = vmatpush1.bf16.msra.mxu0 %v4831_v1  ;;  %3471 = vmatpush1.bf16.msra.mxu1 %v4835_v4 }
 0x184   :  { %3441 = vmatprep.subr.bf16.mxu0 %v4837_v5  ;;  %3473 = vmatprep.subr.bf16.mxu1 %v4841_v9 }
 0x187   :  { %3443 = vmatpush1.bf16.msra.mxu0 %v4847_v15  ;;  %3475 = vmatpush1.bf16.msra.mxu1 %v4851_v17 }
 0x188   :  { %3445 = vmatprep.subr.bf16.mxu0 %v4853_v18  ;;  %3477 = vmatprep.subr.bf16.mxu1 %v4857_v22 }
 0x18b   :  { %3447 = vmatpush1.bf16.msra.mxu0 %v4863_v30  ;;  %3479 = vmatpush1.bf16.msra.mxu1 %v4867_v31 }
 0x18c   :  { %3449 = vmatprep.subr.bf16.mxu0 %v4869_v32  ;;  %3481 = vmatprep.subr.bf16.mxu1 %v4873_v38 }
 0x18f   :  { %3451 = vmatpush1.bf16.msra.mxu0 %v4879_v47  ;;  %3483 = vmatpush1.bf16.msra.mxu1 %v4883_v49 }
 0x190   :  { %3453 = vmatprep.subr.bf16.mxu0 %v4885_v50  ;;  %3485 = vmatprep.subr.bf16.mxu1 %v4889_v57 }
 0x193   :  { %3455 = vmatpush1.bf16.msra.mxu0 %v4895_v3  ;;  %3487 = vmatpush1.bf16.msra.mxu1 %v4899_v6 }
 0x194   :  { %3457 = vmatprep.subr.bf16.mxu0 %v4901_v7  ;;  %3489 = vmatprep.subr.bf16.mxu1 %v4905_v11 }
 0x197   :  { %3459 = vmatpush1.bf16.msra.mxu0 %v4911_v16  ;;  %3491 = vmatpush1.bf16.msra.mxu1 %v4915_v19 }
 0x198   :  { %3493 = vmatprep.subr.bf16.mxu0 %v4796_v29  ;;  %3525 = vmatprep.subr.bf16.mxu1 %v4800_v34 }
 0x24d   :  { %v845_v41 = vpop.f32.mrb[2].mxu0  ;;  %v916_v42 = vpop.f32.mrb[2].mxu1 }
 0x24e   :  { %v4326_v43 = vadd.f32 %v845_v41, %v4997_v44  ;;  %v847_v52 = vpop.f32.mrb[3].mxu0  ;;  %v918_v55 = vpop.f32.mrb[3].mxu1  ;;  %v4358_v60 = vadd.f32 %v916_v42, %v5006_v2 }
 0x24f   :  { %v4327_v56 = vadd.f32 %v847_v52, %v4999_v45  ;;  %v4359_v59 = vadd.f32 %v918_v55, %v5001_v46 }
 0x250   :  { %4471 = vtanh.f32 %v4326_v43 }
 0x251   :  { %4473 = vtanh.f32 %v4327_v56 }
 0x252   :  { %4475 = vtanh.f32 %v4359_v59 }
 0x253   :  { %4477 = vtanh.f32 %v4358_v60 }
 0x25a   :  { %v4472_v61 = vpop.eup %4471 }
 0x25b   :  { %v925_v62 = vmul.f32 0.5, %v4472_v61  ;;  %v4474_v63 = vpop.eup %4473 }
 0x25c   :  { %v927_v10 = vmul.f32 0.5, %v4474_v63  ;;  %v4476_v12 = vpop.eup %4475 }
 0x25d   :  { %v926_v8 = vadd.f32 0.5, %v925_v62  ;;  %v4478_v23 = vpop.eup %4477 }
 0x25e   :  { %v928_v13 = vadd.f32 0.5, %v927_v10  ;;  %v929_v24 = vmul.f32 0.5, %v4478_v23 }
 0x25f   :  { %v932_v14 = vmul.f32 %v4476_v12, %v926_v8 }
 0x260   :  { %v931_v20 = vmul.f32 %v928_v13, %v5009_v26  ;;  %v930_v25 = vadd.f32 0.5, %v929_v24 }
 0x262   :  { %v5051_v21 = vadd.f32 %v932_v14, %v931_v20 }
 0x264   :  { %4479 = vtanh.f32 %v5051_v21 }
 0x26e   :  { %v4480_v27 = vpop.eup %4479 }
 0x26f   :  { %v935_v28 = vmul.f32 %v4480_v27, %v930_v25 }
 0x271   :  { %937 = vst [vmem:[#allocation9 + $0x8] sm:$0xff] %v935_v28  ;;  %1008 = vmatmul.mubr.f32.vlgmr.msra.gmra.mrb[4].mxu0 %v935_v28  ;;  %1079 = vmatmul.mubr.f32.vlgmr.msra.gmra.mrb[4].mxu1 %v935_v28 }
 0x272   :  { %3495 = vmatpush1.bf16.msra.mxu0 %v4798_v33  ;;  %3527 = vmatpush1.bf16.msra.mxu1 %v4804_v39 }
 0x273   :  { %3497 = vmatprep.subr.bf16.mxu0 %v4806_v40  ;;  %3529 = vmatprep.subr.bf16.mxu1 %v4811_v48 }
 0x274   :  { %1171 = vmatprep.mubr.f32.mxu0 %v4722_v0  ;;  %1242 = vmatprep.mubr.f32.mxu1 %v4722_v0 }
 0x276   :  { %3499 = vmatpush1.bf16.msra.mxu0 %v4815_v51  ;;  %3531 = vmatpush1.bf16.msra.mxu1 %v4819_v53 }
 0x277   :  { %3501 = vmatprep.subr.bf16.mxu0 %v4821_v54  ;;  %3533 = vmatprep.subr.bf16.mxu1 %v4825_v58 }
 0x27a   :  { %3503 = vmatpush1.bf16.msra.mxu0 %v4831_v1  ;;  %3535 = vmatpush1.bf16.msra.mxu1 %v4835_v4 }
 0x27b   :  { %3505 = vmatprep.subr.bf16.mxu0 %v4837_v5  ;;  %3537 = vmatprep.subr.bf16.mxu1 %v4841_v9 }
 0x27e   :  { %3507 = vmatpush1.bf16.msra.mxu0 %v4847_v15  ;;  %3539 = vmatpush1.bf16.msra.mxu1 %v4851_v17 }
 0x27f   :  { %3509 = vmatprep.subr.bf16.mxu0 %v4853_v18  ;;  %3541 = vmatprep.subr.bf16.mxu1 %v4857_v22 }
 0x282   :  { %3511 = vmatpush1.bf16.msra.mxu0 %v4863_v30  ;;  %3543 = vmatpush1.bf16.msra.mxu1 %v4867_v31 }
 0x283   :  { %3513 = vmatprep.subr.bf16.mxu0 %v4869_v32  ;;  %3545 = vmatprep.subr.bf16.mxu1 %v4873_v38 }
 0x286   :  { %3515 = vmatpush1.bf16.msra.mxu0 %v4879_v47  ;;  %3547 = vmatpush1.bf16.msra.mxu1 %v4883_v49 }
 0x287   :  { %3517 = vmatprep.subr.bf16.mxu0 %v4885_v50  ;;  %3549 = vmatprep.subr.bf16.mxu1 %v4889_v57 }
 0x28a   :  { %3519 = vmatpush1.bf16.msra.mxu0 %v4895_v3  ;;  %3551 = vmatpush1.bf16.msra.mxu1 %v4899_v6 }
 0x28b   :  { %3521 = vmatprep.subr.bf16.mxu0 %v4901_v7  ;;  %3553 = vmatprep.subr.bf16.mxu1 %v4905_v11 }
 0x28e   :  { %3523 = vmatpush1.bf16.msra.mxu0 %v4911_v16  ;;  %3555 = vmatpush1.bf16.msra.mxu1 %v4915_v19 }
 0x28f   :  { %3557 = vmatprep.subr.bf16.mxu0 %v4796_v29  ;;  %3589 = vmatprep.subr.bf16.mxu1 %v4800_v34 }
 0x344   :  { %v1009_v26 = vpop.f32.mrb[4].mxu0  ;;  %v1080_v35 = vpop.f32.mrb[4].mxu1 }
 0x345   :  { %v4328_v36 = vadd.f32 %v1009_v26, %v4997_v44  ;;  %v1011_v37 = vpop.f32.mrb[5].mxu0  ;;  %v1082_v41 = vpop.f32.mrb[5].mxu1  ;;  %v4360_v52 = vadd.f32 %v1080_v35, %v5006_v2 }
 0x346   :  { %v4329_v42 = vadd.f32 %v1011_v37, %v4999_v45  ;;  %v4361_v43 = vadd.f32 %v1082_v41, %v5001_v46 }
 0x347   :  { %4481 = vtanh.f32 %v4328_v36 }
 0x348   :  { %4483 = vtanh.f32 %v4329_v42 }
 0x349   :  { %4485 = vtanh.f32 %v4361_v43 }
 0x34a   :  { %4487 = vtanh.f32 %v4360_v52 }
 0x351   :  { %v4482_v55 = vpop.eup %4481 }
 0x352   :  { %v1089_v56 = vmul.f32 0.5, %v4482_v55  ;;  %v4484_v59 = vpop.eup %4483 }
 0x353   :  { %v1091_v61 = vmul.f32 0.5, %v4484_v59  ;;  %v4486_v62 = vpop.eup %4485 }
 0x354   :  { %v1090_v60 = vadd.f32 0.5, %v1089_v56  ;;  %v4488_v13 = vpop.eup %4487 }
 0x355   :  { %v1092_v63 = vadd.f32 0.5, %v1091_v61  ;;  %v1093_v14 = vmul.f32 0.5, %v4488_v13 }
 0x356   :  { %v1096_v8 = vmul.f32 %v4486_v62, %v1090_v60 }
 0x357   :  { %v1095_v10 = vmul.f32 %v1092_v63, %v5051_v21  ;;  %v1094_v20 = vadd.f32 0.5, %v1093_v14 }
 0x359   :  { %v5093_v12 = vadd.f32 %v1096_v8, %v1095_v10 }
 0x35b   :  { %4489 = vtanh.f32 %v5093_v12 }
 0x365   :  { %v4490_v23 = vpop.eup %4489 }
 0x366   :  { %v1099_v24 = vmul.f32 %v4490_v23, %v1094_v20 }
 0x368   :  { %1101 = vst [vmem:[#allocation9 + $0x10] sm:$0xff] %v1099_v24  ;;  %1172 = vmatmul.mubr.f32.vlgmr.msra.gmra.mrb[6].mxu0 %v1099_v24  ;;  %1243 = vmatmul.mubr.f32.vlgmr.msra.gmra.mrb[6].mxu1 %v1099_v24 }
 0x369   :  { %3559 = vmatpush1.bf16.msra.mxu0 %v4798_v33  ;;  %3591 = vmatpush1.bf16.msra.mxu1 %v4804_v39 }
 0x36a   :  { %3561 = vmatprep.subr.bf16.mxu0 %v4806_v40  ;;  %3593 = vmatprep.subr.bf16.mxu1 %v4811_v48 }
 0x36b   :  { %1335 = vmatprep.mubr.f32.mxu0 %v4722_v0  ;;  %1406 = vmatprep.mubr.f32.mxu1 %v4722_v0 }
 0x36d   :  { %3563 = vmatpush1.bf16.msra.mxu0 %v4815_v51  ;;  %3595 = vmatpush1.bf16.msra.mxu1 %v4819_v53 }
 0x36e   :  { %3565 = vmatprep.subr.bf16.mxu0 %v4821_v54  ;;  %3597 = vmatprep.subr.bf16.mxu1 %v4825_v58 }
 0x371   :  { %3567 = vmatpush1.bf16.msra.mxu0 %v4831_v1  ;;  %3599 = vmatpush1.bf16.msra.mxu1 %v4835_v4 }
 0x372   :  { %3569 = vmatprep.subr.bf16.mxu0 %v4837_v5  ;;  %3601 = vmatprep.subr.bf16.mxu1 %v4841_v9 }
 0x375   :  { %3571 = vmatpush1.bf16.msra.mxu0 %v4847_v15  ;;  %3603 = vmatpush1.bf16.msra.mxu1 %v4851_v17 }
 0x376   :  { %3573 = vmatprep.subr.bf16.mxu0 %v4853_v18  ;;  %3605 = vmatprep.subr.bf16.mxu1 %v4857_v22 }
 0x379   :  { %3575 = vmatpush1.bf16.msra.mxu0 %v4863_v30  ;;  %3607 = vmatpush1.bf16.msra.mxu1 %v4867_v31 }
 0x37a   :  { %3577 = vmatprep.subr.bf16.mxu0 %v4869_v32  ;;  %3609 = vmatprep.subr.bf16.mxu1 %v4873_v38 }
 0x37d   :  { %3579 = vmatpush1.bf16.msra.mxu0 %v4879_v47  ;;  %3611 = vmatpush1.bf16.msra.mxu1 %v4883_v49 }
 0x37e   :  { %3581 = vmatprep.subr.bf16.mxu0 %v4885_v50  ;;  %3613 = vmatprep.subr.bf16.mxu1 %v4889_v57 }
 0x381   :  { %3583 = vmatpush1.bf16.msra.mxu0 %v4895_v3  ;;  %3615 = vmatpush1.bf16.msra.mxu1 %v4899_v6 }
 0x382   :  { %3585 = vmatprep.subr.bf16.mxu0 %v4901_v7  ;;  %3617 = vmatprep.subr.bf16.mxu1 %v4905_v11 }
 0x385   :  { %3587 = vmatpush1.bf16.msra.mxu0 %v4911_v16  ;;  %3619 = vmatpush1.bf16.msra.mxu1 %v4915_v19 }
 0x386   :  { %3621 = vmatprep.subr.bf16.mxu0 %v4796_v29  ;;  %3653 = vmatprep.subr.bf16.mxu1 %v4800_v34 }
 0x43b   :  { %v1173_v21 = vpop.f32.mrb[6].mxu0  ;;  %v1244_v25 = vpop.f32.mrb[6].mxu1 }
 0x43c   :  { %v4330_v27 = vadd.f32 %v1173_v21, %v4997_v44  ;;  %v1175_v28 = vpop.f32.mrb[7].mxu0  ;;  %v1246_v26 = vpop.f32.mrb[7].mxu1  ;;  %v4362_v37 = vadd.f32 %v1244_v25, %v5006_v2 }
 0x43d   :  { %v4331_v35 = vadd.f32 %v1175_v28, %v4999_v45  ;;  %v4363_v36 = vadd.f32 %v1246_v26, %v5001_v46 }
 0x43e   :  { %4491 = vtanh.f32 %v4330_v27 }
 0x43f   :  { %4493 = vtanh.f32 %v4331_v35 }
 0x440   :  { %4495 = vtanh.f32 %v4363_v36 }
 0x441   :  { %4497 = vtanh.f32 %v4362_v37 }
 0x448   :  { %v4492_v41 = vpop.eup %4491 }
 0x449   :  { %v1253_v42 = vmul.f32 0.5, %v4492_v41  ;;  %v4494_v43 = vpop.eup %4493 }
 0x44a   :  { %v1255_v55 = vmul.f32 0.5, %v4494_v43  ;;  %v4496_v56 = vpop.eup %4495 }
 0x44b   :  { %v1254_v52 = vadd.f32 0.5, %v1253_v42  ;;  %v4498_v63 = vpop.eup %4497 }
 0x44c   :  { %v1256_v59 = vadd.f32 0.5, %v1255_v55  ;;  %v1257_v8 = vmul.f32 0.5, %v4498_v63 }
 0x44d   :  { %v1260_v60 = vmul.f32 %v4496_v56, %v1254_v52 }
 0x44e   :  { %v1259_v61 = vmul.f32 %v1256_v59, %v5093_v12  ;;  %v1258_v10 = vadd.f32 0.5, %v1257_v8 }
 0x450   :  { %v5135_v62 = vadd.f32 %v1260_v60, %v1259_v61 }
 0x452   :  { %4499 = vtanh.f32 %v5135_v62 }
 0x45c   :  { %v4500_v13 = vpop.eup %4499 }
 0x45d   :  { %v1263_v14 = vmul.f32 %v4500_v13, %v1258_v10 }
 0x45f   :  { %1265 = vst [vmem:[#allocation9 + $0x18] sm:$0xff] %v1263_v14  ;;  %1336 = vmatmul.mubr.f32.vlgmr.msra.gmra.mrb[8].mxu0 %v1263_v14  ;;  %1407 = vmatmul.mubr.f32.vlgmr.msra.gmra.mrb[8].mxu1 %v1263_v14 }
 0x460   :  { %3623 = vmatpush1.bf16.msra.mxu0 %v4798_v33  ;;  %3655 = vmatpush1.bf16.msra.mxu1 %v4804_v39 }
 0x461   :  { %3625 = vmatprep.subr.bf16.mxu0 %v4806_v40  ;;  %3657 = vmatprep.subr.bf16.mxu1 %v4811_v48 }
 0x462   :  { %1499 = vmatprep.mubr.f32.mxu0 %v4722_v0  ;;  %1570 = vmatprep.mubr.f32.mxu1 %v4722_v0 }
 0x464   :  { %3627 = vmatpush1.bf16.msra.mxu0 %v4815_v51  ;;  %3659 = vmatpush1.bf16.msra.mxu1 %v4819_v53 }
 0x465   :  { %3629 = vmatprep.subr.bf16.mxu0 %v4821_v54  ;;  %3661 = vmatprep.subr.bf16.mxu1 %v4825_v58 }
 0x468   :  { %3631 = vmatpush1.bf16.msra.mxu0 %v4831_v1  ;;  %3663 = vmatpush1.bf16.msra.mxu1 %v4835_v4 }
 0x469   :  { %3633 = vmatprep.subr.bf16.mxu0 %v4837_v5  ;;  %3665 = vmatprep.subr.bf16.mxu1 %v4841_v9 }
 0x46c   :  { %3635 = vmatpush1.bf16.msra.mxu0 %v4847_v15  ;;  %3667 = vmatpush1.bf16.msra.mxu1 %v4851_v17 }
 0x46d   :  { %3637 = vmatprep.subr.bf16.mxu0 %v4853_v18  ;;  %3669 = vmatprep.subr.bf16.mxu1 %v4857_v22 }
 0x470   :  { %3639 = vmatpush1.bf16.msra.mxu0 %v4863_v30  ;;  %3671 = vmatpush1.bf16.msra.mxu1 %v4867_v31 }
 0x471   :  { %3641 = vmatprep.subr.bf16.mxu0 %v4869_v32  ;;  %3673 = vmatprep.subr.bf16.mxu1 %v4873_v38 }
 0x474   :  { %3643 = vmatpush1.bf16.msra.mxu0 %v4879_v47  ;;  %3675 = vmatpush1.bf16.msra.mxu1 %v4883_v49 }
 0x475   :  { %3645 = vmatprep.subr.bf16.mxu0 %v4885_v50  ;;  %3677 = vmatprep.subr.bf16.mxu1 %v4889_v57 }
 0x478   :  { %3647 = vmatpush1.bf16.msra.mxu0 %v4895_v3  ;;  %3679 = vmatpush1.bf16.msra.mxu1 %v4899_v6 }
 0x479   :  { %3649 = vmatprep.subr.bf16.mxu0 %v4901_v7  ;;  %3681 = vmatprep.subr.bf16.mxu1 %v4905_v11 }
 0x47c   :  { %3651 = vmatpush1.bf16.msra.mxu0 %v4911_v16  ;;  %3683 = vmatpush1.bf16.msra.mxu1 %v4915_v19 }
 0x47d   :  { %3685 = vmatprep.subr.bf16.mxu0 %v4796_v29  ;;  %3717 = vmatprep.subr.bf16.mxu1 %v4800_v34 }
 0x532   :  { %v1337_v12 = vpop.f32.mrb[8].mxu0  ;;  %v1408_v20 = vpop.f32.mrb[8].mxu1 }
 0x533   :  { %v4332_v23 = vadd.f32 %v1337_v12, %v4997_v44  ;;  %v1339_v24 = vpop.f32.mrb[9].mxu0  ;;  %v1410_v21 = vpop.f32.mrb[9].mxu1  ;;  %v4364_v28 = vadd.f32 %v1408_v20, %v5006_v2 }
 0x534   :  { %v4333_v25 = vadd.f32 %v1339_v24, %v4999_v45  ;;  %v4365_v27 = vadd.f32 %v1410_v21, %v5001_v46 }
 0x535   :  { %4501 = vtanh.f32 %v4332_v23 }
 0x536   :  { %4503 = vtanh.f32 %v4333_v25 }
 0x537   :  { %4505 = vtanh.f32 %v4365_v27 }
 0x538   :  { %4507 = vtanh.f32 %v4364_v28 }
 0x53f   :  { %v4502_v26 = vpop.eup %4501 }
 0x540   :  { %v1417_v35 = vmul.f32 0.5, %v4502_v26  ;;  %v4504_v36 = vpop.eup %4503 }
 0x541   :  { %v1419_v41 = vmul.f32 0.5, %v4504_v36  ;;  %v4506_v42 = vpop.eup %4505 }
 0x542   :  { %v1418_v37 = vadd.f32 0.5, %v1417_v35  ;;  %v4508_v59 = vpop.eup %4507 }
 0x543   :  { %v1420_v43 = vadd.f32 0.5, %v1419_v41  ;;  %v1421_v60 = vmul.f32 0.5, %v4508_v59 }
 0x544   :  { %v1424_v52 = vmul.f32 %v4506_v42, %v1418_v37 }
 0x545   :  { %v1423_v55 = vmul.f32 %v1420_v43, %v5135_v62  ;;  %v1422_v61 = vadd.f32 0.5, %v1421_v60 }
 0x547   :  { %v5177_v56 = vadd.f32 %v1424_v52, %v1423_v55 }
 0x549   :  { %4509 = vtanh.f32 %v5177_v56 }
 0x553   :  { %v4510_v63 = vpop.eup %4509 }
 0x554   :  { %v1427_v8 = vmul.f32 %v4510_v63, %v1422_v61 }
 0x556   :  { %1429 = vst [vmem:[#allocation9 + $0x20] sm:$0xff] %v1427_v8  ;;  %1500 = vmatmul.mubr.f32.vlgmr.msra.gmra.mrb[10].mxu0 %v1427_v8  ;;  %1571 = vmatmul.mubr.f32.vlgmr.msra.gmra.mrb[10].mxu1 %v1427_v8 }
 0x557   :  { %3687 = vmatpush1.bf16.msra.mxu0 %v4798_v33  ;;  %3719 = vmatpush1.bf16.msra.mxu1 %v4804_v39 }
 0x558   :  { %3689 = vmatprep.subr.bf16.mxu0 %v4806_v40  ;;  %3721 = vmatprep.subr.bf16.mxu1 %v4811_v48 }
 0x559   :  { %1663 = vmatprep.mubr.f32.mxu0 %v4722_v0  ;;  %1734 = vmatprep.mubr.f32.mxu1 %v4722_v0 }
 0x55b   :  { %3691 = vmatpush1.bf16.msra.mxu0 %v4815_v51  ;;  %3723 = vmatpush1.bf16.msra.mxu1 %v4819_v53 }
 0x55c   :  { %3693 = vmatprep.subr.bf16.mxu0 %v4821_v54  ;;  %3725 = vmatprep.subr.bf16.mxu1 %v4825_v58 }
 0x55f   :  { %3695 = vmatpush1.bf16.msra.mxu0 %v4831_v1  ;;  %3727 = vmatpush1.bf16.msra.mxu1 %v4835_v4 }
 0x560   :  { %3697 = vmatprep.subr.bf16.mxu0 %v4837_v5  ;;  %3729 = vmatprep.subr.bf16.mxu1 %v4841_v9 }
 0x563   :  { %3699 = vmatpush1.bf16.msra.mxu0 %v4847_v15  ;;  %3731 = vmatpush1.bf16.msra.mxu1 %v4851_v17 }
 0x564   :  { %3701 = vmatprep.subr.bf16.mxu0 %v4853_v18  ;;  %3733 = vmatprep.subr.bf16.mxu1 %v4857_v22 }
 0x567   :  { %3703 = vmatpush1.bf16.msra.mxu0 %v4863_v30  ;;  %3735 = vmatpush1.bf16.msra.mxu1 %v4867_v31 }
 0x568   :  { %3705 = vmatprep.subr.bf16.mxu0 %v4869_v32  ;;  %3737 = vmatprep.subr.bf16.mxu1 %v4873_v38 }
 0x56b   :  { %3707 = vmatpush1.bf16.msra.mxu0 %v4879_v47  ;;  %3739 = vmatpush1.bf16.msra.mxu1 %v4883_v49 }
 0x56c   :  { %3709 = vmatprep.subr.bf16.mxu0 %v4885_v50  ;;  %3741 = vmatprep.subr.bf16.mxu1 %v4889_v57 }
 0x56f   :  { %3711 = vmatpush1.bf16.msra.mxu0 %v4895_v3  ;;  %3743 = vmatpush1.bf16.msra.mxu1 %v4899_v6 }
 0x570   :  { %3713 = vmatprep.subr.bf16.mxu0 %v4901_v7  ;;  %3745 = vmatprep.subr.bf16.mxu1 %v4905_v11 }
 0x573   :  { %3715 = vmatpush1.bf16.msra.mxu0 %v4911_v16  ;;  %3747 = vmatpush1.bf16.msra.mxu1 %v4915_v19 }
 0x574   :  { %3749 = vmatprep.subr.bf16.mxu0 %v4796_v29  ;;  %3781 = vmatprep.subr.bf16.mxu1 %v4800_v34 }
 0x629   :  { %v1501_v62 = vpop.f32.mrb[10].mxu0  ;;  %v1572_v10 = vpop.f32.mrb[10].mxu1 }
 0x62a   :  { %v4334_v13 = vadd.f32 %v1501_v62, %v4997_v44  ;;  %v1503_v14 = vpop.f32.mrb[11].mxu0  ;;  %v1574_v12 = vpop.f32.mrb[11].mxu1  ;;  %v4366_v24 = vadd.f32 %v1572_v10, %v5006_v2 }
 0x62b   :  { %v4335_v20 = vadd.f32 %v1503_v14, %v4999_v45  ;;  %v4367_v23 = vadd.f32 %v1574_v12, %v5001_v46 }
 0x62c   :  { %4511 = vtanh.f32 %v4334_v13 }
 0x62d   :  { %4513 = vtanh.f32 %v4335_v20 }
 0x62e   :  { %4515 = vtanh.f32 %v4367_v23 }
 0x62f   :  { %4517 = vtanh.f32 %v4366_v24 }
 0x636   :  { %v4512_v21 = vpop.eup %4511 }
 0x637   :  { %v1581_v25 = vmul.f32 0.5, %v4512_v21  ;;  %v4514_v27 = vpop.eup %4513 }
 0x638   :  { %v1583_v26 = vmul.f32 0.5, %v4514_v27  ;;  %v4516_v35 = vpop.eup %4515 }
 0x639   :  { %v1582_v28 = vadd.f32 0.5, %v1581_v25  ;;  %v4518_v43 = vpop.eup %4517 }
 0x63a   :  { %v1584_v36 = vadd.f32 0.5, %v1583_v26  ;;  %v1585_v52 = vmul.f32 0.5, %v4518_v43 }
 0x63b   :  { %v1588_v37 = vmul.f32 %v4516_v35, %v1582_v28 }
 0x63c   :  { %v1587_v41 = vmul.f32 %v1584_v36, %v5177_v56  ;;  %v1586_v55 = vadd.f32 0.5, %v1585_v52 }
 0x63e   :  { %v5219_v42 = vadd.f32 %v1588_v37, %v1587_v41 }
 0x640   :  { %4519 = vtanh.f32 %v5219_v42 }
 0x64a   :  { %v4520_v59 = vpop.eup %4519 }
 0x64b   :  { %v1591_v60 = vmul.f32 %v4520_v59, %v1586_v55 }
 0x64d   :  { %1593 = vst [vmem:[#allocation9 + $0x28] sm:$0xff] %v1591_v60  ;;  %1664 = vmatmul.mubr.f32.vlgmr.msra.gmra.mrb[12].mxu0 %v1591_v60  ;;  %1735 = vmatmul.mubr.f32.vlgmr.msra.gmra.mrb[12].mxu1 %v1591_v60 }
 0x64e   :  { %3751 = vmatpush1.bf16.msra.mxu0 %v4798_v33  ;;  %3783 = vmatpush1.bf16.msra.mxu1 %v4804_v39 }
 0x64f   :  { %3753 = vmatprep.subr.bf16.mxu0 %v4806_v40  ;;  %3785 = vmatprep.subr.bf16.mxu1 %v4811_v48 }
 0x650   :  { %1827 = vmatprep.mubr.f32.mxu0 %v4722_v0  ;;  %1898 = vmatprep.mubr.f32.mxu1 %v4722_v0 }
 0x652   :  { %3755 = vmatpush1.bf16.msra.mxu0 %v4815_v51  ;;  %3787 = vmatpush1.bf16.msra.mxu1 %v4819_v53 }
 0x653   :  { %3757 = vmatprep.subr.bf16.mxu0 %v4821_v54  ;;  %3789 = vmatprep.subr.bf16.mxu1 %v4825_v58 }
 0x656   :  { %3759 = vmatpush1.bf16.msra.mxu0 %v4831_v1  ;;  %3791 = vmatpush1.bf16.msra.mxu1 %v4835_v4 }
 0x657   :  { %3761 = vmatprep.subr.bf16.mxu0 %v4837_v5  ;;  %3793 = vmatprep.subr.bf16.mxu1 %v4841_v9 }
 0x65a   :  { %3763 = vmatpush1.bf16.msra.mxu0 %v4847_v15  ;;  %3795 = vmatpush1.bf16.msra.mxu1 %v4851_v17 }
 0x65b   :  { %3765 = vmatprep.subr.bf16.mxu0 %v4853_v18  ;;  %3797 = vmatprep.subr.bf16.mxu1 %v4857_v22 }
 0x65e   :  { %3767 = vmatpush1.bf16.msra.mxu0 %v4863_v30  ;;  %3799 = vmatpush1.bf16.msra.mxu1 %v4867_v31 }
 0x65f   :  { %3769 = vmatprep.subr.bf16.mxu0 %v4869_v32  ;;  %3801 = vmatprep.subr.bf16.mxu1 %v4873_v38 }
 0x662   :  { %3771 = vmatpush1.bf16.msra.mxu0 %v4879_v47  ;;  %3803 = vmatpush1.bf16.msra.mxu1 %v4883_v49 }
 0x663   :  { %3773 = vmatprep.subr.bf16.mxu0 %v4885_v50  ;;  %3805 = vmatprep.subr.bf16.mxu1 %v4889_v57 }
 0x666   :  { %3775 = vmatpush1.bf16.msra.mxu0 %v4895_v3  ;;  %3807 = vmatpush1.bf16.msra.mxu1 %v4899_v6 }
 0x667   :  { %3777 = vmatprep.subr.bf16.mxu0 %v4901_v7  ;;  %3809 = vmatprep.subr.bf16.mxu1 %v4905_v11 }
 0x66a   :  { %3779 = vmatpush1.bf16.msra.mxu0 %v4911_v16  ;;  %3811 = vmatpush1.bf16.msra.mxu1 %v4915_v19 }
 0x66b   :  { %3813 = vmatprep.subr.bf16.mxu0 %v4796_v29  ;;  %3845 = vmatprep.subr.bf16.mxu1 %v4800_v34 }
 0x720   :  { %v1665_v56 = vpop.f32.mrb[12].mxu0  ;;  %v1736_v61 = vpop.f32.mrb[12].mxu1 }
 0x721   :  { %v4336_v63 = vadd.f32 %v1665_v56, %v4997_v44  ;;  %v1667_v8 = vpop.f32.mrb[13].mxu0  ;;  %v1738_v62 = vpop.f32.mrb[13].mxu1  ;;  %v4368_v14 = vadd.f32 %v1736_v61, %v5006_v2 }
 0x722   :  { %v4337_v10 = vadd.f32 %v1667_v8, %v4999_v45  ;;  %v4369_v13 = vadd.f32 %v1738_v62, %v5001_v46 }
 0x723   :  { %4521 = vtanh.f32 %v4336_v63 }
 0x724   :  { %4523 = vtanh.f32 %v4337_v10 }
 0x725   :  { %4525 = vtanh.f32 %v4369_v13 }
 0x726   :  { %4527 = vtanh.f32 %v4368_v14 }
 0x72d   :  { %v4522_v12 = vpop.eup %4521 }
 0x72e   :  { %v1745_v20 = vmul.f32 0.5, %v4522_v12  ;;  %v4524_v23 = vpop.eup %4523 }
 0x72f   :  { %v1747_v21 = vmul.f32 0.5, %v4524_v23  ;;  %v4526_v25 = vpop.eup %4525 }
 0x730   :  { %v1746_v24 = vadd.f32 0.5, %v1745_v20  ;;  %v4528_v36 = vpop.eup %4527 }
 0x731   :  { %v1748_v27 = vadd.f32 0.5, %v1747_v21  ;;  %v1749_v37 = vmul.f32 0.5, %v4528_v36 }
 0x732   :  { %v1752_v28 = vmul.f32 %v4526_v25, %v1746_v24 }
 0x733   :  { %v1751_v26 = vmul.f32 %v1748_v27, %v5219_v42  ;;  %v1750_v41 = vadd.f32 0.5, %v1749_v37 }
 0x735   :  { %v5261_v35 = vadd.f32 %v1752_v28, %v1751_v26 }
 0x737   :  { %4529 = vtanh.f32 %v5261_v35 }
 0x741   :  { %v4530_v43 = vpop.eup %4529 }
 0x742   :  { %v1755_v52 = vmul.f32 %v4530_v43, %v1750_v41 }
 0x744   :  { %1757 = vst [vmem:[#allocation9 + $0x30] sm:$0xff] %v1755_v52  ;;  %1828 = vmatmul.mubr.f32.vlgmr.msra.gmra.mrb[14].mxu0 %v1755_v52  ;;  %1899 = vmatmul.mubr.f32.vlgmr.msra.gmra.mrb[14].mxu1 %v1755_v52 }
 0x745   :  { %3815 = vmatpush1.bf16.msra.mxu0 %v4798_v33  ;;  %3847 = vmatpush1.bf16.msra.mxu1 %v4804_v39 }
 0x746   :  { %3817 = vmatprep.subr.bf16.mxu0 %v4806_v40  ;;  %3849 = vmatprep.subr.bf16.mxu1 %v4811_v48 }
 0x747   :  { %1991 = vmatprep.mubr.f32.mxu0 %v4722_v0  ;;  %2062 = vmatprep.mubr.f32.mxu1 %v4722_v0 }
 0x749   :  { %3819 = vmatpush1.bf16.msra.mxu0 %v4815_v51  ;;  %3851 = vmatpush1.bf16.msra.mxu1 %v4819_v53 }
 0x74a   :  { %3821 = vmatprep.subr.bf16.mxu0 %v4821_v54  ;;  %3853 = vmatprep.subr.bf16.mxu1 %v4825_v58 }
 0x74d   :  { %3823 = vmatpush1.bf16.msra.mxu0 %v4831_v1  ;;  %3855 = vmatpush1.bf16.msra.mxu1 %v4835_v4 }
 0x74e   :  { %3825 = vmatprep.subr.bf16.mxu0 %v4837_v5  ;;  %3857 = vmatprep.subr.bf16.mxu1 %v4841_v9 }
 0x751   :  { %3827 = vmatpush1.bf16.msra.mxu0 %v4847_v15  ;;  %3859 = vmatpush1.bf16.msra.mxu1 %v4851_v17 }
 0x752   :  { %3829 = vmatprep.subr.bf16.mxu0 %v4853_v18  ;;  %3861 = vmatprep.subr.bf16.mxu1 %v4857_v22 }
 0x755   :  { %3831 = vmatpush1.bf16.msra.mxu0 %v4863_v30  ;;  %3863 = vmatpush1.bf16.msra.mxu1 %v4867_v31 }
 0x756   :  { %3833 = vmatprep.subr.bf16.mxu0 %v4869_v32  ;;  %3865 = vmatprep.subr.bf16.mxu1 %v4873_v38 }
 0x759   :  { %3835 = vmatpush1.bf16.msra.mxu0 %v4879_v47  ;;  %3867 = vmatpush1.bf16.msra.mxu1 %v4883_v49 }
 0x75a   :  { %3837 = vmatprep.subr.bf16.mxu0 %v4885_v50  ;;  %3869 = vmatprep.subr.bf16.mxu1 %v4889_v57 }
 0x75d   :  { %3839 = vmatpush1.bf16.msra.mxu0 %v4895_v3  ;;  %3871 = vmatpush1.bf16.msra.mxu1 %v4899_v6 }
 0x75e   :  { %3841 = vmatprep.subr.bf16.mxu0 %v4901_v7  ;;  %3873 = vmatprep.subr.bf16.mxu1 %v4905_v11 }
 0x761   :  { %3843 = vmatpush1.bf16.msra.mxu0 %v4911_v16  ;;  %3875 = vmatpush1.bf16.msra.mxu1 %v4915_v19 }
 0x762   :  { %3877 = vmatprep.subr.bf16.mxu0 %v4796_v29  ;;  %3909 = vmatprep.subr.bf16.mxu1 %v4800_v34 }
 0x817   :  { %v1829_v42 = vpop.f32.mrb[14].mxu0  ;;  %v1900_v55 = vpop.f32.mrb[14].mxu1 }
 0x818   :  { %v4338_v59 = vadd.f32 %v1829_v42, %v4997_v44  ;;  %v1831_v60 = vpop.f32.mrb[15].mxu0  ;;  %v1902_v56 = vpop.f32.mrb[15].mxu1  ;;  %v4370_v8 = vadd.f32 %v1900_v55, %v5006_v2 }
 0x819   :  { %v4339_v61 = vadd.f32 %v1831_v60, %v4999_v45  ;;  %v4371_v63 = vadd.f32 %v1902_v56, %v5001_v46 }
 0x81a   :  { %4531 = vtanh.f32 %v4338_v59 }
 0x81b   :  { %4533 = vtanh.f32 %v4339_v61 }
 0x81c   :  { %4535 = vtanh.f32 %v4371_v63 }
 0x81d   :  { %4537 = vtanh.f32 %v4370_v8 }
 0x824   :  { %v4532_v62 = vpop.eup %4531 }
 0x825   :  { %v1909_v10 = vmul.f32 0.5, %v4532_v62  ;;  %v4534_v13 = vpop.eup %4533 }
 0x826   :  { %v1911_v12 = vmul.f32 0.5, %v4534_v13  ;;  %v4536_v20 = vpop.eup %4535 }
 0x827   :  { %v1910_v14 = vadd.f32 0.5, %v1909_v10  ;;  %v4538_v27 = vpop.eup %4537 }
 0x828   :  { %v1912_v23 = vadd.f32 0.5, %v1911_v12  ;;  %v1913_v28 = vmul.f32 0.5, %v4538_v27 }
 0x829   :  { %v1916_v24 = vmul.f32 %v4536_v20, %v1910_v14 }
 0x82a   :  { %v1915_v21 = vmul.f32 %v1912_v23, %v5261_v35  ;;  %v1914_v26 = vadd.f32 0.5, %v1913_v28 }
 0x82c   :  { %v5303_v25 = vadd.f32 %v1916_v24, %v1915_v21 }
 0x82e   :  { %4539 = vtanh.f32 %v5303_v25 }
 0x838   :  { %v4540_v36 = vpop.eup %4539 }
 0x839   :  { %v1919_v37 = vmul.f32 %v4540_v36, %v1914_v26 }
 0x83b   :  { %1921 = vst [vmem:[#allocation9 + $0x38] sm:$0xff] %v1919_v37  ;;  %1992 = vmatmul.mubr.f32.vlgmr.msra.gmra.mrb[16].mxu0 %v1919_v37  ;;  %2063 = vmatmul.mubr.f32.vlgmr.msra.gmra.mrb[16].mxu1 %v1919_v37 }
 0x83c   :  { %3879 = vmatpush1.bf16.msra.mxu0 %v4798_v33  ;;  %3911 = vmatpush1.bf16.msra.mxu1 %v4804_v39 }
 0x83d   :  { %3881 = vmatprep.subr.bf16.mxu0 %v4806_v40  ;;  %3913 = vmatprep.subr.bf16.mxu1 %v4811_v48 }
 0x83e   :  { %2155 = vmatprep.mubr.f32.mxu0 %v4722_v0  ;;  %2226 = vmatprep.mubr.f32.mxu1 %v4722_v0 }
 0x840   :  { %3883 = vmatpush1.bf16.msra.mxu0 %v4815_v51  ;;  %3915 = vmatpush1.bf16.msra.mxu1 %v4819_v53 }
 0x841   :  { %3885 = vmatprep.subr.bf16.mxu0 %v4821_v54  ;;  %3917 = vmatprep.subr.bf16.mxu1 %v4825_v58 }
 0x844   :  { %3887 = vmatpush1.bf16.msra.mxu0 %v4831_v1  ;;  %3919 = vmatpush1.bf16.msra.mxu1 %v4835_v4 }
 0x845   :  { %3889 = vmatprep.subr.bf16.mxu0 %v4837_v5  ;;  %3921 = vmatprep.subr.bf16.mxu1 %v4841_v9 }
 0x848   :  { %3891 = vmatpush1.bf16.msra.mxu0 %v4847_v15  ;;  %3923 = vmatpush1.bf16.msra.mxu1 %v4851_v17 }
 0x849   :  { %3893 = vmatprep.subr.bf16.mxu0 %v4853_v18  ;;  %3925 = vmatprep.subr.bf16.mxu1 %v4857_v22 }
 0x84c   :  { %3895 = vmatpush1.bf16.msra.mxu0 %v4863_v30  ;;  %3927 = vmatpush1.bf16.msra.mxu1 %v4867_v31 }
 0x84d   :  { %3897 = vmatprep.subr.bf16.mxu0 %v4869_v32  ;;  %3929 = vmatprep.subr.bf16.mxu1 %v4873_v38 }
 0x850   :  { %3899 = vmatpush1.bf16.msra.mxu0 %v4879_v47  ;;  %3931 = vmatpush1.bf16.msra.mxu1 %v4883_v49 }
 0x851   :  { %3901 = vmatprep.subr.bf16.mxu0 %v4885_v50  ;;  %3933 = vmatprep.subr.bf16.mxu1 %v4889_v57 }
 0x854   :  { %3903 = vmatpush1.bf16.msra.mxu0 %v4895_v3  ;;  %3935 = vmatpush1.bf16.msra.mxu1 %v4899_v6 }
 0x855   :  { %3905 = vmatprep.subr.bf16.mxu0 %v4901_v7  ;;  %3937 = vmatprep.subr.bf16.mxu1 %v4905_v11 }
 0x858   :  { %3907 = vmatpush1.bf16.msra.mxu0 %v4911_v16  ;;  %3939 = vmatpush1.bf16.msra.mxu1 %v4915_v19 }
 0x859   :  { %3941 = vmatprep.subr.bf16.mxu0 %v4796_v29  ;;  %3973 = vmatprep.subr.bf16.mxu1 %v4800_v34 }
 0x90e   :  { %v1993_v35 = vpop.f32.mrb[16].mxu0  ;;  %v2064_v41 = vpop.f32.mrb[16].mxu1 }
 0x90f   :  { %v4340_v43 = vadd.f32 %v1993_v35, %v4997_v44  ;;  %v1995_v52 = vpop.f32.mrb[17].mxu0  ;;  %v2066_v42 = vpop.f32.mrb[17].mxu1  ;;  %v4372_v60 = vadd.f32 %v2064_v41, %v5006_v2 }
 0x910   :  { %v4341_v55 = vadd.f32 %v1995_v52, %v4999_v45  ;;  %v4373_v59 = vadd.f32 %v2066_v42, %v5001_v46 }
 0x911   :  { %4541 = vtanh.f32 %v4340_v43 }
 0x912   :  { %4543 = vtanh.f32 %v4341_v55 }
 0x913   :  { %4545 = vtanh.f32 %v4373_v59 }
 0x914   :  { %4547 = vtanh.f32 %v4372_v60 }
 0x91b   :  { %v4542_v56 = vpop.eup %4541 }
 0x91c   :  { %v2073_v61 = vmul.f32 0.5, %v4542_v56  ;;  %v4544_v63 = vpop.eup %4543 }
 0x91d   :  { %v2075_v62 = vmul.f32 0.5, %v4544_v63  ;;  %v4546_v10 = vpop.eup %4545 }
 0x91e   :  { %v2074_v8 = vadd.f32 0.5, %v2073_v61  ;;  %v4548_v23 = vpop.eup %4547 }
 0x91f   :  { %v2076_v13 = vadd.f32 0.5, %v2075_v62  ;;  %v2077_v24 = vmul.f32 0.5, %v4548_v23 }
 0x920   :  { %v2080_v14 = vmul.f32 %v4546_v10, %v2074_v8 }
 0x921   :  { %v2079_v12 = vmul.f32 %v2076_v13, %v5303_v25  ;;  %v2078_v21 = vadd.f32 0.5, %v2077_v24 }
 0x923   :  { %v5345_v20 = vadd.f32 %v2080_v14, %v2079_v12 }
 0x925   :  { %4549 = vtanh.f32 %v5345_v20 }
 0x92f   :  { %v4550_v27 = vpop.eup %4549 }
 0x930   :  { %v2083_v28 = vmul.f32 %v4550_v27, %v2078_v21 }
 0x932   :  { %2085 = vst [vmem:[#allocation9 + $0x40] sm:$0xff] %v2083_v28  ;;  %2156 = vmatmul.mubr.f32.vlgmr.msra.gmra.mrb[18].mxu0 %v2083_v28  ;;  %2227 = vmatmul.mubr.f32.vlgmr.msra.gmra.mrb[18].mxu1 %v2083_v28 }
 0x933   :  { %3943 = vmatpush1.bf16.msra.mxu0 %v4798_v33  ;;  %3975 = vmatpush1.bf16.msra.mxu1 %v4804_v39 }
 0x934   :  { %3945 = vmatprep.subr.bf16.mxu0 %v4806_v40  ;;  %3977 = vmatprep.subr.bf16.mxu1 %v4811_v48 }
 0x935   :  { %2319 = vmatprep.mubr.f32.mxu0 %v4722_v0  ;;  %2390 = vmatprep.mubr.f32.mxu1 %v4722_v0 }
 0x937   :  { %3947 = vmatpush1.bf16.msra.mxu0 %v4815_v51  ;;  %3979 = vmatpush1.bf16.msra.mxu1 %v4819_v53 }
 0x938   :  { %3949 = vmatprep.subr.bf16.mxu0 %v4821_v54  ;;  %3981 = vmatprep.subr.bf16.mxu1 %v4825_v58 }
 0x93b   :  { %3951 = vmatpush1.bf16.msra.mxu0 %v4831_v1  ;;  %3983 = vmatpush1.bf16.msra.mxu1 %v4835_v4 }
 0x93c   :  { %3953 = vmatprep.subr.bf16.mxu0 %v4837_v5  ;;  %3985 = vmatprep.subr.bf16.mxu1 %v4841_v9 }
 0x93f   :  { %3955 = vmatpush1.bf16.msra.mxu0 %v4847_v15  ;;  %3987 = vmatpush1.bf16.msra.mxu1 %v4851_v17 }
 0x940   :  { %3957 = vmatprep.subr.bf16.mxu0 %v4853_v18  ;;  %3989 = vmatprep.subr.bf16.mxu1 %v4857_v22 }
 0x943   :  { %3959 = vmatpush1.bf16.msra.mxu0 %v4863_v30  ;;  %3991 = vmatpush1.bf16.msra.mxu1 %v4867_v31 }
 0x944   :  { %3961 = vmatprep.subr.bf16.mxu0 %v4869_v32  ;;  %3993 = vmatprep.subr.bf16.mxu1 %v4873_v38 }
 0x947   :  { %3963 = vmatpush1.bf16.msra.mxu0 %v4879_v47  ;;  %3995 = vmatpush1.bf16.msra.mxu1 %v4883_v49 }
 0x948   :  { %3965 = vmatprep.subr.bf16.mxu0 %v4885_v50  ;;  %3997 = vmatprep.subr.bf16.mxu1 %v4889_v57 }
 0x94b   :  { %3967 = vmatpush1.bf16.msra.mxu0 %v4895_v3  ;;  %3999 = vmatpush1.bf16.msra.mxu1 %v4899_v6 }
 0x94c   :  { %3969 = vmatprep.subr.bf16.mxu0 %v4901_v7  ;;  %4001 = vmatprep.subr.bf16.mxu1 %v4905_v11 }
 0x94f   :  { %3971 = vmatpush1.bf16.msra.mxu0 %v4911_v16  ;;  %4003 = vmatpush1.bf16.msra.mxu1 %v4915_v19 }
 0x950   :  { %4005 = vmatprep.subr.bf16.mxu0 %v4796_v29  ;;  %4037 = vmatprep.subr.bf16.mxu1 %v4800_v34 }
 0xa05   :  { %v2157_v25 = vpop.f32.mrb[18].mxu0  ;;  %v2228_v26 = vpop.f32.mrb[18].mxu1 }
 0xa06   :  { %v4342_v36 = vadd.f32 %v2157_v25, %v4997_v44  ;;  %v2159_v37 = vpop.f32.mrb[19].mxu0  ;;  %v2230_v35 = vpop.f32.mrb[19].mxu1  ;;  %v4374_v52 = vadd.f32 %v2228_v26, %v5006_v2 }
 0xa07   :  { %v4343_v41 = vadd.f32 %v2159_v37, %v4999_v45  ;;  %v4375_v43 = vadd.f32 %v2230_v35, %v5001_v46 }
 0xa08   :  { %4551 = vtanh.f32 %v4342_v36 }
 0xa09   :  { %4553 = vtanh.f32 %v4343_v41 }
 0xa0a   :  { %4555 = vtanh.f32 %v4375_v43 }
 0xa0b   :  { %4557 = vtanh.f32 %v4374_v52 }
 0xa12   :  { %v4552_v42 = vpop.eup %4551 }
 0xa13   :  { %v2237_v55 = vmul.f32 0.5, %v4552_v42  ;;  %v4554_v59 = vpop.eup %4553 }
 0xa14   :  { %v2239_v56 = vmul.f32 0.5, %v4554_v59  ;;  %v4556_v61 = vpop.eup %4555 }
 0xa15   :  { %v2238_v60 = vadd.f32 0.5, %v2237_v55  ;;  %v4558_v13 = vpop.eup %4557 }
 0xa16   :  { %v2240_v63 = vadd.f32 0.5, %v2239_v56  ;;  %v2241_v14 = vmul.f32 0.5, %v4558_v13 }
 0xa17   :  { %v2244_v8 = vmul.f32 %v4556_v61, %v2238_v60 }
 0xa18   :  { %v2243_v62 = vmul.f32 %v2240_v63, %v5345_v20  ;;  %v2242_v12 = vadd.f32 0.5, %v2241_v14 }
 0xa1a   :  { %v5387_v10 = vadd.f32 %v2244_v8, %v2243_v62 }
 0xa1c   :  { %4559 = vtanh.f32 %v5387_v10 }
 0xa26   :  { %v4560_v23 = vpop.eup %4559 }
 0xa27   :  { %v2247_v24 = vmul.f32 %v4560_v23, %v2242_v12 }
 0xa29   :  { %2249 = vst [vmem:[#allocation9 + $0x48] sm:$0xff] %v2247_v24  ;;  %2320 = vmatmul.mubr.f32.vlgmr.msra.gmra.mrb[20].mxu0 %v2247_v24  ;;  %2391 = vmatmul.mubr.f32.vlgmr.msra.gmra.mrb[20].mxu1 %v2247_v24 }
 0xa2a   :  { %4007 = vmatpush1.bf16.msra.mxu0 %v4798_v33  ;;  %4039 = vmatpush1.bf16.msra.mxu1 %v4804_v39 }
 0xa2b   :  { %4009 = vmatprep.subr.bf16.mxu0 %v4806_v40  ;;  %4041 = vmatprep.subr.bf16.mxu1 %v4811_v48 }
 0xa2c   :  { %2483 = vmatprep.mubr.f32.mxu0 %v4722_v0  ;;  %2554 = vmatprep.mubr.f32.mxu1 %v4722_v0 }
 0xa2e   :  { %4011 = vmatpush1.bf16.msra.mxu0 %v4815_v51  ;;  %4043 = vmatpush1.bf16.msra.mxu1 %v4819_v53 }
 0xa2f   :  { %4013 = vmatprep.subr.bf16.mxu0 %v4821_v54  ;;  %4045 = vmatprep.subr.bf16.mxu1 %v4825_v58 }
 0xa32   :  { %4015 = vmatpush1.bf16.msra.mxu0 %v4831_v1  ;;  %4047 = vmatpush1.bf16.msra.mxu1 %v4835_v4 }
 0xa33   :  { %4017 = vmatprep.subr.bf16.mxu0 %v4837_v5  ;;  %4049 = vmatprep.subr.bf16.mxu1 %v4841_v9 }
 0xa36   :  { %4019 = vmatpush1.bf16.msra.mxu0 %v4847_v15  ;;  %4051 = vmatpush1.bf16.msra.mxu1 %v4851_v17 }
 0xa37   :  { %4021 = vmatprep.subr.bf16.mxu0 %v4853_v18  ;;  %4053 = vmatprep.subr.bf16.mxu1 %v4857_v22 }
 0xa3a   :  { %4023 = vmatpush1.bf16.msra.mxu0 %v4863_v30  ;;  %4055 = vmatpush1.bf16.msra.mxu1 %v4867_v31 }
 0xa3b   :  { %4025 = vmatprep.subr.bf16.mxu0 %v4869_v32  ;;  %4057 = vmatprep.subr.bf16.mxu1 %v4873_v38 }
 0xa3e   :  { %4027 = vmatpush1.bf16.msra.mxu0 %v4879_v47  ;;  %4059 = vmatpush1.bf16.msra.mxu1 %v4883_v49 }
 0xa3f   :  { %4029 = vmatprep.subr.bf16.mxu0 %v4885_v50  ;;  %4061 = vmatprep.subr.bf16.mxu1 %v4889_v57 }
 0xa42   :  { %4031 = vmatpush1.bf16.msra.mxu0 %v4895_v3  ;;  %4063 = vmatpush1.bf16.msra.mxu1 %v4899_v6 }
 0xa43   :  { %4033 = vmatprep.subr.bf16.mxu0 %v4901_v7  ;;  %4065 = vmatprep.subr.bf16.mxu1 %v4905_v11 }
 0xa46   :  { %4035 = vmatpush1.bf16.msra.mxu0 %v4911_v16  ;;  %4067 = vmatpush1.bf16.msra.mxu1 %v4915_v19 }
 0xa47   :  { %4069 = vmatprep.subr.bf16.mxu0 %v4796_v29  ;;  %4101 = vmatprep.subr.bf16.mxu1 %v4800_v34 }
 0xafc   :  { %v2321_v20 = vpop.f32.mrb[20].mxu0  ;;  %v2392_v21 = vpop.f32.mrb[20].mxu1 }
 0xafd   :  { %v4344_v27 = vadd.f32 %v2321_v20, %v4997_v44  ;;  %v2323_v28 = vpop.f32.mrb[21].mxu0  ;;  %v2394_v25 = vpop.f32.mrb[21].mxu1  ;;  %v4376_v37 = vadd.f32 %v2392_v21, %v5006_v2 }
 0xafe   :  { %v4345_v26 = vadd.f32 %v2323_v28, %v4999_v45  ;;  %v4377_v36 = vadd.f32 %v2394_v25, %v5001_v46 }
 0xaff   :  { %4561 = vtanh.f32 %v4344_v27 }
 0xb00   :  { %4563 = vtanh.f32 %v4345_v26 }
 0xb01   :  { %4565 = vtanh.f32 %v4377_v36 }
 0xb02   :  { %4567 = vtanh.f32 %v4376_v37 }
 0xb09   :  { %v4562_v35 = vpop.eup %4561 }
 0xb0a   :  { %v2401_v41 = vmul.f32 0.5, %v4562_v35  ;;  %v4564_v43 = vpop.eup %4563 }
 0xb0b   :  { %v2403_v42 = vmul.f32 0.5, %v4564_v43  ;;  %v4566_v55 = vpop.eup %4565 }
 0xb0c   :  { %v2402_v52 = vadd.f32 0.5, %v2401_v41  ;;  %v4568_v63 = vpop.eup %4567 }
 0xb0d   :  { %v2404_v59 = vadd.f32 0.5, %v2403_v42  ;;  %v2405_v8 = vmul.f32 0.5, %v4568_v63 }
 0xb0e   :  { %v2408_v60 = vmul.f32 %v4566_v55, %v2402_v52 }
 0xb0f   :  { %v2407_v56 = vmul.f32 %v2404_v59, %v5387_v10  ;;  %v2406_v62 = vadd.f32 0.5, %v2405_v8 }
 0xb11   :  { %v5429_v61 = vadd.f32 %v2408_v60, %v2407_v56 }
 0xb13   :  { %4569 = vtanh.f32 %v5429_v61 }
 0xb1d   :  { %v4570_v13 = vpop.eup %4569 }
 0xb1e   :  { %v2411_v14 = vmul.f32 %v4570_v13, %v2406_v62 }
 0xb20   :  { %2413 = vst [vmem:[#allocation9 + $0x50] sm:$0xff] %v2411_v14  ;;  %2484 = vmatmul.mubr.f32.vlgmr.msra.gmra.mrb[22].mxu0 %v2411_v14  ;;  %2555 = vmatmul.mubr.f32.vlgmr.msra.gmra.mrb[22].mxu1 %v2411_v14 }
 0xb21   :  { %4071 = vmatpush1.bf16.msra.mxu0 %v4798_v33  ;;  %4103 = vmatpush1.bf16.msra.mxu1 %v4804_v39 }
 0xb22   :  { %4073 = vmatprep.subr.bf16.mxu0 %v4806_v40  ;;  %4105 = vmatprep.subr.bf16.mxu1 %v4811_v48 }
 0xb23   :  { %2647 = vmatprep.mubr.f32.mxu0 %v4722_v0  ;;  %2718 = vmatprep.mubr.f32.mxu1 %v4722_v0 }
 0xb25   :  { %4075 = vmatpush1.bf16.msra.mxu0 %v4815_v51  ;;  %4107 = vmatpush1.bf16.msra.mxu1 %v4819_v53 }
 0xb26   :  { %4077 = vmatprep.subr.bf16.mxu0 %v4821_v54  ;;  %4109 = vmatprep.subr.bf16.mxu1 %v4825_v58 }
 0xb29   :  { %4079 = vmatpush1.bf16.msra.mxu0 %v4831_v1  ;;  %4111 = vmatpush1.bf16.msra.mxu1 %v4835_v4 }
 0xb2a   :  { %4081 = vmatprep.subr.bf16.mxu0 %v4837_v5  ;;  %4113 = vmatprep.subr.bf16.mxu1 %v4841_v9 }
 0xb2d   :  { %4083 = vmatpush1.bf16.msra.mxu0 %v4847_v15  ;;  %4115 = vmatpush1.bf16.msra.mxu1 %v4851_v17 }
 0xb2e   :  { %4085 = vmatprep.subr.bf16.mxu0 %v4853_v18  ;;  %4117 = vmatprep.subr.bf16.mxu1 %v4857_v22 }
 0xb31   :  { %4087 = vmatpush1.bf16.msra.mxu0 %v4863_v30  ;;  %4119 = vmatpush1.bf16.msra.mxu1 %v4867_v31 }
 0xb32   :  { %4089 = vmatprep.subr.bf16.mxu0 %v4869_v32  ;;  %4121 = vmatprep.subr.bf16.mxu1 %v4873_v38 }
 0xb35   :  { %4091 = vmatpush1.bf16.msra.mxu0 %v4879_v47  ;;  %4123 = vmatpush1.bf16.msra.mxu1 %v4883_v49 }
 0xb36   :  { %4093 = vmatprep.subr.bf16.mxu0 %v4885_v50  ;;  %4125 = vmatprep.subr.bf16.mxu1 %v4889_v57 }
 0xb39   :  { %4095 = vmatpush1.bf16.msra.mxu0 %v4895_v3  ;;  %4127 = vmatpush1.bf16.msra.mxu1 %v4899_v6 }
 0xb3a   :  { %4097 = vmatprep.subr.bf16.mxu0 %v4901_v7  ;;  %4129 = vmatprep.subr.bf16.mxu1 %v4905_v11 }
 0xb3d   :  { %4099 = vmatpush1.bf16.msra.mxu0 %v4911_v16  ;;  %4131 = vmatpush1.bf16.msra.mxu1 %v4915_v19 }
 0xb3e   :  { %4133 = vmatprep.subr.bf16.mxu0 %v4796_v29  ;;  %4165 = vmatprep.subr.bf16.mxu1 %v4800_v34 }
 0xbf3   :  { %v2485_v10 = vpop.f32.mrb[22].mxu0  ;;  %v2556_v12 = vpop.f32.mrb[22].mxu1 }
 0xbf4   :  { %v4346_v23 = vadd.f32 %v2485_v10, %v4997_v44  ;;  %v2487_v24 = vpop.f32.mrb[23].mxu0  ;;  %v2558_v20 = vpop.f32.mrb[23].mxu1  ;;  %v4378_v28 = vadd.f32 %v2556_v12, %v5006_v2 }
 0xbf5   :  { %v4347_v21 = vadd.f32 %v2487_v24, %v4999_v45  ;;  %v4379_v27 = vadd.f32 %v2558_v20, %v5001_v46 }
 0xbf6   :  { %4571 = vtanh.f32 %v4346_v23 }
 0xbf7   :  { %4573 = vtanh.f32 %v4347_v21 }
 0xbf8   :  { %4575 = vtanh.f32 %v4379_v27 }
 0xbf9   :  { %4577 = vtanh.f32 %v4378_v28 }
 0xc00   :  { %v4572_v25 = vpop.eup %4571 }
 0xc01   :  { %v2565_v26 = vmul.f32 0.5, %v4572_v25  ;;  %v4574_v36 = vpop.eup %4573 }
 0xc02   :  { %v2567_v35 = vmul.f32 0.5, %v4574_v36  ;;  %v4576_v41 = vpop.eup %4575 }
 0xc03   :  { %v2566_v37 = vadd.f32 0.5, %v2565_v26  ;;  %v4578_v59 = vpop.eup %4577 }
 0xc04   :  { %v2568_v43 = vadd.f32 0.5, %v2567_v35  ;;  %v2569_v60 = vmul.f32 0.5, %v4578_v59 }
 0xc05   :  { %v2572_v52 = vmul.f32 %v4576_v41, %v2566_v37 }
 0xc06   :  { %v2571_v42 = vmul.f32 %v2568_v43, %v5429_v61  ;;  %v2570_v56 = vadd.f32 0.5, %v2569_v60 }
 0xc08   :  { %v5471_v55 = vadd.f32 %v2572_v52, %v2571_v42 }
 0xc0a   :  { %4579 = vtanh.f32 %v5471_v55 }
 0xc14   :  { %v4580_v63 = vpop.eup %4579 }
 0xc15   :  { %v2575_v8 = vmul.f32 %v4580_v63, %v2570_v56 }
 0xc17   :  { %2577 = vst [vmem:[#allocation9 + $0x58] sm:$0xff] %v2575_v8  ;;  %2648 = vmatmul.mubr.f32.vlgmr.msra.gmra.mrb[24].mxu0 %v2575_v8  ;;  %2719 = vmatmul.mubr.f32.vlgmr.msra.gmra.mrb[24].mxu1 %v2575_v8 }
 0xc18   :  { %4135 = vmatpush1.bf16.msra.mxu0 %v4798_v33  ;;  %4167 = vmatpush1.bf16.msra.mxu1 %v4804_v39 }
 0xc19   :  { %4137 = vmatprep.subr.bf16.mxu0 %v4806_v40  ;;  %4169 = vmatprep.subr.bf16.mxu1 %v4811_v48 }
 0xc1a   :  { %2811 = vmatprep.mubr.f32.mxu0 %v4722_v0  ;;  %2882 = vmatprep.mubr.f32.mxu1 %v4722_v0 }
 0xc1c   :  { %4139 = vmatpush1.bf16.msra.mxu0 %v4815_v51  ;;  %4171 = vmatpush1.bf16.msra.mxu1 %v4819_v53 }
 0xc1d   :  { %4141 = vmatprep.subr.bf16.mxu0 %v4821_v54  ;;  %4173 = vmatprep.subr.bf16.mxu1 %v4825_v58 }
 0xc20   :  { %4143 = vmatpush1.bf16.msra.mxu0 %v4831_v1  ;;  %4175 = vmatpush1.bf16.msra.mxu1 %v4835_v4 }
 0xc21   :  { %4145 = vmatprep.subr.bf16.mxu0 %v4837_v5  ;;  %4177 = vmatprep.subr.bf16.mxu1 %v4841_v9 }
 0xc24   :  { %4147 = vmatpush1.bf16.msra.mxu0 %v4847_v15  ;;  %4179 = vmatpush1.bf16.msra.mxu1 %v4851_v17 }
 0xc25   :  { %4149 = vmatprep.subr.bf16.mxu0 %v4853_v18  ;;  %4181 = vmatprep.subr.bf16.mxu1 %v4857_v22 }
 0xc28   :  { %4151 = vmatpush1.bf16.msra.mxu0 %v4863_v30  ;;  %4183 = vmatpush1.bf16.msra.mxu1 %v4867_v31 }
 0xc29   :  { %4153 = vmatprep.subr.bf16.mxu0 %v4869_v32  ;;  %4185 = vmatprep.subr.bf16.mxu1 %v4873_v38 }
 0xc2c   :  { %4155 = vmatpush1.bf16.msra.mxu0 %v4879_v47  ;;  %4187 = vmatpush1.bf16.msra.mxu1 %v4883_v49 }
 0xc2d   :  { %4157 = vmatprep.subr.bf16.mxu0 %v4885_v50  ;;  %4189 = vmatprep.subr.bf16.mxu1 %v4889_v57 }
 0xc30   :  { %4159 = vmatpush1.bf16.msra.mxu0 %v4895_v3  ;;  %4191 = vmatpush1.bf16.msra.mxu1 %v4899_v6 }
 0xc31   :  { %4161 = vmatprep.subr.bf16.mxu0 %v4901_v7  ;;  %4193 = vmatprep.subr.bf16.mxu1 %v4905_v11 }
 0xc34   :  { %4163 = vmatpush1.bf16.msra.mxu0 %v4911_v16  ;;  %4195 = vmatpush1.bf16.msra.mxu1 %v4915_v19 }
 0xc35   :  { %4197 = vmatprep.subr.bf16.mxu0 %v4796_v29  ;;  %4229 = vmatprep.subr.bf16.mxu1 %v4800_v34 }
 0xcea   :  { %v2649_v61 = vpop.f32.mrb[24].mxu0  ;;  %v2720_v62 = vpop.f32.mrb[24].mxu1 }
 0xceb   :  { %v4348_v13 = vadd.f32 %v2649_v61, %v4997_v44  ;;  %v2651_v14 = vpop.f32.mrb[25].mxu0  ;;  %v2722_v10 = vpop.f32.mrb[25].mxu1  ;;  %v4380_v24 = vadd.f32 %v2720_v62, %v5006_v2 }
 0xcec   :  { %v4349_v12 = vadd.f32 %v2651_v14, %v4999_v45  ;;  %v4381_v23 = vadd.f32 %v2722_v10, %v5001_v46 }
 0xced   :  { %4581 = vtanh.f32 %v4348_v13 }
 0xcee   :  { %4583 = vtanh.f32 %v4349_v12 }
 0xcef   :  { %4585 = vtanh.f32 %v4381_v23 }
 0xcf0   :  { %4587 = vtanh.f32 %v4380_v24 }
 0xcf7   :  { %v4582_v20 = vpop.eup %4581 }
 0xcf8   :  { %v2729_v21 = vmul.f32 0.5, %v4582_v20  ;;  %v4584_v27 = vpop.eup %4583 }
 0xcf9   :  { %v2731_v25 = vmul.f32 0.5, %v4584_v27  ;;  %v4586_v26 = vpop.eup %4585 }
 0xcfa   :  { %v2730_v28 = vadd.f32 0.5, %v2729_v21  ;;  %v4588_v43 = vpop.eup %4587 }
 0xcfb   :  { %v2732_v36 = vadd.f32 0.5, %v2731_v25  ;;  %v2733_v52 = vmul.f32 0.5, %v4588_v43 }
 0xcfc   :  { %v2736_v37 = vmul.f32 %v4586_v26, %v2730_v28 }
 0xcfd   :  { %v2735_v35 = vmul.f32 %v2732_v36, %v5471_v55  ;;  %v2734_v42 = vadd.f32 0.5, %v2733_v52 }
 0xcff   :  { %v5513_v41 = vadd.f32 %v2736_v37, %v2735_v35 }
 0xd01   :  { %4589 = vtanh.f32 %v5513_v41 }
 0xd0b   :  { %v4590_v59 = vpop.eup %4589 }
 0xd0c   :  { %v2739_v60 = vmul.f32 %v4590_v59, %v2734_v42 }
 0xd0e   :  { %2741 = vst [vmem:[#allocation9 + $0x60] sm:$0xff] %v2739_v60  ;;  %2812 = vmatmul.mubr.f32.vlgmr.msra.gmra.mrb[26].mxu0 %v2739_v60  ;;  %2883 = vmatmul.mubr.f32.vlgmr.msra.gmra.mrb[26].mxu1 %v2739_v60 }
 0xd0f   :  { %4199 = vmatpush1.bf16.msra.mxu0 %v4798_v33  ;;  %4231 = vmatpush1.bf16.msra.mxu1 %v4804_v39 }
 0xd10   :  { %4201 = vmatprep.subr.bf16.mxu0 %v4806_v40  ;;  %4233 = vmatprep.subr.bf16.mxu1 %v4811_v48 }
 0xd11   :  { %2975 = vmatprep.mubr.f32.mxu0 %v4722_v0  ;;  %3046 = vmatprep.mubr.f32.mxu1 %v4722_v0 }
 0xd13   :  { %4203 = vmatpush1.bf16.msra.mxu0 %v4815_v51  ;;  %4235 = vmatpush1.bf16.msra.mxu1 %v4819_v53 }
 0xd14   :  { %4205 = vmatprep.subr.bf16.mxu0 %v4821_v54  ;;  %4237 = vmatprep.subr.bf16.mxu1 %v4825_v58 }
 0xd17   :  { %4207 = vmatpush1.bf16.msra.mxu0 %v4831_v1  ;;  %4239 = vmatpush1.bf16.msra.mxu1 %v4835_v4 }
 0xd18   :  { %4209 = vmatprep.subr.bf16.mxu0 %v4837_v5  ;;  %4241 = vmatprep.subr.bf16.mxu1 %v4841_v9 }
 0xd1b   :  { %4211 = vmatpush1.bf16.msra.mxu0 %v4847_v15  ;;  %4243 = vmatpush1.bf16.msra.mxu1 %v4851_v17 }
 0xd1c   :  { %4213 = vmatprep.subr.bf16.mxu0 %v4853_v18  ;;  %4245 = vmatprep.subr.bf16.mxu1 %v4857_v22 }
 0xd1f   :  { %4215 = vmatpush1.bf16.msra.mxu0 %v4863_v30  ;;  %4247 = vmatpush1.bf16.msra.mxu1 %v4867_v31 }
 0xd20   :  { %4217 = vmatprep.subr.bf16.mxu0 %v4869_v32  ;;  %4249 = vmatprep.subr.bf16.mxu1 %v4873_v38 }
 0xd23   :  { %4219 = vmatpush1.bf16.msra.mxu0 %v4879_v47  ;;  %4251 = vmatpush1.bf16.msra.mxu1 %v4883_v49 }
 0xd24   :  { %4221 = vmatprep.subr.bf16.mxu0 %v4885_v50  ;;  %4253 = vmatprep.subr.bf16.mxu1 %v4889_v57 }
 0xd27   :  { %4223 = vmatpush1.bf16.msra.mxu0 %v4895_v3  ;;  %4255 = vmatpush1.bf16.msra.mxu1 %v4899_v6 }
 0xd28   :  { %4225 = vmatprep.subr.bf16.mxu0 %v4901_v7  ;;  %4257 = vmatprep.subr.bf16.mxu1 %v4905_v11 }
 0xd2b   :  { %4227 = vmatpush1.bf16.msra.mxu0 %v4911_v16  ;;  %4259 = vmatpush1.bf16.msra.mxu1 %v4915_v19 }
 0xd2c   :  { %4261 = vmatprep.subr.bf16.mxu0 %v4796_v29  ;;  %4293 = vmatprep.subr.bf16.mxu1 %v4800_v34 }
 0xde1   :  { %v2813_v55 = vpop.f32.mrb[26].mxu0  ;;  %v2884_v56 = vpop.f32.mrb[26].mxu1 }
 0xde2   :  { %v4350_v63 = vadd.f32 %v2813_v55, %v4997_v44  ;;  %v2815_v8 = vpop.f32.mrb[27].mxu0  ;;  %v2886_v61 = vpop.f32.mrb[27].mxu1  ;;  %v4382_v14 = vadd.f32 %v2884_v56, %v5006_v2 }
 0xde3   :  { %v4351_v62 = vadd.f32 %v2815_v8, %v4999_v45  ;;  %v4383_v13 = vadd.f32 %v2886_v61, %v5001_v46 }
 0xde4   :  { %4591 = vtanh.f32 %v4350_v63 }
 0xde5   :  { %4593 = vtanh.f32 %v4351_v62 }
 0xde6   :  { %4595 = vtanh.f32 %v4383_v13 }
 0xde7   :  { %4597 = vtanh.f32 %v4382_v14 }
 0xdee   :  { %v4592_v10 = vpop.eup %4591 }
 0xdef   :  { %v2893_v12 = vmul.f32 0.5, %v4592_v10  ;;  %v4594_v29 = vpop.eup %4593 }
 0xdf0   :  { %v2895_v34 = vmul.f32 0.5, %v4594_v29  ;;  %v4596_v24 = vpop.eup %4595 }
 0xdf1   :  { %v2894_v23 = vadd.f32 0.5, %v2893_v12  ;;  %v4598_v25 = vpop.eup %4597 }
 0xdf2   :  { %v2896_v20 = vadd.f32 0.5, %v2895_v34  ;;  %v2897_v26 = vmul.f32 0.5, %v4598_v25 }
 0xdf3   :  { %v2900_v21 = vmul.f32 %v4596_v24, %v2894_v23 }
 0xdf4   :  { %v2899_v27 = vmul.f32 %v2896_v20, %v5513_v41  ;;  %v2898_v36 = vadd.f32 0.5, %v2897_v26 }
 0xdf6   :  { %v2901_v28 = vadd.f32 %v2900_v21, %v2899_v27 }
 0xdf8   :  { %4599 = vtanh.f32 %v2901_v28 }
 0xe02   :  { %v4600_v37 = vpop.eup %4599 }
 0xe03   :  { %v2903_v35 = vmul.f32 %v4600_v37, %v2898_v36 }
 0xe05   :  { %2905 = vst [vmem:[#allocation9 + $0x68] sm:$0xff] %v2903_v35  ;;  %2976 = vmatmul.mubr.f32.vlgmr.msra.gmra.mrb[28].mxu0 %v2903_v35  ;;  %3047 = vmatmul.mubr.f32.vlgmr.msra.gmra.mrb[28].mxu1 %v2903_v35 }
 0xe06   :  { %4263 = vmatpush1.bf16.msra.mxu0 %v4798_v33  ;;  %4295 = vmatpush1.bf16.msra.mxu1 %v4804_v39 }
 0xe07   :  { %4265 = vmatprep.subr.bf16.mxu0 %v4806_v40  ;;  %4297 = vmatprep.subr.bf16.mxu1 %v4811_v48 }
 0xe08   :  { %3139 = vmatprep.mubr.f32.mxu0 %v4722_v0  ;;  %3210 = vmatprep.mubr.f32.mxu1 %v4722_v0 }
 0xe0a   :  { %4267 = vmatpush1.bf16.msra.mxu0 %v4815_v51  ;;  %4299 = vmatpush1.bf16.msra.mxu1 %v4819_v53 }
 0xe0b   :  { %4269 = vmatprep.subr.bf16.mxu0 %v4821_v54  ;;  %4301 = vmatprep.subr.bf16.mxu1 %v4825_v58 }
 0xe0e   :  { %4271 = vmatpush1.bf16.msra.mxu0 %v4831_v1  ;;  %4303 = vmatpush1.bf16.msra.mxu1 %v4835_v4 }
 0xe0f   :  { %4273 = vmatprep.subr.bf16.mxu0 %v4837_v5  ;;  %4305 = vmatprep.subr.bf16.mxu1 %v4841_v9 }
 0xe12   :  { %4275 = vmatpush1.bf16.msra.mxu0 %v4847_v15  ;;  %4307 = vmatpush1.bf16.msra.mxu1 %v4851_v17 }
 0xe13   :  { %4277 = vmatprep.subr.bf16.mxu0 %v4853_v18  ;;  %4309 = vmatprep.subr.bf16.mxu1 %v4857_v22 }
 0xe16   :  { %4279 = vmatpush1.bf16.msra.mxu0 %v4863_v30  ;;  %4311 = vmatpush1.bf16.msra.mxu1 %v4867_v31 }
 0xe17   :  { %4281 = vmatprep.subr.bf16.mxu0 %v4869_v32  ;;  %4313 = vmatprep.subr.bf16.mxu1 %v4873_v38 }
 0xe1a   :  { %4283 = vmatpush1.bf16.msra.mxu0 %v4879_v47  ;;  %4315 = vmatpush1.bf16.msra.mxu1 %v4883_v49 }
 0xe1b   :  { %4285 = vmatprep.subr.bf16.mxu0 %v4885_v50  ;;  %4317 = vmatprep.subr.bf16.mxu1 %v4889_v57 }
 0xe1e   :  { %4287 = vmatpush1.bf16.msra.mxu0 %v4895_v3  ;;  %4319 = vmatpush1.bf16.msra.mxu1 %v4899_v6 }
 0xe1f   :  { %4289 = vmatprep.subr.bf16.mxu0 %v4901_v7  ;;  %4321 = vmatprep.subr.bf16.mxu1 %v4905_v11 }
 0xe22   :  { %4291 = vmatpush1.bf16.msra.mxu0 %v4911_v16  ;;  %4323 = vmatpush1.bf16.msra.mxu1 %v4915_v19 }
 0xed8   :  { %v2977_v0 = vpop.f32.mrb[28].mxu0  ;;  %v3048_v33 = vpop.f32.mrb[28].mxu1 }
 0xed9   :  { %v4352_v39 = vadd.f32 %v2977_v0, %v4997_v44  ;;  %v2979_v40 = vpop.f32.mrb[29].mxu0  ;;  %v3050_v48 = vpop.f32.mrb[29].mxu1  ;;  %v4384_v54 = vadd.f32 %v3048_v33, %v5006_v2 }
 0xeda   :  { %v4353_v51 = vadd.f32 %v2979_v40, %v4999_v45  ;;  %v4385_v53 = vadd.f32 %v3050_v48, %v5001_v46 }
 0xedb   :  { %4601 = vtanh.f32 %v4352_v39 }
 0xedc   :  { %4603 = vtanh.f32 %v4353_v51 }
 0xedd   :  { %4605 = vtanh.f32 %v4385_v53 }
 0xede   :  { %4607 = vtanh.f32 %v4384_v54 }
 0xee5   :  { %v4602_v58 = vpop.eup %4601 }
 0xee6   :  { %v3057_v1 = vmul.f32 0.5, %v4602_v58  ;;  %v4604_v4 = vpop.eup %4603 }
 0xee7   :  { %v3059_v9 = vmul.f32 0.5, %v4604_v4  ;;  %v4606_v15 = vpop.eup %4605 }
 0xee8   :  { %v3058_v5 = vadd.f32 0.5, %v3057_v1  ;;  %v4608_v31 = vpop.eup %4607 }
 0xee9   :  { %v3060_v17 = vadd.f32 0.5, %v3059_v9  ;;  %v3061_v32 = vmul.f32 0.5, %v4608_v31 }
 0xeea   :  { %v3064_v18 = vmul.f32 %v4606_v15, %v3058_v5 }
 0xeeb   :  { %v3063_v22 = vmul.f32 %v3060_v17, %v2901_v28  ;;  %v3062_v38 = vadd.f32 0.5, %v3061_v32 }
 0xeed   :  { %v3065_v30 = vadd.f32 %v3064_v18, %v3063_v22 }
 0xeef   :  { %4609 = vtanh.f32 %v3065_v30 }
 0xef9   :  { %v4610_v47 = vpop.eup %4609 }
 0xefa   :  { %v3067_v49 = vmul.f32 %v4610_v47, %v3062_v38 }
 0xefc   :  { %3069 = vst [vmem:[#allocation9 + $0x70] sm:$0xff] %v3067_v49  ;;  %3140 = vmatmul.mubr.f32.vlgmr.msra.gmra.mrb[30].mxu0 %v3067_v49  ;;  %3211 = vmatmul.mubr.f32.vlgmr.msra.gmra.mrb[30].mxu1 %v3067_v49 }
 0xfcf   :  { %v3141_v50 = vpop.f32.mrb[30].mxu0  ;;  %v3212_v57 = vpop.f32.mrb[30].mxu1 }
 0xfd0   :  { %v4354_v3 = vadd.f32 %v3141_v50, %v4997_v44  ;;  %v3143_v6 = vpop.f32.mrb[31].mxu0  ;;  %v3214_v7 = vpop.f32.mrb[31].mxu1  ;;  %v4386_v19 = vadd.f32 %v3212_v57, %v5006_v2 }
 0xfd1   :  { %v4355_v11 = vadd.f32 %v3143_v6, %v4999_v45  ;;  %v4387_v16 = vadd.f32 %v3214_v7, %v5001_v46 }
 0xfd2   :  { %4611 = vtanh.f32 %v4354_v3 }
 0xfd3   :  { %4613 = vtanh.f32 %v4355_v11 }
 0xfd4   :  { %4615 = vtanh.f32 %v4387_v16 }
 0xfd5   :  { %4617 = vtanh.f32 %v4386_v19 }
 0xfdc   :  { %v4612_v41 = vpop.eup %4611 }
 0xfdd   :  { %v3221_v43 = vmul.f32 0.5, %v4612_v41  ;;  %v4614_v52 = vpop.eup %4613 }
 0xfde   :  { %v3223_v59 = vmul.f32 0.5, %v4614_v52  ;;  %v4616_v60 = vpop.eup %4615 }
 0xfdf   :  { %v3222_v42 = vadd.f32 0.5, %v3221_v43  ;;  %v4618_v45 = vpop.eup %4617 }
 0xfe0   :  { %v3224_v55 = vadd.f32 0.5, %v3223_v59  ;;  %v3225_v8 = vmul.f32 0.5, %v4618_v45 }
 0xfe1   :  { %v3228_v44 = vmul.f32 %v4616_v60, %v3222_v42 }
 0xfe2   :  { %v3227_v56 = vmul.f32 %v3224_v55, %v3065_v30  ;;  %v3226_v46 = vadd.f32 0.5, %v3225_v8 }
 0xfe4   :  { %v3229_v63 = vadd.f32 %v3228_v44, %v3227_v56 }
 0xfe6   :  { %4619 = vtanh.f32 %v3229_v63 }
 0xff0   :  { %v4620_v61 = vpop.eup %4619 }
 0xff1   :  { %v3231_v62 = vmul.f32 %v4620_v61, %v3226_v46 }
 0xff3   :  { %3233 = vst [vmem:[#allocation9 + $0x78] sm:$0xff] %v3231_v62 }
 0xff4   :  { %4698 = shalt.err (!%p4695_p0)
}
 0xff5   :  { %s4699_s6 = scalar_lea.hbm %s5614_s4, 2048 }
 0xff6   :  { %p4700_p1 = scmp.ne.s32.totalorder %s5614_s4, %s4699_s6  ;;  %p4703_p2 = scmp.lt.u32.totalorder %s4699_s6, %s5614_s4 }
 0xff8   :  { %p4705_p3 = pnand %p4703_p2, %p4700_p1 }
 0xffa   :  { %4708 = shalt.err (!%p4705_p3)
}
 0xffb   :  { %3245 = dma.vmem_to_hbm [thread:$0]  %s3240_s26, 2048, %s5614_s4, [#allocation5], %s4719_s1, %s4719_s1, %s4720_s13  }
 0xffc   :  { %4713 = dma.done.wait [#allocation5], 2048  }
 0xffd   :  { %4714 = vsyncadd [#allocation5], 4294965248 }
 0xffe   :  { %3249 = vsyncpa [#allocation4], 1 }
 0xfff   :  { %3250 = vsyncpa [#allocation7], 1 }
0x1000   :  { %3251 = vsyncpa [#allocation5], 1 }

</bundles_post_ra>
